<compile_context>
chip_gen: v7x
topology: tpu7x:2x2x1
jax: 0.10.0
libtpu: 0.0.40
codegen_flags: <defaults>
</compile_context>

<pallas_src>
import math
import functools

import jax
import jax.numpy as jnp
from jax.experimental import pallas as pl
from jax.experimental.pallas import tpu as pltpu

# ----------------------------- configuration --------------------------------
# Small shapes consistent with the module's constructor (hidden dims shrunk
# from the 512 default to keep the synthetic example small; per-layer math is
# identical).
VAE_INPUT_DIM = 48
VAE_HIDDEN = 64
VAE_LATENT = 32
GAT_HIDDEN = 64
PROP_EMB = 8
MLP_FEAT = 32
GCN_EXTRA_LAYERS = 2          # module default is 5 extra layers; same math per layer
NODE_IN = 20
COORD_DIM = 3
EDGE_FEAT_DIM = 1
USE_WT_FOR_DOWNSTREAM = True

STATE_W = 128                 # packed per-node state slab width (lane-dense stores)
TAIL_W = 256                  # packed tail output slab width (lane-dense stores)


# ----------------------------- shared in-kernel helper -----------------------


def _dense(a, w_ref, b_ref=None, act=None):
    """Linear (+bias, +activation). bf16 MXU operands, f32 accumulate/elementwise."""
    y = jnp.dot(a.astype(jnp.bfloat16), w_ref[...],
                preferred_element_type=jnp.float32)
    if b_ref is not None:
        y = y + b_ref[...]
    if act == "silu":
        y = y * jax.nn.sigmoid(y)
    elif act == "relu":
        y = jnp.maximum(y, 0.0)
    return y


# ----------------------------- fused EGNN layer kernel ------------------------


def _egnn_layer_kernel(in_size,
                       state_ref, src_ref, dst_ref, dstT_ref, ea_ref,
                       ew1, eb1, ew2, eb2, cw1, cb1, cw2,
                       nw1, nb1, nw2, nb2,
                       out_ref):
    """One full DGL-EGNNConv layer fused into a single kernel.

    state_ref: (N, 128) packed [h (cols 0:64) | x (cols 64:67) | pad].
    Gathers / segment aggregation are done with one-hot matrices built from the
    int32 edge indices entirely in VMEM (never written to HBM).
    # TODO(synk): for real graph sizes (N,E >> 10^3) replace the dense in-VMEM
    # incidence matmuls with a tiled scalar-prefetch segment-sum to stay within
    # the 64 MiB v7x VMEM budget.
    """
    state = state_ref[...]                                  # (N, 128) f32
    h = state[:, :in_size]                                  # (N, in_size)
    x = state[:, GAT_HIDDEN:GAT_HIDDEN + COORD_DIM]         # (N, 3)
    n_nodes = state.shape[0]
    n_edges = src_ref.shape[0]

    # --- gathers: h[src], h[dst], x[src], x[dst] via in-VMEM one-hot matmuls (f32, exact)
    col = jax.lax.broadcasted_iota(jnp.int32, (n_edges, n_nodes), 1)
    src_oh = (col == src_ref[...]).astype(jnp.float32)      # (E, N)
    dst_oh = (col == dst_ref[...]).astype(jnp.float32)      # (E, N)
    h_src = jnp.dot(src_oh, h, preferred_element_type=jnp.float32)
    h_dst = jnp.dot(dst_oh, h, preferred_element_type=jnp.float32)
    x_src = jnp.dot(src_oh, x, preferred_element_type=jnp.float32)
    x_dst = jnp.dot(dst_oh, x, preferred_element_type=jnp.float32)

    # --- edge geometry (matches dgl.nn.EGNNConv exactly, including the 1e-30 eps)
    x_diff = x_src - x_dst                                  # fn.u_sub_v("x","x")
    radial = jnp.sum(x_diff * x_diff, axis=-1, keepdims=True)
    x_diff = x_diff / (jnp.sqrt(radial) + 1e-30)

    # --- edge MLP + coord MLP (SiLU), all intermediates stay in VMEM/vregs
    f = jnp.concatenate([h_src, h_dst, radial, ea_ref[...]], axis=-1)
    m = _dense(f, ew1, eb1, "silu")
    msg_h = _dense(m, ew2, eb2, "silu")                     # (E, H)
    c = _dense(msg_h, cw1, cb1, "silu")
    coord_scale = _dense(c, cw2)                            # (E, 1), bias-free
    msg_x = coord_scale * x_diff                            # (E, 3)

    # --- segment aggregation at dst: sum for h, mean for x
    row = jax.lax.broadcasted_iota(jnp.int32, (n_nodes, n_edges), 0)
    scat = (row == dstT_ref[...]).astype(jnp.float32)       # (N, E) incidence, VMEM only
    h_neigh = jnp.dot(scat, msg_h, preferred_element_type=jnp.float32)
    x_sum = jnp.dot(scat, msg_x, preferred_element_type=jnp.float32)
    deg = jnp.sum(scat, axis=-1, keepdims=True)
    x_neigh = x_sum / jnp.maximum(deg, 1.0)                 # mean (0 for isolated nodes)

    # --- node MLP + coord update
    h_new = _dense(jnp.concatenate([h, h_neigh], axis=-1), nw1, nb1, "silu")
    h_new = _dense(h_new, nw2, nb2)                         # no activation on 2nd Linear
    x_new = x + x_neigh

    pad = jnp.zeros((n_nodes, STATE_W - GAT_HIDDEN - COORD_DIM), jnp.float32)
    out_ref[...] = jnp.concatenate([h_new, x_new, pad], axis=-1)   # lane-dense 128 store


def pallas_egnn_layer(in_size, state, src_e, dst_e, dst_n, edge_attr, lp):
    n_nodes = state.shape[0]
    args = [
        state, src_e, dst_e, dst_n, edge_attr,
        lp["edge_w1"].astype(jnp.bfloat16), lp["edge_b1"].reshape(1, -1),
        lp["edge_w2"].astype(jnp.bfloat16), lp["edge_b2"].reshape(1, -1),
        lp["coord_w1"].astype(jnp.bfloat16), lp["coord_b1"].reshape(1, -1),
        lp["coord_w2"].astype(jnp.bfloat16),
        lp["node_w1"].astype(jnp.bfloat16), lp["node_b1"].reshape(1, -1),
        lp["node_w2"].astype(jnp.bfloat16), lp["node_b2"].reshape(1, -1),
    ]
    in_specs = [pl.BlockSpec(a.shape, lambda i: (0, 0)) for a in args]
    return pl.pallas_call(
        functools.partial(_egnn_layer_kernel, in_size),
        out_shape=jax.ShapeDtypeStruct((n_nodes, STATE_W), jnp.float32),
        grid=(1,),
        in_specs=in_specs,
        out_specs=pl.BlockSpec((n_nodes, STATE_W), lambda i: (0, 0)),
    )(*args)


# ----------------------------- fused attention + mean pool --------------------


def _attn_pool_kernel(scale, hidden, x_ref, wqkv_ref, bqkv_ref, pool_ref):
    # TODO(synk): the SelfAttention module source is not provided; assumed
    # single-head scaled dot-product attention (fused Q|K|V Linear, no output proj).
    x = x_ref[0][:, :hidden]                                        # (S, H)
    qkv = jnp.dot(x.astype(jnp.bfloat16), wqkv_ref[...],
                  preferred_element_type=jnp.float32) + bqkv_ref[...]
    q = qkv[:, :hidden]
    k = qkv[:, hidden:2 * hidden]
    v = qkv[:, 2 * hidden:]
    s = jnp.dot(q, k.T, preferred_element_type=jnp.float32) * scale  # (S, S), tiny -> f32
    s = s - jnp.max(s, axis=-1, keepdims=True)
    e = jnp.exp(s)                                                   # f32 exp (v5e-safe)
    w = e * pl.reciprocal(jnp.sum(e, axis=-1, keepdims=True), approx=True)
    o = jnp.dot(w, v, preferred_element_type=jnp.float32)            # (S, H)
    # global_mean_pool fused; attention output / weights are NOT written to HBM
    # (the default forward path discards them).
    pooled = jnp.mean(o, axis=0, keepdims=True)                      # (1, H)
    full = jnp.concatenate(
        [pooled, jnp.zeros((1, STATE_W - hidden), jnp.float32)], axis=-1)
    pool_ref[...] = full.reshape(1, 1, STATE_W)


def pallas_attention_pool(state_b, wqkv, bqkv):
    n_graphs, seq, width = state_b.shape
    scale = 1.0 / math.sqrt(GAT_HIDDEN)
    pooled = pl.pallas_call(
        functools.partial(_attn_pool_kernel, scale, GAT_HIDDEN),
        out_shape=jax.ShapeDtypeStruct((n_graphs, 1, STATE_W), jnp.float32),
        grid=(n_graphs,),
        in_specs=[
            pl.BlockSpec((1, seq, width), lambda b: (b, 0, 0)),
            pl.BlockSpec((GAT_HIDDEN, 3 * GAT_HIDDEN), lambda b: (0, 0)),
            pl.BlockSpec((1, 3 * GAT_HIDDEN), lambda b: (0, 0)),
        ],
        out_specs=pl.BlockSpec((1, 1, STATE_W), lambda b: (b, 0, 0)),
        compiler_params=pltpu.CompilerParams(dimension_semantics=("parallel",)),
    )(state_b, wqkv.astype(jnp.bfloat16), bqkv.reshape(1, -1))
    return pooled.reshape(n_graphs, STATE_W)


# ----------------------------- fused VAE / classifier tail --------------------


def _tail_kernel(seq_ref, prop_ref, eps_ref, gat_ref,
                 pw1, pb1, pw2, pb2,
                 f1w, f1b, f2w, f2b, f3w, f3b, f4w, f4b,
                 cw, cb, hw, hb,
                 out_ref):
    x_gat = gat_ref[...][:, :GAT_HIDDEN]                          # pooled attention feat
    # property embedding: Linear(2,32) -> ReLU -> Dropout(eval=id) -> Linear(32,8) -> ReLU
    pe = _dense(_dense(prop_ref[...], pw1, pb1, "relu"), pw2, pb2, "relu")
    # VAE encoder (fc21 | fc22 fused into one lane-dense weight)
    h1 = _dense(seq_ref[...], f1w, f1b, "relu")
    ml = _dense(h1, f2w, f2b)                                     # (B, 2*latent)
    mu = ml[:, :VAE_LATENT]
    logvar = ml[:, VAE_LATENT:]
    # reparameterize (elementwise, f32)
    z = mu + eps_ref[...] * jnp.exp(0.5 * logvar)
    z_vae = jnp.concatenate([z, pe], axis=-1)                     # (B, latent+prop)
    # VAE decoder
    h3 = _dense(z_vae, f3w, f3b, "relu")
    recon = _dense(h3, f4w, f4b)                                  # (B, vae_input_dim)
    # classifier (Flatten already 2D -> Linear -> ReLU -> Dropout(eval=id)) + fused heads
    if USE_WT_FOR_DOWNSTREAM:
        combined = jnp.concatenate([x_gat, z_vae, x_gat, z_vae], axis=-1)
    else:
        combined = jnp.concatenate([x_gat, z_vae], axis=-1)
    fusion = _dense(combined, cw, cb, "relu")
    heads = _dense(fusion, hw, hb)                                # (B, 1 + 20)
    used = 2 * VAE_LATENT + VAE_INPUT_DIM + 1 + 20
    pad = jnp.zeros((mu.shape[0], TAIL_W - used), jnp.float32)
    # single lane-dense packed output slab: [mu | logvar | recon | final | node_pred | pad]
    out_ref[...] = jnp.concatenate([mu, logvar, recon, heads, pad], axis=-1)


def pallas_tail(seq, prop, eps, gat_slab, p):
    n = seq.shape[0]
    args = [
        seq, prop, eps, gat_slab,
        p["prop_w1"].astype(jnp.bfloat16), p["prop_b1"].reshape(1, -1),
        p["prop_w2"].astype(jnp.bfloat16), p["prop_b2"].reshape(1, -1),
        p["vae_fc1_w"].astype(jnp.bfloat16), p["vae_fc1_b"].reshape(1, -1),
        p["vae_fc2_w"].astype(jnp.bfloat16), p["vae_fc2_b"].reshape(1, -1),
        p["vae_fc3_w"].astype(jnp.bfloat16), p["vae_fc3_b"].reshape(1, -1),
        p["vae_fc4_w"].astype(jnp.bfloat16), p["vae_fc4_b"].reshape(1, -1),
        p["cls_w"].astype(jnp.bfloat16), p["cls_b"].reshape(1, -1),
        p["heads_w"].astype(jnp.bfloat16), p["heads_b"].reshape(1, -1),
    ]
    in_specs = [pl.BlockSpec(a.shape, lambda i: (0, 0)) for a in args]
    out = pl.pallas_call(
        _tail_kernel,
        out_shape=jax.ShapeDtypeStruct((n, TAIL_W), jnp.float32),
        grid=(1,),
        in_specs=in_specs,
        out_specs=pl.BlockSpec((n, TAIL_W), lambda i: (0, 0)),
    )(*args)
    mu = out[:, :VAE_LATENT]
    logvar = out[:, VAE_LATENT:2 * VAE_LATENT]
    o = 2 * VAE_LATENT
    recon_x = out[:, o:o + VAE_INPUT_DIM]
    o += VAE_INPUT_DIM
    final_output = out[:, o:o + 1]
    node_prediction = out[:, o + 1:o + 1 + 20]
    return recon_x, mu, logvar, final_output, node_prediction


# ----------------------------- parameter init --------------------------------


def _linear_params(key, fan_in, fan_out, bias=True):
    kw, kb = jax.random.split(key)
    bound = 1.0 / math.sqrt(fan_in)
    w = jax.random.uniform(kw, (fan_in, fan_out), jnp.float32, -bound, bound)
    if bias:
        b = jax.random.uniform(kb, (fan_out,), jnp.float32, -bound, bound)
    else:
        b = jnp.zeros((fan_out,), jnp.float32)
    return w, b


def init_params(key):
    keys = iter(jax.random.split(key, 64))
    p = {}
    gcn = []
    in_sizes = [NODE_IN] + [GAT_HIDDEN] * GCN_EXTRA_LAYERS
    for in_size in in_sizes:
        lp = {}
        lp["edge_w1"], lp["edge_b1"] = _linear_params(
            next(keys), in_size * 2 + EDGE_FEAT_DIM + 1, GAT_HIDDEN)
        lp["edge_w2"], lp["edge_b2"] = _linear_params(next(keys), GAT_HIDDEN, GAT_HIDDEN)
        lp["coord_w1"], lp["coord_b1"] = _linear_params(next(keys), GAT_HIDDEN, GAT_HIDDEN)
        lp["coord_w2"], _ = _linear_params(next(keys), GAT_HIDDEN, 1, bias=False)
        lp["node_w1"], lp["node_b1"] = _linear_params(
            next(keys), in_size + GAT_HIDDEN, GAT_HIDDEN)
        lp["node_w2"], lp["node_b2"] = _linear_params(next(keys), GAT_HIDDEN, GAT_HIDDEN)
        gcn.append(lp)
    p["gcn"] = gcn
    # fused Q | K | V projection weight (H, 3H)
    wq, bq = _linear_params(next(keys), GAT_HIDDEN, GAT_HIDDEN)
    wk, bk = _linear_params(next(keys), GAT_HIDDEN, GAT_HIDDEN)
    wv, bv = _linear_params(next(keys), GAT_HIDDEN, GAT_HIDDEN)
    p["attn_wqkv"] = jnp.concatenate([wq, wk, wv], axis=1)
    p["attn_bqkv"] = jnp.concatenate([bq, bk, bv], axis=0)
    p["vae_fc1_w"], p["vae_fc1_b"] = _linear_params(next(keys), VAE_INPUT_DIM, VAE_HIDDEN)
    w21, b21 = _linear_params(next(keys), VAE_HIDDEN, VAE_LATENT)
    w22, b22 = _linear_params(next(keys), VAE_HIDDEN, VAE_LATENT)
    p["vae_fc2_w"] = jnp.concatenate([w21, w22], axis=1)      # mu | logvar fused
    p["vae_fc2_b"] = jnp.concatenate([b21, b22], axis=0)
    p["vae_fc3_w"], p["vae_fc3_b"] = _linear_params(
        next(keys), VAE_LATENT + PROP_EMB, VAE_HIDDEN)
    p["vae_fc4_w"], p["vae_fc4_b"] = _linear_params(next(keys), VAE_HIDDEN, VAE_INPUT_DIM)
    p["prop_w1"], p["prop_b1"] = _linear_params(next(keys), 2, 32)
    p["prop_w2"], p["prop_b2"] = _linear_params(next(keys), 32, PROP_EMB)
    cls_in = (VAE_LATENT + PROP_EMB + GAT_HIDDEN) * (2 if USE_WT_FOR_DOWNSTREAM else 1)
    p["cls_w"], p["cls_b"] = _linear_params(next(keys), cls_in, MLP_FEAT)
    hw, hb = _linear_params(next(keys), MLP_FEAT, 1)
    nw, nb = _linear_params(next(keys), MLP_FEAT, 20)
    p["heads_w"] = jnp.concatenate([hw, nw], axis=1)          # final_output | node_pred
    p["heads_b"] = jnp.concatenate([hb, nb], axis=0)
    return p


# ----------------------------- model forward ---------------------------------


def forward(p, node_x, edge_attr, src, dst, num_graphs, nodes_per_graph,
            sequence_data, peptide_property, eps):
    num_nodes = node_x.shape[0]
    num_edges = src.shape[0]
    # packed lane-dense per-node state slab: [h | coords | zero pad]
    state = jnp.zeros((num_nodes, STATE_W), jnp.float32)
    state = state.at[:, :NODE_IN].set(node_x[:, :NODE_IN].astype(jnp.float32))
    state = state.at[:, GAT_HIDDEN:GAT_HIDDEN + COORD_DIM].set(
        node_x[:, NODE_IN:].astype(jnp.float32))
    src_e = src.reshape(num_edges, 1).astype(jnp.int32)
    dst_e = dst.reshape(num_edges, 1).astype(jnp.int32)
    dst_n = dst.reshape(1, num_edges).astype(jnp.int32)
    edge_attr = edge_attr.astype(jnp.float32)

    for li, lp in enumerate(p["gcn"]):
        in_size = NODE_IN if li == 0 else GAT_HIDDEN
        state = pallas_egnn_layer(in_size, state, src_e, dst_e, dst_n, edge_attr, lp)

    # self-attention + global_mean_pool per graph (equal, contiguous nodes per graph)
    state_b = state.reshape(num_graphs, nodes_per_graph, STATE_W)
    gat_slab = pallas_attention_pool(state_b, p["attn_wqkv"], p["attn_bqkv"])

    # property embedding + VAE encode/reparam/decode + classifier + heads (one kernel)
    return pallas_tail(sequence_data.reshape(-1, VAE_INPUT_DIM).astype(jnp.float32),
                       peptide_property.astype(jnp.float32),
                       eps.astype(jnp.float32), gat_slab, p)


# ----------------------------- main -------------------------------------------

if __name__ == "__main__":
    key = jax.random.PRNGKey(0)
    k_param, k_node, k_edge, k_seq, k_prop, k_eps = jax.random.split(key, 6)

    params = init_params(k_param)

    NUM_GRAPHS = 2
    NODES_PER_GRAPH = 8
    NUM_NODES = NUM_GRAPHS * NODES_PER_GRAPH

    # synthetic batched graph: per-graph bidirectional ring
    src_list, dst_list = [], []
    for g in range(NUM_GRAPHS):
        off = g * NODES_PER_GRAPH
        for i in range(NODES_PER_GRAPH):
            j = (i + 1) % NODES_PER_GRAPH
            src_list += [off + i, off + j]
            dst_list += [off + j, off + i]
    src = jnp.array(src_list, dtype=jnp.int32)
    dst = jnp.array(dst_list, dtype=jnp.int32)
    num_edges = src.shape[0]

    node_x = jax.random.normal(k_node, (NUM_NODES, NODE_IN + COORD_DIM), jnp.float32)
    edge_attr = jax.random.normal(k_edge, (num_edges, EDGE_FEAT_DIM), jnp.float32)
    sequence_data = jax.random.normal(k_seq, (NUM_GRAPHS, VAE_INPUT_DIM), jnp.float32)
    peptide_property = jax.random.normal(k_prop, (NUM_GRAPHS, 2), jnp.float32)
    eps = jax.random.normal(k_eps, (NUM_GRAPHS, VAE_LATENT), jnp.float32)

    fwd = jax.jit(forward, static_argnums=(5, 6))
    outs = fwd(params, node_x, edge_attr, src, dst, NUM_GRAPHS, NODES_PER_GRAPH,
               sequence_data, peptide_property, eps)
    outs = jax.block_until_ready(outs)

    recon_x, mu, logvar, final_output, node_prediction = outs
    assert recon_x.shape == (NUM_GRAPHS, VAE_INPUT_DIM)
    assert mu.shape == (NUM_GRAPHS, VAE_LATENT)
    assert logvar.shape == (NUM_GRAPHS, VAE_LATENT)
    assert final_output.shape == (NUM_GRAPHS, 1)
    assert node_prediction.shape == (NUM_GRAPHS, 20)
    assert bool(jnp.all(jnp.isfinite(recon_x))) and bool(jnp.all(jnp.isfinite(final_output)))
    print("KERNEL_OK")
</pallas_src>

<mosaic_0001>
module attributes {stable_mosaic.version = 11 : i64} {
  func.func @_egnn_layer_kernel(%arg0: i32, %arg1: memref<16x128xf32, #tpu.memory_space<vmem>>, %arg2: memref<32x1xi32, #tpu.memory_space<vmem>>, %arg3: memref<32x1xi32, #tpu.memory_space<vmem>>, %arg4: memref<1x32xi32, #tpu.memory_space<vmem>>, %arg5: memref<32x1xf32, #tpu.memory_space<vmem>>, %arg6: memref<42x64xbf16, #tpu.memory_space<vmem>>, %arg7: memref<1x64xf32, #tpu.memory_space<vmem>>, %arg8: memref<64x64xbf16, #tpu.memory_space<vmem>>, %arg9: memref<1x64xf32, #tpu.memory_space<vmem>>, %arg10: memref<64x64xbf16, #tpu.memory_space<vmem>>, %arg11: memref<1x64xf32, #tpu.memory_space<vmem>>, %arg12: memref<64x1xbf16, #tpu.memory_space<vmem>>, %arg13: memref<84x64xbf16, #tpu.memory_space<vmem>>, %arg14: memref<1x64xf32, #tpu.memory_space<vmem>>, %arg15: memref<64x64xbf16, #tpu.memory_space<vmem>>, %arg16: memref<1x64xf32, #tpu.memory_space<vmem>>, %arg17: memref<16x128xf32, #tpu.memory_space<vmem>>) attributes {dimension_semantics = [#tpu.dimension_semantics<arbitrary>], iteration_bounds = array<i64: 1>, scalar_prefetch = 0 : i64, scratch_operands = 0 : i64, tpu.core_type = #tpu.core_type<tc>, window_params = [{pipeline_mode = #tpu.pipeline_mode<synchronous>, transform_indices = @transform_0, window_bounds = array<i64: 16, 128>}, {pipeline_mode = #tpu.pipeline_mode<synchronous>, transform_indices = @transform_1, window_bounds = array<i64: 32, 1>}, {pipeline_mode = #tpu.pipeline_mode<synchronous>, transform_indices = @transform_2, window_bounds = array<i64: 32, 1>}, {pipeline_mode = #tpu.pipeline_mode<synchronous>, transform_indices = @transform_3, window_bounds = array<i64: 1, 32>}, {pipeline_mode = #tpu.pipeline_mode<synchronous>, transform_indices = @transform_4, window_bounds = array<i64: 32, 1>}, {pipeline_mode = #tpu.pipeline_mode<synchronous>, transform_indices = @transform_5, window_bounds = array<i64: 42, 64>}, {pipeline_mode = #tpu.pipeline_mode<synchronous>, transform_indices = @transform_6, window_bounds = array<i64: 1, 64>}, {pipeline_mode = #tpu.pipeline_mode<synchronous>, transform_indices = @transform_7, window_bounds = array<i64: 64, 64>}, {pipeline_mode = #tpu.pipeline_mode<synchronous>, transform_indices = @transform_8, window_bounds = array<i64: 1, 64>}, {pipeline_mode = #tpu.pipeline_mode<synchronous>, transform_indices = @transform_9, window_bounds = array<i64: 64, 64>}, {pipeline_mode = #tpu.pipeline_mode<synchronous>, transform_indices = @transform_10, window_bounds = array<i64: 1, 64>}, {pipeline_mode = #tpu.pipeline_mode<synchronous>, transform_indices = @transform_11, window_bounds = array<i64: 64, 1>}, {pipeline_mode = #tpu.pipeline_mode<synchronous>, transform_indices = @transform_12, window_bounds = array<i64: 84, 64>}, {pipeline_mode = #tpu.pipeline_mode<synchronous>, transform_indices = @transform_13, window_bounds = array<i64: 1, 64>}, {pipeline_mode = #tpu.pipeline_mode<synchronous>, transform_indices = @transform_14, window_bounds = array<i64: 64, 64>}, {pipeline_mode = #tpu.pipeline_mode<synchronous>, transform_indices = @transform_15, window_bounds = array<i64: 1, 64>}, {pipeline_mode = #tpu.pipeline_mode<synchronous>, transform_indices = @transform_16, window_bounds = array<i64: 16, 128>}]} {
    %c0 = arith.constant 0 : index
    %c0_0 = arith.constant 0 : index
    %0 = vector.load %arg1[%c0, %c0_0] : memref<16x128xf32, #tpu.memory_space<vmem>>, vector<16x128xf32>
    %1 = vector.extract_strided_slice %0 {offsets = [0, 0], sizes = [16, 20], strides = [1, 1]} : vector<16x128xf32> to vector<16x20xf32>
    %2 = vector.extract_strided_slice %0 {offsets = [0, 64], sizes = [16, 3], strides = [1, 1]} : vector<16x128xf32> to vector<16x3xf32>
    %3 = tpu.iota {dimensions = array<i32: 1>} : vector<32x16xi32>
    %c0_1 = arith.constant 0 : index
    %c0_2 = arith.constant 0 : index
    %4 = vector.load %arg2[%c0_1, %c0_2] : memref<32x1xi32, #tpu.memory_space<vmem>>, vector<32x1xi32>
    %5 = vector.broadcast %4 : vector<32x1xi32> to vector<32x16xi32>
    %6 = arith.cmpi eq, %3, %5 : vector<32x16xi32>
    %7 = arith.extui %6 : vector<32x16xi1> to vector<32x16xi32>
    %8 = arith.sitofp %7 : vector<32x16xi32> to vector<32x16xf32>
    %c0_3 = arith.constant 0 : index
    %c0_4 = arith.constant 0 : index
    %9 = vector.load %arg3[%c0_3, %c0_4] : memref<32x1xi32, #tpu.memory_space<vmem>>, vector<32x1xi32>
    %10 = vector.broadcast %9 : vector<32x1xi32> to vector<32x16xi32>
    %11 = arith.cmpi eq, %3, %10 : vector<32x16xi32>
    %12 = arith.extui %11 : vector<32x16xi1> to vector<32x16xi32>
    %13 = arith.sitofp %12 : vector<32x16xi32> to vector<32x16xf32>
    %cst = arith.constant dense<0.000000e+00> : vector<32x20xf32>
    %14 = tpu.matmul %8, %1, %cst {dimension_numbers = #tpu.dot_dimension_numbers<[1], [0], [0], [1], [0, 0, 1, 1], [], []>} : vector<32x16xf32>, vector<16x20xf32>, vector<32x20xf32> -> vector<32x20xf32>
    %cst_5 = arith.constant dense<0.000000e+00> : vector<32x20xf32>
    %15 = tpu.matmul %13, %1, %cst_5 {dimension_numbers = #tpu.dot_dimension_numbers<[1], [0], [0], [1], [0, 0, 1, 1], [], []>} : vector<32x16xf32>, vector<16x20xf32>, vector<32x20xf32> -> vector<32x20xf32>
    %cst_6 = arith.constant dense<0.000000e+00> : vector<32x3xf32>
    %16 = tpu.matmul %8, %2, %cst_6 {dimension_numbers = #tpu.dot_dimension_numbers<[1], [0], [0], [1], [0, 0, 1, 1], [], []>} : vector<32x16xf32>, vector<16x3xf32>, vector<32x3xf32> -> vector<32x3xf32>
    %cst_7 = arith.constant dense<0.000000e+00> : vector<32x3xf32>
    %17 = tpu.matmul %13, %2, %cst_7 {dimension_numbers = #tpu.dot_dimension_numbers<[1], [0], [0], [1], [0, 0, 1, 1], [], []>} : vector<32x16xf32>, vector<16x3xf32>, vector<32x3xf32> -> vector<32x3xf32>
    %18 = arith.subf %16, %17 : vector<32x3xf32>
    %19 = arith.mulf %18, %18 : vector<32x3xf32>
    %cst_8 = arith.constant dense<0.000000e+00> : vector<32xf32>
    %20 = vector.multi_reduction <add>, %19, %cst_8 [1] : vector<32x3xf32> to vector<32xf32>
    %21 = vector.shape_cast %20 : vector<32xf32> to vector<32x1xf32>
    %22 = math.sqrt %21 : vector<32x1xf32>
    %cst_9 = arith.constant 1.000000e-30 : f32
    %23 = vector.broadcast %cst_9 : f32 to vector<32x1xf32>
    %24 = arith.addf %22, %23 : vector<32x1xf32>
    %25 = vector.broadcast %24 : vector<32x1xf32> to vector<32x3xf32>
    %26 = arith.divf %18, %25 : vector<32x3xf32>
    %c0_10 = arith.constant 0 : index
    %c0_11 = arith.constant 0 : index
    %27 = vector.load %arg5[%c0_10, %c0_11] : memref<32x1xf32, #tpu.memory_space<vmem>>, vector<32x1xf32>
    %28 = tpu.concatenate %14, %15, %21, %27 in 1 : vector<32x20xf32>, vector<32x20xf32>, vector<32x1xf32>, vector<32x1xf32> -> vector<32x42xf32>
    %29 = arith.truncf %28 : vector<32x42xf32> to vector<32x42xbf16>
    %c0_12 = arith.constant 0 : index
    %c0_13 = arith.constant 0 : index
    %30 = vector.load %arg6[%c0_12, %c0_13] : memref<42x64xbf16, #tpu.memory_space<vmem>>, vector<42x64xbf16>
    %cst_14 = arith.constant dense<0.000000e+00> : vector<32x64xf32>
    %31 = tpu.matmul %29, %30, %cst_14 {dimension_numbers = #tpu.dot_dimension_numbers<[1], [0], [0], [1], [0, 0, 1, 1], [], []>} : vector<32x42xbf16>, vector<42x64xbf16>, vector<32x64xf32> -> vector<32x64xf32>
    %c0_15 = arith.constant 0 : index
    %c0_16 = arith.constant 0 : index
    %32 = vector.load %arg7[%c0_15, %c0_16] : memref<1x64xf32, #tpu.memory_space<vmem>>, vector<1x64xf32>
    %33 = vector.broadcast %32 : vector<1x64xf32> to vector<32x64xf32>
    %34 = arith.addf %31, %33 : vector<32x64xf32>
    %35 = arith.negf %34 : vector<32x64xf32>
    %36 = math.exp %35 : vector<32x64xf32>
    %cst_17 = arith.constant 1.000000e+00 : f32
    %37 = vector.broadcast %cst_17 : f32 to vector<32x64xf32>
    %38 = arith.addf %37, %36 : vector<32x64xf32>
    %39 = arith.divf %37, %38 : vector<32x64xf32>
    %40 = arith.mulf %34, %39 : vector<32x64xf32>
    %41 = arith.truncf %40 : vector<32x64xf32> to vector<32x64xbf16>
    %c0_18 = arith.constant 0 : index
    %c0_19 = arith.constant 0 : index
    %42 = vector.load %arg8[%c0_18, %c0_19] : memref<64x64xbf16, #tpu.memory_space<vmem>>, vector<64x64xbf16>
    %cst_20 = arith.constant dense<0.000000e+00> : vector<32x64xf32>
    %43 = tpu.matmul %41, %42, %cst_20 {dimension_numbers = #tpu.dot_dimension_numbers<[1], [0], [0], [1], [0, 0, 1, 1], [], []>} : vector<32x64xbf16>, vector<64x64xbf16>, vector<32x64xf32> -> vector<32x64xf32>
    %c0_21 = arith.constant 0 : index
    %c0_22 = arith.constant 0 : index
    %44 = vector.load %arg9[%c0_21, %c0_22] : memref<1x64xf32, #tpu.memory_space<vmem>>, vector<1x64xf32>
    %45 = vector.broadcast %44 : vector<1x64xf32> to vector<32x64xf32>
    %46 = arith.addf %43, %45 : vector<32x64xf32>
    %47 = arith.negf %46 : vector<32x64xf32>
    %48 = math.exp %47 : vector<32x64xf32>
    %cst_23 = arith.constant 1.000000e+00 : f32
    %49 = vector.broadcast %cst_23 : f32 to vector<32x64xf32>
    %50 = arith.addf %49, %48 : vector<32x64xf32>
    %51 = arith.divf %49, %50 : vector<32x64xf32>
    %52 = arith.mulf %46, %51 : vector<32x64xf32>
    %53 = arith.truncf %52 : vector<32x64xf32> to vector<32x64xbf16>
    %c0_24 = arith.constant 0 : index
    %c0_25 = arith.constant 0 : index
    %54 = vector.load %arg10[%c0_24, %c0_25] : memref<64x64xbf16, #tpu.memory_space<vmem>>, vector<64x64xbf16>
    %cst_26 = arith.constant dense<0.000000e+00> : vector<32x64xf32>
    %55 = tpu.matmul %53, %54, %cst_26 {dimension_numbers = #tpu.dot_dimension_numbers<[1], [0], [0], [1], [0, 0, 1, 1], [], []>} : vector<32x64xbf16>, vector<64x64xbf16>, vector<32x64xf32> -> vector<32x64xf32>
    %c0_27 = arith.constant 0 : index
    %c0_28 = arith.constant 0 : index
    %56 = vector.load %arg11[%c0_27, %c0_28] : memref<1x64xf32, #tpu.memory_space<vmem>>, vector<1x64xf32>
    %57 = vector.broadcast %56 : vector<1x64xf32> to vector<32x64xf32>
    %58 = arith.addf %55, %57 : vector<32x64xf32>
    %59 = arith.negf %58 : vector<32x64xf32>
    %60 = math.exp %59 : vector<32x64xf32>
    %cst_29 = arith.constant 1.000000e+00 : f32
    %61 = vector.broadcast %cst_29 : f32 to vector<32x64xf32>
    %62 = arith.addf %61, %60 : vector<32x64xf32>
    %63 = arith.divf %61, %62 : vector<32x64xf32>
    %64 = arith.mulf %58, %63 : vector<32x64xf32>
    %65 = arith.truncf %64 : vector<32x64xf32> to vector<32x64xbf16>
    %c0_30 = arith.constant 0 : index
    %c0_31 = arith.constant 0 : index
    %66 = vector.load %arg12[%c0_30, %c0_31] : memref<64x1xbf16, #tpu.memory_space<vmem>>, vector<64x1xbf16>
    %cst_32 = arith.constant dense<0.000000e+00> : vector<32x1xf32>
    %67 = tpu.matmul %65, %66, %cst_32 {dimension_numbers = #tpu.dot_dimension_numbers<[1], [0], [0], [1], [0, 0, 1, 1], [], []>} : vector<32x64xbf16>, vector<64x1xbf16>, vector<32x1xf32> -> vector<32x1xf32>
    %68 = vector.broadcast %67 : vector<32x1xf32> to vector<32x3xf32>
    %69 = arith.mulf %68, %26 : vector<32x3xf32>
    %70 = tpu.iota {dimensions = array<i32: 0>} : vector<16x32xi32>
    %c0_33 = arith.constant 0 : index
    %c0_34 = arith.constant 0 : index
    %71 = vector.load %arg4[%c0_33, %c0_34] : memref<1x32xi32, #tpu.memory_space<vmem>>, vector<1x32xi32>
    %72 = vector.broadcast %71 : vector<1x32xi32> to vector<16x32xi32>
    %73 = arith.cmpi eq, %70, %72 : vector<16x32xi32>
    %74 = arith.extui %73 : vector<16x32xi1> to vector<16x32xi32>
    %75 = arith.sitofp %74 : vector<16x32xi32> to vector<16x32xf32>
    %cst_35 = arith.constant dense<0.000000e+00> : vector<16x64xf32>
    %76 = tpu.matmul %75, %52, %cst_35 {dimension_numbers = #tpu.dot_dimension_numbers<[1], [0], [0], [1], [0, 0, 1, 1], [], []>} : vector<16x32xf32>, vector<32x64xf32>, vector<16x64xf32> -> vector<16x64xf32>
    %cst_36 = arith.constant dense<0.000000e+00> : vector<16x3xf32>
    %77 = tpu.matmul %75, %69, %cst_36 {dimension_numbers = #tpu.dot_dimension_numbers<[1], [0], [0], [1], [0, 0, 1, 1], [], []>} : vector<16x32xf32>, vector<32x3xf32>, vector<16x3xf32> -> vector<16x3xf32>
    %cst_37 = arith.constant dense<0.000000e+00> : vector<16xf32>
    %78 = vector.multi_reduction <add>, %75, %cst_37 [1] : vector<16x32xf32> to vector<16xf32>
    %79 = vector.shape_cast %78 : vector<16xf32> to vector<16x1xf32>
    %cst_38 = arith.constant 1.000000e+00 : f32
    %80 = vector.broadcast %cst_38 : f32 to vector<16x1xf32>
    %81 = arith.maximumf %79, %80 : vector<16x1xf32>
    %82 = vector.broadcast %81 : vector<16x1xf32> to vector<16x3xf32>
    %83 = arith.divf %77, %82 : vector<16x3xf32>
    %84 = tpu.concatenate %1, %76 in 1 : vector<16x20xf32>, vector<16x64xf32> -> vector<16x84xf32>
    %85 = arith.truncf %84 : vector<16x84xf32> to vector<16x84xbf16>
    %c0_39 = arith.constant 0 : index
    %c0_40 = arith.constant 0 : index
    %86 = vector.load %arg13[%c0_39, %c0_40] : memref<84x64xbf16, #tpu.memory_space<vmem>>, vector<84x64xbf16>
    %cst_41 = arith.constant dense<0.000000e+00> : vector<16x64xf32>
    %87 = tpu.matmul %85, %86, %cst_41 {dimension_numbers = #tpu.dot_dimension_numbers<[1], [0], [0], [1], [0, 0, 1, 1], [], []>} : vector<16x84xbf16>, vector<84x64xbf16>, vector<16x64xf32> -> vector<16x64xf32>
    %c0_42 = arith.constant 0 : index
    %c0_43 = arith.constant 0 : index
    %88 = vector.load %arg14[%c0_42, %c0_43] : memref<1x64xf32, #tpu.memory_space<vmem>>, vector<1x64xf32>
    %89 = vector.broadcast %88 : vector<1x64xf32> to vector<16x64xf32>
    %90 = arith.addf %87, %89 : vector<16x64xf32>
    %91 = arith.negf %90 : vector<16x64xf32>
    %92 = math.exp %91 : vector<16x64xf32>
    %cst_44 = arith.constant 1.000000e+00 : f32
    %93 = vector.broadcast %cst_44 : f32 to vector<16x64xf32>
    %94 = arith.addf %93, %92 : vector<16x64xf32>
    %95 = arith.divf %93, %94 : vector<16x64xf32>
    %96 = arith.mulf %90, %95 : vector<16x64xf32>
    %97 = arith.truncf %96 : vector<16x64xf32> to vector<16x64xbf16>
    %c0_45 = arith.constant 0 : index
    %c0_46 = arith.constant 0 : index
    %98 = vector.load %arg15[%c0_45, %c0_46] : memref<64x64xbf16, #tpu.memory_space<vmem>>, vector<64x64xbf16>
    %cst_47 = arith.constant dense<0.000000e+00> : vector<16x64xf32>
    %99 = tpu.matmul %97, %98, %cst_47 {dimension_numbers = #tpu.dot_dimension_numbers<[1], [0], [0], [1], [0, 0, 1, 1], [], []>} : vector<16x64xbf16>, vector<64x64xbf16>, vector<16x64xf32> -> vector<16x64xf32>
    %c0_48 = arith.constant 0 : index
    %c0_49 = arith.constant 0 : index
    %100 = vector.load %arg16[%c0_48, %c0_49] : memref<1x64xf32, #tpu.memory_space<vmem>>, vector<1x64xf32>
    %101 = vector.broadcast %100 : vector<1x64xf32> to vector<16x64xf32>
    %102 = arith.addf %99, %101 : vector<16x64xf32>
    %103 = arith.addf %2, %83 : vector<16x3xf32>
    %cst_50 = arith.constant 0.000000e+00 : f32
    %104 = vector.broadcast %cst_50 : f32 to vector<16x61xf32>
    %105 = tpu.concatenate %102, %103, %104 in 1 : vector<16x64xf32>, vector<16x3xf32>, vector<16x61xf32> -> vector<16x128xf32>
    %c0_51 = arith.constant 0 : index
    %c0_52 = arith.constant 0 : index
    %106 = vector.load %arg17[%c0_51, %c0_52] : memref<16x128xf32, #tpu.memory_space<vmem>>, vector<16x128xf32>
    tpu.vector_store %arg17[%c0_51, %c0_52], %105 {strides = array<i32>} : memref<16x128xf32, #tpu.memory_space<vmem>>, vector<16x128xf32>,
    return
  }
  func.func @transform_0(%arg0: i32) -> (i32, i32) {
    %c0_i32 = arith.constant 0 : i32
    %c0_i32_0 = arith.constant 0 : i32
    %c0_i32_1 = arith.constant 0 : i32
    return %c0_i32, %c0_i32_0 : i32, i32
  }
  func.func @transform_1(%arg0: i32) -> (i32, i32) {
    %c0_i32 = arith.constant 0 : i32
    %c0_i32_0 = arith.constant 0 : i32
    %c0_i32_1 = arith.constant 0 : i32
    return %c0_i32, %c0_i32_0 : i32, i32
  }
  func.func @transform_2(%arg0: i32) -> (i32, i32) {
    %c0_i32 = arith.constant 0 : i32
    %c0_i32_0 = arith.constant 0 : i32
    %c0_i32_1 = arith.constant 0 : i32
    return %c0_i32, %c0_i32_0 : i32, i32
  }
  func.func @transform_3(%arg0: i32) -> (i32, i32) {
    %c0_i32 = arith.constant 0 : i32
    %c0_i32_0 = arith.constant 0 : i32
    %c0_i32_1 = arith.constant 0 : i32
    return %c0_i32, %c0_i32_0 : i32, i32
  }
  func.func @transform_4(%arg0: i32) -> (i32, i32) {
    %c0_i32 = arith.constant 0 : i32
    %c0_i32_0 = arith.constant 0 : i32
    %c0_i32_1 = arith.constant 0 : i32
    return %c0_i32, %c0_i32_0 : i32, i32
  }
  func.func @transform_5(%arg0: i32) -> (i32, i32) {
    %c0_i32 = arith.constant 0 : i32
    %c0_i32_0 = arith.constant 0 : i32
    %c0_i32_1 = arith.constant 0 : i32
    return %c0_i32, %c0_i32_0 : i32, i32
  }
  func.func @transform_6(%arg0: i32) -> (i32, i32) {
    %c0_i32 = arith.constant 0 : i32
    %c0_i32_0 = arith.constant 0 : i32
    %c0_i32_1 = arith.constant 0 : i32
    return %c0_i32, %c0_i32_0 : i32, i32
  }
  func.func @transform_7(%arg0: i32) -> (i32, i32) {
    %c0_i32 = arith.constant 0 : i32
    %c0_i32_0 = arith.constant 0 : i32
    %c0_i32_1 = arith.constant 0 : i32
    return %c0_i32, %c0_i32_0 : i32, i32
  }
  func.func @transform_8(%arg0: i32) -> (i32, i32) {
    %c0_i32 = arith.constant 0 : i32
    %c0_i32_0 = arith.constant 0 : i32
    %c0_i32_1 = arith.constant 0 : i32
    return %c0_i32, %c0_i32_0 : i32, i32
  }
  func.func @transform_9(%arg0: i32) -> (i32, i32) {
    %c0_i32 = arith.constant 0 : i32
    %c0_i32_0 = arith.constant 0 : i32
    %c0_i32_1 = arith.constant 0 : i32
    return %c0_i32, %c0_i32_0 : i32, i32
  }
  func.func @transform_10(%arg0: i32) -> (i32, i32) {
    %c0_i32 = arith.constant 0 : i32
    %c0_i32_0 = arith.constant 0 : i32
    %c0_i32_1 = arith.constant 0 : i32
    return %c0_i32, %c0_i32_0 : i32, i32
  }
  func.func @transform_11(%arg0: i32) -> (i32, i32) {
    %c0_i32 = arith.constant 0 : i32
    %c0_i32_0 = arith.constant 0 : i32
    %c0_i32_1 = arith.constant 0 : i32
    return %c0_i32, %c0_i32_0 : i32, i32
  }
  func.func @transform_12(%arg0: i32) -> (i32, i32) {
    %c0_i32 = arith.constant 0 : i32
    %c0_i32_0 = arith.constant 0 : i32
    %c0_i32_1 = arith.constant 0 : i32
    return %c0_i32, %c0_i32_0 : i32, i32
  }
  func.func @transform_13(%arg0: i32) -> (i32, i32) {
    %c0_i32 = arith.constant 0 : i32
    %c0_i32_0 = arith.constant 0 : i32
    %c0_i32_1 = arith.constant 0 : i32
    return %c0_i32, %c0_i32_0 : i32, i32
  }
  func.func @transform_14(%arg0: i32) -> (i32, i32) {
    %c0_i32 = arith.constant 0 : i32
    %c0_i32_0 = arith.constant 0 : i32
    %c0_i32_1 = arith.constant 0 : i32
    return %c0_i32, %c0_i32_0 : i32, i32
  }
  func.func @transform_15(%arg0: i32) -> (i32, i32) {
    %c0_i32 = arith.constant 0 : i32
    %c0_i32_0 = arith.constant 0 : i32
    %c0_i32_1 = arith.constant 0 : i32
    return %c0_i32, %c0_i32_0 : i32, i32
  }
  func.func @transform_16(%arg0: i32) -> (i32, i32) {
    %c0_i32 = arith.constant 0 : i32
    %c0_i32_0 = arith.constant 0 : i32
    %c0_i32_1 = arith.constant 0 : i32
    return %c0_i32, %c0_i32_0 : i32, i32
  }
}

module attributes {stable_mosaic.version = 11 : i64} {
  func.func @_attn_pool_kernel(%arg0: i32, %arg1: memref<1x8x128xf32, #tpu.memory_space<vmem>>, %arg2: memref<64x192xbf16, #tpu.memory_space<vmem>>, %arg3: memref<1x192xf32, #tpu.memory_space<vmem>>, %arg4: memref<1x1x128xf32, #tpu.memory_space<vmem>>) attributes {dimension_semantics = [#tpu.dimension_semantics<parallel>], iteration_bounds = array<i64: 2>, scalar_prefetch = 0 : i64, scratch_operands = 0 : i64, tpu.core_type = #tpu.core_type<tc>, window_params = [{transform_indices = @transform_0, window_bounds = array<i64: 1, 8, 128>}, {pipeline_mode = #tpu.pipeline_mode<synchronous>, transform_indices = @transform_1, window_bounds = array<i64: 64, 192>}, {pipeline_mode = #tpu.pipeline_mode<synchronous>, transform_indices = @transform_2, window_bounds = array<i64: 1, 192>}, {transform_indices = @transform_3, window_bounds = array<i64: 1, 1, 128>}]} {
    %c0 = arith.constant 0 : index
    %c0_0 = arith.constant 0 : index
    %c0_1 = arith.constant 0 : index
    %0 = vector.load %arg1[%c0, %c0_0, %c0_1] : memref<1x8x128xf32, #tpu.memory_space<vmem>>, vector<1x8x128xf32>
    %1 = vector.shape_cast %0 : vector<1x8x128xf32> to vector<8x128xf32>
    %2 = vector.extract_strided_slice %1 {offsets = [0, 0], sizes = [8, 64], strides = [1, 1]} : vector<8x128xf32> to vector<8x64xf32>
    %3 = arith.truncf %2 : vector<8x64xf32> to vector<8x64xbf16>
    %c0_2 = arith.constant 0 : index
    %c0_3 = arith.constant 0 : index
    %4 = vector.load %arg2[%c0_2, %c0_3] : memref<64x192xbf16, #tpu.memory_space<vmem>>, vector<64x192xbf16>
    %cst = arith.constant dense<0.000000e+00> : vector<8x192xf32>
    %5 = tpu.matmul %3, %4, %cst {dimension_numbers = #tpu.dot_dimension_numbers<[1], [0], [0], [1], [0, 0, 1, 1], [], []>} : vector<8x64xbf16>, vector<64x192xbf16>, vector<8x192xf32> -> vector<8x192xf32>
    %c0_4 = arith.constant 0 : index
    %c0_5 = arith.constant 0 : index
    %6 = vector.load %arg3[%c0_4, %c0_5] : memref<1x192xf32, #tpu.memory_space<vmem>>, vector<1x192xf32>
    %7 = vector.broadcast %6 : vector<1x192xf32> to vector<8x192xf32>
    %8 = arith.addf %5, %7 : vector<8x192xf32>
    %9 = vector.extract_strided_slice %8 {offsets = [0, 0], sizes = [8, 64], strides = [1, 1]} : vector<8x192xf32> to vector<8x64xf32>
    %10 = vector.extract_strided_slice %8 {offsets = [0, 64], sizes = [8, 64], strides = [1, 1]} : vector<8x192xf32> to vector<8x64xf32>
    %11 = vector.extract_strided_slice %8 {offsets = [0, 128], sizes = [8, 64], strides = [1, 1]} : vector<8x192xf32> to vector<8x64xf32>
    %12 = tpu.transpose %10, [1, 0] : vector<8x64xf32> -> vector<64x8xf32>
    %cst_6 = arith.constant dense<0.000000e+00> : vector<8x8xf32>
    %13 = tpu.matmul %9, %12, %cst_6 {dimension_numbers = #tpu.dot_dimension_numbers<[1], [0], [0], [1], [0, 0, 1, 1], [], []>} : vector<8x64xf32>, vector<64x8xf32>, vector<8x8xf32> -> vector<8x8xf32>
    %cst_7 = arith.constant 1.250000e-01 : f32
    %14 = vector.broadcast %cst_7 : f32 to vector<8x8xf32>
    %15 = arith.mulf %13, %14 : vector<8x8xf32>
    %cst_8 = arith.constant dense<0xFF800000> : vector<8xf32>
    %16 = vector.multi_reduction <maximumf>, %15, %cst_8 [1] : vector<8x8xf32> to vector<8xf32>
    %17 = vector.shape_cast %16 : vector<8xf32> to vector<8x1xf32>
    %18 = vector.broadcast %17 : vector<8x1xf32> to vector<8x8xf32>
    %19 = arith.subf %15, %18 : vector<8x8xf32>
    %20 = math.exp %19 : vector<8x8xf32>
    %cst_9 = arith.constant dense<0.000000e+00> : vector<8xf32>
    %21 = vector.multi_reduction <add>, %20, %cst_9 [1] : vector<8x8xf32> to vector<8xf32>
    %22 = vector.shape_cast %21 : vector<8xf32> to vector<8x1xf32>
    %23 = tpu.reciprocal %22 {approx = true} : vector<8x1xf32> -> vector<8x1xf32>
    %24 = vector.broadcast %23 : vector<8x1xf32> to vector<8x8xf32>
    %25 = arith.mulf %20, %24 : vector<8x8xf32>
    %cst_10 = arith.constant dense<0.000000e+00> : vector<8x64xf32>
    %26 = tpu.matmul %25, %11, %cst_10 {dimension_numbers = #tpu.dot_dimension_numbers<[1], [0], [0], [1], [0, 0, 1, 1], [], []>} : vector<8x8xf32>, vector<8x64xf32>, vector<8x64xf32> -> vector<8x64xf32>
    %cst_11 = arith.constant dense<0.000000e+00> : vector<64xf32>
    %27 = vector.multi_reduction <add>, %26, %cst_11 [0] : vector<8x64xf32> to vector<64xf32>
    %28 = vector.shape_cast %27 : vector<64xf32> to vector<1x64xf32>
    %cst_12 = arith.constant 8.000000e+00 : f32
    %29 = vector.broadcast %cst_12 : f32 to vector<1x64xf32>
    %30 = arith.divf %28, %29 : vector<1x64xf32>
    %cst_13 = arith.constant 0.000000e+00 : f32
    %31 = vector.broadcast %cst_13 : f32 to vector<1x64xf32>
    %32 = tpu.concatenate %30, %31 in 1 : vector<1x64xf32>, vector<1x64xf32> -> vector<1x128xf32>
    %33 = vector.shape_cast %32 : vector<1x128xf32> to vector<1x1x128xf32>
    %c0_14 = arith.constant 0 : index
    %c0_15 = arith.constant 0 : index
    %c0_16 = arith.constant 0 : index
    %34 = vector.load %arg4[%c0_14, %c0_15, %c0_16] : memref<1x1x128xf32, #tpu.memory_space<vmem>>, vector<1x1x128xf32>
    tpu.vector_store %arg4[%c0_14, %c0_15, %c0_16], %33 {strides = array<i32>} : memref<1x1x128xf32, #tpu.memory_space<vmem>>, vector<1x1x128xf32>,
    return
  }
  func.func @transform_0(%arg0: i32) -> (i32, i32, i32) {
    %c0_i32 = arith.constant 0 : i32
    %c0_i32_0 = arith.constant 0 : i32
    %c0_i32_1 = arith.constant 0 : i32
    return %arg0, %c0_i32, %c0_i32_0 : i32, i32, i32
  }
  func.func @transform_1(%arg0: i32) -> (i32, i32) {
    %c0_i32 = arith.constant 0 : i32
    %c0_i32_0 = arith.constant 0 : i32
    %c0_i32_1 = arith.constant 0 : i32
    return %c0_i32, %c0_i32_0 : i32, i32
  }
  func.func @transform_2(%arg0: i32) -> (i32, i32) {
    %c0_i32 = arith.constant 0 : i32
    %c0_i32_0 = arith.constant 0 : i32
    %c0_i32_1 = arith.constant 0 : i32
    return %c0_i32, %c0_i32_0 : i32, i32
  }
  func.func @transform_3(%arg0: i32) -> (i32, i32, i32) {
    %c0_i32 = arith.constant 0 : i32
    %c0_i32_0 = arith.constant 0 : i32
    %c0_i32_1 = arith.constant 0 : i32
    return %arg0, %c0_i32, %c0_i32_0 : i32, i32, i32
  }
}

module attributes {stable_mosaic.version = 11 : i64} {
  func.func @_egnn_layer_kernel(%arg0: i32, %arg1: memref<16x128xf32, #tpu.memory_space<vmem>>, %arg2: memref<32x1xi32, #tpu.memory_space<vmem>>, %arg3: memref<32x1xi32, #tpu.memory_space<vmem>>, %arg4: memref<1x32xi32, #tpu.memory_space<vmem>>, %arg5: memref<32x1xf32, #tpu.memory_space<vmem>>, %arg6: memref<130x64xbf16, #tpu.memory_space<vmem>>, %arg7: memref<1x64xf32, #tpu.memory_space<vmem>>, %arg8: memref<64x64xbf16, #tpu.memory_space<vmem>>, %arg9: memref<1x64xf32, #tpu.memory_space<vmem>>, %arg10: memref<64x64xbf16, #tpu.memory_space<vmem>>, %arg11: memref<1x64xf32, #tpu.memory_space<vmem>>, %arg12: memref<64x1xbf16, #tpu.memory_space<vmem>>, %arg13: memref<128x64xbf16, #tpu.memory_space<vmem>>, %arg14: memref<1x64xf32, #tpu.memory_space<vmem>>, %arg15: memref<64x64xbf16, #tpu.memory_space<vmem>>, %arg16: memref<1x64xf32, #tpu.memory_space<vmem>>, %arg17: memref<16x128xf32, #tpu.memory_space<vmem>>) attributes {dimension_semantics = [#tpu.dimension_semantics<arbitrary>], iteration_bounds = array<i64: 1>, scalar_prefetch = 0 : i64, scratch_operands = 0 : i64, tpu.core_type = #tpu.core_type<tc>, window_params = [{pipeline_mode = #tpu.pipeline_mode<synchronous>, transform_indices = @transform_0, window_bounds = array<i64: 16, 128>}, {pipeline_mode = #tpu.pipeline_mode<synchronous>, transform_indices = @transform_1, window_bounds = array<i64: 32, 1>}, {pipeline_mode = #tpu.pipeline_mode<synchronous>, transform_indices = @transform_2, window_bounds = array<i64: 32, 1>}, {pipeline_mode = #tpu.pipeline_mode<synchronous>, transform_indices = @transform_3, window_bounds = array<i64: 1, 32>}, {pipeline_mode = #tpu.pipeline_mode<synchronous>, transform_indices = @transform_4, window_bounds = array<i64: 32, 1>}, {pipeline_mode = #tpu.pipeline_mode<synchronous>, transform_indices = @transform_5, window_bounds = array<i64: 130, 64>}, {pipeline_mode = #tpu.pipeline_mode<synchronous>, transform_indices = @transform_6, window_bounds = array<i64: 1, 64>}, {pipeline_mode = #tpu.pipeline_mode<synchronous>, transform_indices = @transform_7, window_bounds = array<i64: 64, 64>}, {pipeline_mode = #tpu.pipeline_mode<synchronous>, transform_indices = @transform_8, window_bounds = array<i64: 1, 64>}, {pipeline_mode = #tpu.pipeline_mode<synchronous>, transform_indices = @transform_9, window_bounds = array<i64: 64, 64>}, {pipeline_mode = #tpu.pipeline_mode<synchronous>, transform_indices = @transform_10, window_bounds = array<i64: 1, 64>}, {pipeline_mode = #tpu.pipeline_mode<synchronous>, transform_indices = @transform_11, window_bounds = array<i64: 64, 1>}, {pipeline_mode = #tpu.pipeline_mode<synchronous>, transform_indices = @transform_12, window_bounds = array<i64: 128, 64>}, {pipeline_mode = #tpu.pipeline_mode<synchronous>, transform_indices = @transform_13, window_bounds = array<i64: 1, 64>}, {pipeline_mode = #tpu.pipeline_mode<synchronous>, transform_indices = @transform_14, window_bounds = array<i64: 64, 64>}, {pipeline_mode = #tpu.pipeline_mode<synchronous>, transform_indices = @transform_15, window_bounds = array<i64: 1, 64>}, {pipeline_mode = #tpu.pipeline_mode<synchronous>, transform_indices = @transform_16, window_bounds = array<i64: 16, 128>}]} {
    %c0 = arith.constant 0 : index
    %c0_0 = arith.constant 0 : index
    %0 = vector.load %arg1[%c0, %c0_0] : memref<16x128xf32, #tpu.memory_space<vmem>>, vector<16x128xf32>
    %1 = vector.extract_strided_slice %0 {offsets = [0, 0], sizes = [16, 64], strides = [1, 1]} : vector<16x128xf32> to vector<16x64xf32>
    %2 = vector.extract_strided_slice %0 {offsets = [0, 64], sizes = [16, 3], strides = [1, 1]} : vector<16x128xf32> to vector<16x3xf32>
    %3 = tpu.iota {dimensions = array<i32: 1>} : vector<32x16xi32>
    %c0_1 = arith.constant 0 : index
    %c0_2 = arith.constant 0 : index
    %4 = vector.load %arg2[%c0_1, %c0_2] : memref<32x1xi32, #tpu.memory_space<vmem>>, vector<32x1xi32>
    %5 = vector.broadcast %4 : vector<32x1xi32> to vector<32x16xi32>
    %6 = arith.cmpi eq, %3, %5 : vector<32x16xi32>
    %7 = arith.extui %6 : vector<32x16xi1> to vector<32x16xi32>
    %8 = arith.sitofp %7 : vector<32x16xi32> to vector<32x16xf32>
    %c0_3 = arith.constant 0 : index
    %c0_4 = arith.constant 0 : index
    %9 = vector.load %arg3[%c0_3, %c0_4] : memref<32x1xi32, #tpu.memory_space<vmem>>, vector<32x1xi32>
    %10 = vector.broadcast %9 : vector<32x1xi32> to vector<32x16xi32>
    %11 = arith.cmpi eq, %3, %10 : vector<32x16xi32>
    %12 = arith.extui %11 : vector<32x16xi1> to vector<32x16xi32>
    %13 = arith.sitofp %12 : vector<32x16xi32> to vector<32x16xf32>
    %cst = arith.constant dense<0.000000e+00> : vector<32x64xf32>
    %14 = tpu.matmul %8, %1, %cst {dimension_numbers = #tpu.dot_dimension_numbers<[1], [0], [0], [1], [0, 0, 1, 1], [], []>} : vector<32x16xf32>, vector<16x64xf32>, vector<32x64xf32> -> vector<32x64xf32>
    %cst_5 = arith.constant dense<0.000000e+00> : vector<32x64xf32>
    %15 = tpu.matmul %13, %1, %cst_5 {dimension_numbers = #tpu.dot_dimension_numbers<[1], [0], [0], [1], [0, 0, 1, 1], [], []>} : vector<32x16xf32>, vector<16x64xf32>, vector<32x64xf32> -> vector<32x64xf32>
    %cst_6 = arith.constant dense<0.000000e+00> : vector<32x3xf32>
    %16 = tpu.matmul %8, %2, %cst_6 {dimension_numbers = #tpu.dot_dimension_numbers<[1], [0], [0], [1], [0, 0, 1, 1], [], []>} : vector<32x16xf32>, vector<16x3xf32>, vector<32x3xf32> -> vector<32x3xf32>
    %cst_7 = arith.constant dense<0.000000e+00> : vector<32x3xf32>
    %17 = tpu.matmul %13, %2, %cst_7 {dimension_numbers = #tpu.dot_dimension_numbers<[1], [0], [0], [1], [0, 0, 1, 1], [], []>} : vector<32x16xf32>, vector<16x3xf32>, vector<32x3xf32> -> vector<32x3xf32>
    %18 = arith.subf %16, %17 : vector<32x3xf32>
    %19 = arith.mulf %18, %18 : vector<32x3xf32>
    %cst_8 = arith.constant dense<0.000000e+00> : vector<32xf32>
    %20 = vector.multi_reduction <add>, %19, %cst_8 [1] : vector<32x3xf32> to vector<32xf32>
    %21 = vector.shape_cast %20 : vector<32xf32> to vector<32x1xf32>
    %22 = math.sqrt %21 : vector<32x1xf32>
    %cst_9 = arith.constant 1.000000e-30 : f32
    %23 = vector.broadcast %cst_9 : f32 to vector<32x1xf32>
    %24 = arith.addf %22, %23 : vector<32x1xf32>
    %25 = vector.broadcast %24 : vector<32x1xf32> to vector<32x3xf32>
    %26 = arith.divf %18, %25 : vector<32x3xf32>
    %c0_10 = arith.constant 0 : index
    %c0_11 = arith.constant 0 : index
    %27 = vector.load %arg5[%c0_10, %c0_11] : memref<32x1xf32, #tpu.memory_space<vmem>>, vector<32x1xf32>
    %28 = tpu.concatenate %14, %15, %21, %27 in 1 : vector<32x64xf32>, vector<32x64xf32>, vector<32x1xf32>, vector<32x1xf32> -> vector<32x130xf32>
    %29 = arith.truncf %28 : vector<32x130xf32> to vector<32x130xbf16>
    %c0_12 = arith.constant 0 : index
    %c0_13 = arith.constant 0 : index
    %30 = vector.load %arg6[%c0_12, %c0_13] : memref<130x64xbf16, #tpu.memory_space<vmem>>, vector<130x64xbf16>
    %cst_14 = arith.constant dense<0.000000e+00> : vector<32x64xf32>
    %31 = tpu.matmul %29, %30, %cst_14 {dimension_numbers = #tpu.dot_dimension_numbers<[1], [0], [0], [1], [0, 0, 1, 1], [], []>} : vector<32x130xbf16>, vector<130x64xbf16>, vector<32x64xf32> -> vector<32x64xf32>
    %c0_15 = arith.constant 0 : index
    %c0_16 = arith.constant 0 : index
    %32 = vector.load %arg7[%c0_15, %c0_16] : memref<1x64xf32, #tpu.memory_space<vmem>>, vector<1x64xf32>
    %33 = vector.broadcast %32 : vector<1x64xf32> to vector<32x64xf32>
    %34 = arith.addf %31, %33 : vector<32x64xf32>
    %35 = arith.negf %34 : vector<32x64xf32>
    %36 = math.exp %35 : vector<32x64xf32>
    %cst_17 = arith.constant 1.000000e+00 : f32
    %37 = vector.broadcast %cst_17 : f32 to vector<32x64xf32>
    %38 = arith.addf %37, %36 : vector<32x64xf32>
    %39 = arith.divf %37, %38 : vector<32x64xf32>
    %40 = arith.mulf %34, %39 : vector<32x64xf32>
    %41 = arith.truncf %40 : vector<32x64xf32> to vector<32x64xbf16>
    %c0_18 = arith.constant 0 : index
    %c0_19 = arith.constant 0 : index
    %42 = vector.load %arg8[%c0_18, %c0_19] : memref<64x64xbf16, #tpu.memory_space<vmem>>, vector<64x64xbf16>
    %cst_20 = arith.constant dense<0.000000e+00> : vector<32x64xf32>
    %43 = tpu.matmul %41, %42, %cst_20 {dimension_numbers = #tpu.dot_dimension_numbers<[1], [0], [0], [1], [0, 0, 1, 1], [], []>} : vector<32x64xbf16>, vector<64x64xbf16>, vector<32x64xf32> -> vector<32x64xf32>
    %c0_21 = arith.constant 0 : index
    %c0_22 = arith.constant 0 : index
    %44 = vector.load %arg9[%c0_21, %c0_22] : memref<1x64xf32, #tpu.memory_space<vmem>>, vector<1x64xf32>
    %45 = vector.broadcast %44 : vector<1x64xf32> to vector<32x64xf32>
    %46 = arith.addf %43, %45 : vector<32x64xf32>
    %47 = arith.negf %46 : vector<32x64xf32>
    %48 = math.exp %47 : vector<32x64xf32>
    %cst_23 = arith.constant 1.000000e+00 : f32
    %49 = vector.broadcast %cst_23 : f32 to vector<32x64xf32>
    %50 = arith.addf %49, %48 : vector<32x64xf32>
    %51 = arith.divf %49, %50 : vector<32x64xf32>
    %52 = arith.mulf %46, %51 : vector<32x64xf32>
    %53 = arith.truncf %52 : vector<32x64xf32> to vector<32x64xbf16>
    %c0_24 = arith.constant 0 : index
    %c0_25 = arith.constant 0 : index
    %54 = vector.load %arg10[%c0_24, %c0_25] : memref<64x64xbf16, #tpu.memory_space<vmem>>, vector<64x64xbf16>
    %cst_26 = arith.constant dense<0.000000e+00> : vector<32x64xf32>
    %55 = tpu.matmul %53, %54, %cst_26 {dimension_numbers = #tpu.dot_dimension_numbers<[1], [0], [0], [1], [0, 0, 1, 1], [], []>} : vector<32x64xbf16>, vector<64x64xbf16>, vector<32x64xf32> -> vector<32x64xf32>
    %c0_27 = arith.constant 0 : index
    %c0_28 = arith.constant 0 : index
    %56 = vector.load %arg11[%c0_27, %c0_28] : memref<1x64xf32, #tpu.memory_space<vmem>>, vector<1x64xf32>
    %57 = vector.broadcast %56 : vector<1x64xf32> to vector<32x64xf32>
    %58 = arith.addf %55, %57 : vector<32x64xf32>
    %59 = arith.negf %58 : vector<32x64xf32>
    %60 = math.exp %59 : vector<32x64xf32>
    %cst_29 = arith.constant 1.000000e+00 : f32
    %61 = vector.broadcast %cst_29 : f32 to vector<32x64xf32>
    %62 = arith.addf %61, %60 : vector<32x64xf32>
    %63 = arith.divf %61, %62 : vector<32x64xf32>
    %64 = arith.mulf %58, %63 : vector<32x64xf32>
    %65 = arith.truncf %64 : vector<32x64xf32> to vector<32x64xbf16>
    %c0_30 = arith.constant 0 : index
    %c0_31 = arith.constant 0 : index
    %66 = vector.load %arg12[%c0_30, %c0_31] : memref<64x1xbf16, #tpu.memory_space<vmem>>, vector<64x1xbf16>
    %cst_32 = arith.constant dense<0.000000e+00> : vector<32x1xf32>
    %67 = tpu.matmul %65, %66, %cst_32 {dimension_numbers = #tpu.dot_dimension_numbers<[1], [0], [0], [1], [0, 0, 1, 1], [], []>} : vector<32x64xbf16>, vector<64x1xbf16>, vector<32x1xf32> -> vector<32x1xf32>
    %68 = vector.broadcast %67 : vector<32x1xf32> to vector<32x3xf32>
    %69 = arith.mulf %68, %26 : vector<32x3xf32>
    %70 = tpu.iota {dimensions = array<i32: 0>} : vector<16x32xi32>
    %c0_33 = arith.constant 0 : index
    %c0_34 = arith.constant 0 : index
    %71 = vector.load %arg4[%c0_33, %c0_34] : memref<1x32xi32, #tpu.memory_space<vmem>>, vector<1x32xi32>
    %72 = vector.broadcast %71 : vector<1x32xi32> to vector<16x32xi32>
    %73 = arith.cmpi eq, %70, %72 : vector<16x32xi32>
    %74 = arith.extui %73 : vector<16x32xi1> to vector<16x32xi32>
    %75 = arith.sitofp %74 : vector<16x32xi32> to vector<16x32xf32>
    %cst_35 = arith.constant dense<0.000000e+00> : vector<16x64xf32>
    %76 = tpu.matmul %75, %52, %cst_35 {dimension_numbers = #tpu.dot_dimension_numbers<[1], [0], [0], [1], [0, 0, 1, 1], [], []>} : vector<16x32xf32>, vector<32x64xf32>, vector<16x64xf32> -> vector<16x64xf32>
    %cst_36 = arith.constant dense<0.000000e+00> : vector<16x3xf32>
    %77 = tpu.matmul %75, %69, %cst_36 {dimension_numbers = #tpu.dot_dimension_numbers<[1], [0], [0], [1], [0, 0, 1, 1], [], []>} : vector<16x32xf32>, vector<32x3xf32>, vector<16x3xf32> -> vector<16x3xf32>
    %cst_37 = arith.constant dense<0.000000e+00> : vector<16xf32>
    %78 = vector.multi_reduction <add>, %75, %cst_37 [1] : vector<16x32xf32> to vector<16xf32>
    %79 = vector.shape_cast %78 : vector<16xf32> to vector<16x1xf32>
    %cst_38 = arith.constant 1.000000e+00 : f32
    %80 = vector.broadcast %cst_38 : f32 to vector<16x1xf32>
    %81 = arith.maximumf %79, %80 : vector<16x1xf32>
    %82 = vector.broadcast %81 : vector<16x1xf32> to vector<16x3xf32>
    %83 = arith.divf %77, %82 : vector<16x3xf32>
    %84 = tpu.concatenate %1, %76 in 1 : vector<16x64xf32>, vector<16x64xf32> -> vector<16x128xf32>
    %85 = arith.truncf %84 : vector<16x128xf32> to vector<16x128xbf16>
    %c0_39 = arith.constant 0 : index
    %c0_40 = arith.constant 0 : index
    %86 = vector.load %arg13[%c0_39, %c0_40] : memref<128x64xbf16, #tpu.memory_space<vmem>>, vector<128x64xbf16>
    %cst_41 = arith.constant dense<0.000000e+00> : vector<16x64xf32>
    %87 = tpu.matmul %85, %86, %cst_41 {dimension_numbers = #tpu.dot_dimension_numbers<[1], [0], [0], [1], [0, 0, 1, 1], [], []>} : vector<16x128xbf16>, vector<128x64xbf16>, vector<16x64xf32> -> vector<16x64xf32>
    %c0_42 = arith.constant 0 : index
    %c0_43 = arith.constant 0 : index
    %88 = vector.load %arg14[%c0_42, %c0_43] : memref<1x64xf32, #tpu.memory_space<vmem>>, vector<1x64xf32>
    %89 = vector.broadcast %88 : vector<1x64xf32> to vector<16x64xf32>
    %90 = arith.addf %87, %89 : vector<16x64xf32>
    %91 = arith.negf %90 : vector<16x64xf32>
    %92 = math.exp %91 : vector<16x64xf32>
    %cst_44 = arith.constant 1.000000e+00 : f32
    %93 = vector.broadcast %cst_44 : f32 to vector<16x64xf32>
    %94 = arith.addf %93, %92 : vector<16x64xf32>
    %95 = arith.divf %93, %94 : vector<16x64xf32>
    %96 = arith.mulf %90, %95 : vector<16x64xf32>
    %97 = arith.truncf %96 : vector<16x64xf32> to vector<16x64xbf16>
    %c0_45 = arith.constant 0 : index
    %c0_46 = arith.constant 0 : index
    %98 = vector.load %arg15[%c0_45, %c0_46] : memref<64x64xbf16, #tpu.memory_space<vmem>>, vector<64x64xbf16>
    %cst_47 = arith.constant dense<0.000000e+00> : vector<16x64xf32>
    %99 = tpu.matmul %97, %98, %cst_47 {dimension_numbers = #tpu.dot_dimension_numbers<[1], [0], [0], [1], [0, 0, 1, 1], [], []>} : vector<16x64xbf16>, vector<64x64xbf16>, vector<16x64xf32> -> vector<16x64xf32>
    %c0_48 = arith.constant 0 : index
    %c0_49 = arith.constant 0 : index
    %100 = vector.load %arg16[%c0_48, %c0_49] : memref<1x64xf32, #tpu.memory_space<vmem>>, vector<1x64xf32>
    %101 = vector.broadcast %100 : vector<1x64xf32> to vector<16x64xf32>
    %102 = arith.addf %99, %101 : vector<16x64xf32>
    %103 = arith.addf %2, %83 : vector<16x3xf32>
    %cst_50 = arith.constant 0.000000e+00 : f32
    %104 = vector.broadcast %cst_50 : f32 to vector<16x61xf32>
    %105 = tpu.concatenate %102, %103, %104 in 1 : vector<16x64xf32>, vector<16x3xf32>, vector<16x61xf32> -> vector<16x128xf32>
    %c0_51 = arith.constant 0 : index
    %c0_52 = arith.constant 0 : index
    %106 = vector.load %arg17[%c0_51, %c0_52] : memref<16x128xf32, #tpu.memory_space<vmem>>, vector<16x128xf32>
    tpu.vector_store %arg17[%c0_51, %c0_52], %105 {strides = array<i32>} : memref<16x128xf32, #tpu.memory_space<vmem>>, vector<16x128xf32>,
    return
  }
  func.func @transform_0(%arg0: i32) -> (i32, i32) {
    %c0_i32 = arith.constant 0 : i32
    %c0_i32_0 = arith.constant 0 : i32
    %c0_i32_1 = arith.constant 0 : i32
    return %c0_i32, %c0_i32_0 : i32, i32
  }
  func.func @transform_1(%arg0: i32) -> (i32, i32) {
    %c0_i32 = arith.constant 0 : i32
    %c0_i32_0 = arith.constant 0 : i32
    %c0_i32_1 = arith.constant 0 : i32
    return %c0_i32, %c0_i32_0 : i32, i32
  }
  func.func @transform_2(%arg0: i32) -> (i32, i32) {
    %c0_i32 = arith.constant 0 : i32
    %c0_i32_0 = arith.constant 0 : i32
    %c0_i32_1 = arith.constant 0 : i32
    return %c0_i32, %c0_i32_0 : i32, i32
  }
  func.func @transform_3(%arg0: i32) -> (i32, i32) {
    %c0_i32 = arith.constant 0 : i32
    %c0_i32_0 = arith.constant 0 : i32
    %c0_i32_1 = arith.constant 0 : i32
    return %c0_i32, %c0_i32_0 : i32, i32
  }
  func.func @transform_4(%arg0: i32) -> (i32, i32) {
    %c0_i32 = arith.constant 0 : i32
    %c0_i32_0 = arith.constant 0 : i32
    %c0_i32_1 = arith.constant 0 : i32
    return %c0_i32, %c0_i32_0 : i32, i32
  }
  func.func @transform_5(%arg0: i32) -> (i32, i32) {
    %c0_i32 = arith.constant 0 : i32
    %c0_i32_0 = arith.constant 0 : i32
    %c0_i32_1 = arith.constant 0 : i32
    return %c0_i32, %c0_i32_0 : i32, i32
  }
  func.func @transform_6(%arg0: i32) -> (i32, i32) {
    %c0_i32 = arith.constant 0 : i32
    %c0_i32_0 = arith.constant 0 : i32
    %c0_i32_1 = arith.constant 0 : i32
    return %c0_i32, %c0_i32_0 : i32, i32
  }
  func.func @transform_7(%arg0: i32) -> (i32, i32) {
    %c0_i32 = arith.constant 0 : i32
    %c0_i32_0 = arith.constant 0 : i32
    %c0_i32_1 = arith.constant 0 : i32
    return %c0_i32, %c0_i32_0 : i32, i32
  }
  func.func @transform_8(%arg0: i32) -> (i32, i32) {
    %c0_i32 = arith.constant 0 : i32
    %c0_i32_0 = arith.constant 0 : i32
    %c0_i32_1 = arith.constant 0 : i32
    return %c0_i32, %c0_i32_0 : i32, i32
  }
  func.func @transform_9(%arg0: i32) -> (i32, i32) {
    %c0_i32 = arith.constant 0 : i32
    %c0_i32_0 = arith.constant 0 : i32
    %c0_i32_1 = arith.constant 0 : i32
    return %c0_i32, %c0_i32_0 : i32, i32
  }
  func.func @transform_10(%arg0: i32) -> (i32, i32) {
    %c0_i32 = arith.constant 0 : i32
    %c0_i32_0 = arith.constant 0 : i32
    %c0_i32_1 = arith.constant 0 : i32
    return %c0_i32, %c0_i32_0 : i32, i32
  }
  func.func @transform_11(%arg0: i32) -> (i32, i32) {
    %c0_i32 = arith.constant 0 : i32
    %c0_i32_0 = arith.constant 0 : i32
    %c0_i32_1 = arith.constant 0 : i32
    return %c0_i32, %c0_i32_0 : i32, i32
  }
  func.func @transform_12(%arg0: i32) -> (i32, i32) {
    %c0_i32 = arith.constant 0 : i32
    %c0_i32_0 = arith.constant 0 : i32
    %c0_i32_1 = arith.constant 0 : i32
    return %c0_i32, %c0_i32_0 : i32, i32
  }
  func.func @transform_13(%arg0: i32) -> (i32, i32) {
    %c0_i32 = arith.constant 0 : i32
    %c0_i32_0 = arith.constant 0 : i32
    %c0_i32_1 = arith.constant 0 : i32
    return %c0_i32, %c0_i32_0 : i32, i32
  }
  func.func @transform_14(%arg0: i32) -> (i32, i32) {
    %c0_i32 = arith.constant 0 : i32
    %c0_i32_0 = arith.constant 0 : i32
    %c0_i32_1 = arith.constant 0 : i32
    return %c0_i32, %c0_i32_0 : i32, i32
  }
  func.func @transform_15(%arg0: i32) -> (i32, i32) {
    %c0_i32 = arith.constant 0 : i32
    %c0_i32_0 = arith.constant 0 : i32
    %c0_i32_1 = arith.constant 0 : i32
    return %c0_i32, %c0_i32_0 : i32, i32
  }
  func.func @transform_16(%arg0: i32) -> (i32, i32) {
    %c0_i32 = arith.constant 0 : i32
    %c0_i32_0 = arith.constant 0 : i32
    %c0_i32_1 = arith.constant 0 : i32
    return %c0_i32, %c0_i32_0 : i32, i32
  }
}

module attributes {stable_mosaic.version = 11 : i64} {
  func.func @_tail_kernel(%arg0: i32, %arg1: memref<2x48xf32, #tpu.memory_space<vmem>>, %arg2: memref<2x2xf32, #tpu.memory_space<vmem>>, %arg3: memref<2x32xf32, #tpu.memory_space<vmem>>, %arg4: memref<2x128xf32, #tpu.memory_space<vmem>>, %arg5: memref<2x32xbf16, #tpu.memory_space<vmem>>, %arg6: memref<1x32xf32, #tpu.memory_space<vmem>>, %arg7: memref<32x8xbf16, #tpu.memory_space<vmem>>, %arg8: memref<1x8xf32, #tpu.memory_space<vmem>>, %arg9: memref<48x64xbf16, #tpu.memory_space<vmem>>, %arg10: memref<1x64xf32, #tpu.memory_space<vmem>>, %arg11: memref<64x64xbf16, #tpu.memory_space<vmem>>, %arg12: memref<1x64xf32, #tpu.memory_space<vmem>>, %arg13: memref<40x64xbf16, #tpu.memory_space<vmem>>, %arg14: memref<1x64xf32, #tpu.memory_space<vmem>>, %arg15: memref<64x48xbf16, #tpu.memory_space<vmem>>, %arg16: memref<1x48xf32, #tpu.memory_space<vmem>>, %arg17: memref<208x32xbf16, #tpu.memory_space<vmem>>, %arg18: memref<1x32xf32, #tpu.memory_space<vmem>>, %arg19: memref<32x21xbf16, #tpu.memory_space<vmem>>, %arg20: memref<1x21xf32, #tpu.memory_space<vmem>>, %arg21: memref<2x256xf32, #tpu.memory_space<vmem>>) attributes {dimension_semantics = [#tpu.dimension_semantics<arbitrary>], iteration_bounds = array<i64: 1>, scalar_prefetch = 0 : i64, scratch_operands = 0 : i64, tpu.core_type = #tpu.core_type<tc>, window_params = [{pipeline_mode = #tpu.pipeline_mode<synchronous>, transform_indices = @transform_0, window_bounds = array<i64: 2, 48>}, {pipeline_mode = #tpu.pipeline_mode<synchronous>, transform_indices = @transform_1, window_bounds = array<i64: 2, 2>}, {pipeline_mode = #tpu.pipeline_mode<synchronous>, transform_indices = @transform_2, window_bounds = array<i64: 2, 32>}, {pipeline_mode = #tpu.pipeline_mode<synchronous>, transform_indices = @transform_3, window_bounds = array<i64: 2, 128>}, {pipeline_mode = #tpu.pipeline_mode<synchronous>, transform_indices = @transform_4, window_bounds = array<i64: 2, 32>}, {pipeline_mode = #tpu.pipeline_mode<synchronous>, transform_indices = @transform_5, window_bounds = array<i64: 1, 32>}, {pipeline_mode = #tpu.pipeline_mode<synchronous>, transform_indices = @transform_6, window_bounds = array<i64: 32, 8>}, {pipeline_mode = #tpu.pipeline_mode<synchronous>, transform_indices = @transform_7, window_bounds = array<i64: 1, 8>}, {pipeline_mode = #tpu.pipeline_mode<synchronous>, transform_indices = @transform_8, window_bounds = array<i64: 48, 64>}, {pipeline_mode = #tpu.pipeline_mode<synchronous>, transform_indices = @transform_9, window_bounds = array<i64: 1, 64>}, {pipeline_mode = #tpu.pipeline_mode<synchronous>, transform_indices = @transform_10, window_bounds = array<i64: 64, 64>}, {pipeline_mode = #tpu.pipeline_mode<synchronous>, transform_indices = @transform_11, window_bounds = array<i64: 1, 64>}, {pipeline_mode = #tpu.pipeline_mode<synchronous>, transform_indices = @transform_12, window_bounds = array<i64: 40, 64>}, {pipeline_mode = #tpu.pipeline_mode<synchronous>, transform_indices = @transform_13, window_bounds = array<i64: 1, 64>}, {pipeline_mode = #tpu.pipeline_mode<synchronous>, transform_indices = @transform_14, window_bounds = array<i64: 64, 48>}, {pipeline_mode = #tpu.pipeline_mode<synchronous>, transform_indices = @transform_15, window_bounds = array<i64: 1, 48>}, {pipeline_mode = #tpu.pipeline_mode<synchronous>, transform_indices = @transform_16, window_bounds = array<i64: 208, 32>}, {pipeline_mode = #tpu.pipeline_mode<synchronous>, transform_indices = @transform_17, window_bounds = array<i64: 1, 32>}, {pipeline_mode = #tpu.pipeline_mode<synchronous>, transform_indices = @transform_18, window_bounds = array<i64: 32, 21>}, {pipeline_mode = #tpu.pipeline_mode<synchronous>, transform_indices = @transform_19, window_bounds = array<i64: 1, 21>}, {pipeline_mode = #tpu.pipeline_mode<synchronous>, transform_indices = @transform_20, window_bounds = array<i64: 2, 256>}]} {
    %c0 = arith.constant 0 : index
    %c0_0 = arith.constant 0 : index
    %0 = vector.load %arg4[%c0, %c0_0] : memref<2x128xf32, #tpu.memory_space<vmem>>, vector<2x128xf32>
    %1 = vector.extract_strided_slice %0 {offsets = [0, 0], sizes = [2, 64], strides = [1, 1]} : vector<2x128xf32> to vector<2x64xf32>
    %c0_1 = arith.constant 0 : index
    %c0_2 = arith.constant 0 : index
    %2 = vector.load %arg2[%c0_1, %c0_2] : memref<2x2xf32, #tpu.memory_space<vmem>>, vector<2x2xf32>
    %3 = arith.truncf %2 : vector<2x2xf32> to vector<2x2xbf16>
    %c0_3 = arith.constant 0 : index
    %c0_4 = arith.constant 0 : index
    %4 = vector.load %arg5[%c0_3, %c0_4] : memref<2x32xbf16, #tpu.memory_space<vmem>>, vector<2x32xbf16>
    %cst = arith.constant dense<0.000000e+00> : vector<2x32xf32>
    %5 = tpu.matmul %3, %4, %cst {dimension_numbers = #tpu.dot_dimension_numbers<[1], [0], [0], [1], [0, 0, 1, 1], [], []>} : vector<2x2xbf16>, vector<2x32xbf16>, vector<2x32xf32> -> vector<2x32xf32>
    %c0_5 = arith.constant 0 : index
    %c0_6 = arith.constant 0 : index
    %6 = vector.load %arg6[%c0_5, %c0_6] : memref<1x32xf32, #tpu.memory_space<vmem>>, vector<1x32xf32>
    %7 = vector.broadcast %6 : vector<1x32xf32> to vector<2x32xf32>
    %8 = arith.addf %5, %7 : vector<2x32xf32>
    %cst_7 = arith.constant 0.000000e+00 : f32
    %9 = vector.broadcast %cst_7 : f32 to vector<2x32xf32>
    %10 = arith.maximumf %8, %9 : vector<2x32xf32>
    %11 = arith.truncf %10 : vector<2x32xf32> to vector<2x32xbf16>
    %c0_8 = arith.constant 0 : index
    %c0_9 = arith.constant 0 : index
    %12 = vector.load %arg7[%c0_8, %c0_9] : memref<32x8xbf16, #tpu.memory_space<vmem>>, vector<32x8xbf16>
    %cst_10 = arith.constant dense<0.000000e+00> : vector<2x8xf32>
    %13 = tpu.matmul %11, %12, %cst_10 {dimension_numbers = #tpu.dot_dimension_numbers<[1], [0], [0], [1], [0, 0, 1, 1], [], []>} : vector<2x32xbf16>, vector<32x8xbf16>, vector<2x8xf32> -> vector<2x8xf32>
    %c0_11 = arith.constant 0 : index
    %c0_12 = arith.constant 0 : index
    %14 = vector.load %arg8[%c0_11, %c0_12] : memref<1x8xf32, #tpu.memory_space<vmem>>, vector<1x8xf32>
    %15 = vector.broadcast %14 : vector<1x8xf32> to vector<2x8xf32>
    %16 = arith.addf %13, %15 : vector<2x8xf32>
    %cst_13 = arith.constant 0.000000e+00 : f32
    %17 = vector.broadcast %cst_13 : f32 to vector<2x8xf32>
    %18 = arith.maximumf %16, %17 : vector<2x8xf32>
    %c0_14 = arith.constant 0 : index
    %c0_15 = arith.constant 0 : index
    %19 = vector.load %arg1[%c0_14, %c0_15] : memref<2x48xf32, #tpu.memory_space<vmem>>, vector<2x48xf32>
    %20 = arith.truncf %19 : vector<2x48xf32> to vector<2x48xbf16>
    %c0_16 = arith.constant 0 : index
    %c0_17 = arith.constant 0 : index
    %21 = vector.load %arg9[%c0_16, %c0_17] : memref<48x64xbf16, #tpu.memory_space<vmem>>, vector<48x64xbf16>
    %cst_18 = arith.constant dense<0.000000e+00> : vector<2x64xf32>
    %22 = tpu.matmul %20, %21, %cst_18 {dimension_numbers = #tpu.dot_dimension_numbers<[1], [0], [0], [1], [0, 0, 1, 1], [], []>} : vector<2x48xbf16>, vector<48x64xbf16>, vector<2x64xf32> -> vector<2x64xf32>
    %c0_19 = arith.constant 0 : index
    %c0_20 = arith.constant 0 : index
    %23 = vector.load %arg10[%c0_19, %c0_20] : memref<1x64xf32, #tpu.memory_space<vmem>>, vector<1x64xf32>
    %24 = vector.broadcast %23 : vector<1x64xf32> to vector<2x64xf32>
    %25 = arith.addf %22, %24 : vector<2x64xf32>
    %cst_21 = arith.constant 0.000000e+00 : f32
    %26 = vector.broadcast %cst_21 : f32 to vector<2x64xf32>
    %27 = arith.maximumf %25, %26 : vector<2x64xf32>
    %28 = arith.truncf %27 : vector<2x64xf32> to vector<2x64xbf16>
    %c0_22 = arith.constant 0 : index
    %c0_23 = arith.constant 0 : index
    %29 = vector.load %arg11[%c0_22, %c0_23] : memref<64x64xbf16, #tpu.memory_space<vmem>>, vector<64x64xbf16>
    %cst_24 = arith.constant dense<0.000000e+00> : vector<2x64xf32>
    %30 = tpu.matmul %28, %29, %cst_24 {dimension_numbers = #tpu.dot_dimension_numbers<[1], [0], [0], [1], [0, 0, 1, 1], [], []>} : vector<2x64xbf16>, vector<64x64xbf16>, vector<2x64xf32> -> vector<2x64xf32>
    %c0_25 = arith.constant 0 : index
    %c0_26 = arith.constant 0 : index
    %31 = vector.load %arg12[%c0_25, %c0_26] : memref<1x64xf32, #tpu.memory_space<vmem>>, vector<1x64xf32>
    %32 = vector.broadcast %31 : vector<1x64xf32> to vector<2x64xf32>
    %33 = arith.addf %30, %32 : vector<2x64xf32>
    %34 = vector.extract_strided_slice %33 {offsets = [0, 0], sizes = [2, 32], strides = [1, 1]} : vector<2x64xf32> to vector<2x32xf32>
    %35 = vector.extract_strided_slice %33 {offsets = [0, 32], sizes = [2, 32], strides = [1, 1]} : vector<2x64xf32> to vector<2x32xf32>
    %c0_27 = arith.constant 0 : index
    %c0_28 = arith.constant 0 : index
    %36 = vector.load %arg3[%c0_27, %c0_28] : memref<2x32xf32, #tpu.memory_space<vmem>>, vector<2x32xf32>
    %cst_29 = arith.constant 5.000000e-01 : f32
    %37 = vector.broadcast %cst_29 : f32 to vector<2x32xf32>
    %38 = arith.mulf %37, %35 : vector<2x32xf32>
    %39 = math.exp %38 : vector<2x32xf32>
    %40 = arith.mulf %36, %39 : vector<2x32xf32>
    %41 = arith.addf %34, %40 : vector<2x32xf32>
    %42 = tpu.concatenate %41, %18 in 1 : vector<2x32xf32>, vector<2x8xf32> -> vector<2x40xf32>
    %43 = arith.truncf %42 : vector<2x40xf32> to vector<2x40xbf16>
    %c0_30 = arith.constant 0 : index
    %c0_31 = arith.constant 0 : index
    %44 = vector.load %arg13[%c0_30, %c0_31] : memref<40x64xbf16, #tpu.memory_space<vmem>>, vector<40x64xbf16>
    %cst_32 = arith.constant dense<0.000000e+00> : vector<2x64xf32>
    %45 = tpu.matmul %43, %44, %cst_32 {dimension_numbers = #tpu.dot_dimension_numbers<[1], [0], [0], [1], [0, 0, 1, 1], [], []>} : vector<2x40xbf16>, vector<40x64xbf16>, vector<2x64xf32> -> vector<2x64xf32>
    %c0_33 = arith.constant 0 : index
    %c0_34 = arith.constant 0 : index
    %46 = vector.load %arg14[%c0_33, %c0_34] : memref<1x64xf32, #tpu.memory_space<vmem>>, vector<1x64xf32>
    %47 = vector.broadcast %46 : vector<1x64xf32> to vector<2x64xf32>
    %48 = arith.addf %45, %47 : vector<2x64xf32>
    %cst_35 = arith.constant 0.000000e+00 : f32
    %49 = vector.broadcast %cst_35 : f32 to vector<2x64xf32>
    %50 = arith.maximumf %48, %49 : vector<2x64xf32>
    %51 = arith.truncf %50 : vector<2x64xf32> to vector<2x64xbf16>
    %c0_36 = arith.constant 0 : index
    %c0_37 = arith.constant 0 : index
    %52 = vector.load %arg15[%c0_36, %c0_37] : memref<64x48xbf16, #tpu.memory_space<vmem>>, vector<64x48xbf16>
    %cst_38 = arith.constant dense<0.000000e+00> : vector<2x48xf32>
    %53 = tpu.matmul %51, %52, %cst_38 {dimension_numbers = #tpu.dot_dimension_numbers<[1], [0], [0], [1], [0, 0, 1, 1], [], []>} : vector<2x64xbf16>, vector<64x48xbf16>, vector<2x48xf32> -> vector<2x48xf32>
    %c0_39 = arith.constant 0 : index
    %c0_40 = arith.constant 0 : index
    %54 = vector.load %arg16[%c0_39, %c0_40] : memref<1x48xf32, #tpu.memory_space<vmem>>, vector<1x48xf32>
    %55 = vector.broadcast %54 : vector<1x48xf32> to vector<2x48xf32>
    %56 = arith.addf %53, %55 : vector<2x48xf32>
    %57 = tpu.concatenate %1, %42, %1, %42 in 1 : vector<2x64xf32>, vector<2x40xf32>, vector<2x64xf32>, vector<2x40xf32> -> vector<2x208xf32>
    %58 = arith.truncf %57 : vector<2x208xf32> to vector<2x208xbf16>
    %c0_41 = arith.constant 0 : index
    %c0_42 = arith.constant 0 : index
    %59 = vector.load %arg17[%c0_41, %c0_42] : memref<208x32xbf16, #tpu.memory_space<vmem>>, vector<208x32xbf16>
    %cst_43 = arith.constant dense<0.000000e+00> : vector<2x32xf32>
    %60 = tpu.matmul %58, %59, %cst_43 {dimension_numbers = #tpu.dot_dimension_numbers<[1], [0], [0], [1], [0, 0, 1, 1], [], []>} : vector<2x208xbf16>, vector<208x32xbf16>, vector<2x32xf32> -> vector<2x32xf32>
    %c0_44 = arith.constant 0 : index
    %c0_45 = arith.constant 0 : index
    %61 = vector.load %arg18[%c0_44, %c0_45] : memref<1x32xf32, #tpu.memory_space<vmem>>, vector<1x32xf32>
    %62 = vector.broadcast %61 : vector<1x32xf32> to vector<2x32xf32>
    %63 = arith.addf %60, %62 : vector<2x32xf32>
    %cst_46 = arith.constant 0.000000e+00 : f32
    %64 = vector.broadcast %cst_46 : f32 to vector<2x32xf32>
    %65 = arith.maximumf %63, %64 : vector<2x32xf32>
    %66 = arith.truncf %65 : vector<2x32xf32> to vector<2x32xbf16>
    %c0_47 = arith.constant 0 : index
    %c0_48 = arith.constant 0 : index
    %67 = vector.load %arg19[%c0_47, %c0_48] : memref<32x21xbf16, #tpu.memory_space<vmem>>, vector<32x21xbf16>
    %cst_49 = arith.constant dense<0.000000e+00> : vector<2x21xf32>
    %68 = tpu.matmul %66, %67, %cst_49 {dimension_numbers = #tpu.dot_dimension_numbers<[1], [0], [0], [1], [0, 0, 1, 1], [], []>} : vector<2x32xbf16>, vector<32x21xbf16>, vector<2x21xf32> -> vector<2x21xf32>
    %c0_50 = arith.constant 0 : index
    %c0_51 = arith.constant 0 : index
    %69 = vector.load %arg20[%c0_50, %c0_51] : memref<1x21xf32, #tpu.memory_space<vmem>>, vector<1x21xf32>
    %70 = vector.broadcast %69 : vector<1x21xf32> to vector<2x21xf32>
    %71 = arith.addf %68, %70 : vector<2x21xf32>
    %cst_52 = arith.constant 0.000000e+00 : f32
    %72 = vector.broadcast %cst_52 : f32 to vector<2x123xf32>
    %73 = tpu.concatenate %34, %35, %56, %71, %72 in 1 : vector<2x32xf32>, vector<2x32xf32>, vector<2x48xf32>, vector<2x21xf32>, vector<2x123xf32> -> vector<2x256xf32>
    %c0_53 = arith.constant 0 : index
    %c0_54 = arith.constant 0 : index
    %74 = vector.load %arg21[%c0_53, %c0_54] : memref<2x256xf32, #tpu.memory_space<vmem>>, vector<2x256xf32>
    tpu.vector_store %arg21[%c0_53, %c0_54], %73 {strides = array<i32>} : memref<2x256xf32, #tpu.memory_space<vmem>>, vector<2x256xf32>,
    return
  }
  func.func @transform_0(%arg0: i32) -> (i32, i32) {
    %c0_i32 = arith.constant 0 : i32
    %c0_i32_0 = arith.constant 0 : i32
    %c0_i32_1 = arith.constant 0 : i32
    return %c0_i32, %c0_i32_0 : i32, i32
  }
  func.func @transform_1(%arg0: i32) -> (i32, i32) {
    %c0_i32 = arith.constant 0 : i32
    %c0_i32_0 = arith.constant 0 : i32
    %c0_i32_1 = arith.constant 0 : i32
    return %c0_i32, %c0_i32_0 : i32, i32
  }
  func.func @transform_2(%arg0: i32) -> (i32, i32) {
    %c0_i32 = arith.constant 0 : i32
    %c0_i32_0 = arith.constant 0 : i32
    %c0_i32_1 = arith.constant 0 : i32
    return %c0_i32, %c0_i32_0 : i32, i32
  }
  func.func @transform_3(%arg0: i32) -> (i32, i32) {
    %c0_i32 = arith.constant 0 : i32
    %c0_i32_0 = arith.constant 0 : i32
    %c0_i32_1 = arith.constant 0 : i32
    return %c0_i32, %c0_i32_0 : i32, i32
  }
  func.func @transform_4(%arg0: i32) -> (i32, i32) {
    %c0_i32 = arith.constant 0 : i32
    %c0_i32_0 = arith.constant 0 : i32
    %c0_i32_1 = arith.constant 0 : i32
    return %c0_i32, %c0_i32_0 : i32, i32
  }
  func.func @transform_5(%arg0: i32) -> (i32, i32) {
    %c0_i32 = arith.constant 0 : i32
    %c0_i32_0 = arith.constant 0 : i32
    %c0_i32_1 = arith.constant 0 : i32
    return %c0_i32, %c0_i32_0 : i32, i32
  }
  func.func @transform_6(%arg0: i32) -> (i32, i32) {
    %c0_i32 = arith.constant 0 : i32
    %c0_i32_0 = arith.constant 0 : i32
    %c0_i32_1 = arith.constant 0 : i32
    return %c0_i32, %c0_i32_0 : i32, i32
  }
  func.func @transform_7(%arg0: i32) -> (i32, i32) {
    %c0_i32 = arith.constant 0 : i32
    %c0_i32_0 = arith.constant 0 : i32
    %c0_i32_1 = arith.constant 0 : i32
    return %c0_i32, %c0_i32_0 : i32, i32
  }
  func.func @transform_8(%arg0: i32) -> (i32, i32) {
    %c0_i32 = arith.constant 0 : i32
    %c0_i32_0 = arith.constant 0 : i32
    %c0_i32_1 = arith.constant 0 : i32
    return %c0_i32, %c0_i32_0 : i32, i32
  }
  func.func @transform_9(%arg0: i32) -> (i32, i32) {
    %c0_i32 = arith.constant 0 : i32
    %c0_i32_0 = arith.constant 0 : i32
    %c0_i32_1 = arith.constant 0 : i32
    return %c0_i32, %c0_i32_0 : i32, i32
  }
  func.func @transform_10(%arg0: i32) -> (i32, i32) {
    %c0_i32 = arith.constant 0 : i32
    %c0_i32_0 = arith.constant 0 : i32
    %c0_i32_1 = arith.constant 0 : i32
    return %c0_i32, %c0_i32_0 : i32, i32
  }
  func.func @transform_11(%arg0: i32) -> (i32, i32) {
    %c0_i32 = arith.constant 0 : i32
    %c0_i32_0 = arith.constant 0 : i32
    %c0_i32_1 = arith.constant 0 : i32
    return %c0_i32, %c0_i32_0 : i32, i32
  }
  func.func @transform_12(%arg0: i32) -> (i32, i32) {
    %c0_i32 = arith.constant 0 : i32
    %c0_i32_0 = arith.constant 0 : i32
    %c0_i32_1 = arith.constant 0 : i32
    return %c0_i32, %c0_i32_0 : i32, i32
  }
  func.func @transform_13(%arg0: i32) -> (i32, i32) {
    %c0_i32 = arith.constant 0 : i32
    %c0_i32_0 = arith.constant 0 : i32
    %c0_i32_1 = arith.constant 0 : i32
    return %c0_i32, %c0_i32_0 : i32, i32
  }
  func.func @transform_14(%arg0: i32) -> (i32, i32) {
    %c0_i32 = arith.constant 0 : i32
    %c0_i32_0 = arith.constant 0 : i32
    %c0_i32_1 = arith.constant 0 : i32
    return %c0_i32, %c0_i32_0 : i32, i32
  }
  func.func @transform_15(%arg0: i32) -> (i32, i32) {
    %c0_i32 = arith.constant 0 : i32
    %c0_i32_0 = arith.constant 0 : i32
    %c0_i32_1 = arith.constant 0 : i32
    return %c0_i32, %c0_i32_0 : i32, i32
  }
  func.func @transform_16(%arg0: i32) -> (i32, i32) {
    %c0_i32 = arith.constant 0 : i32
    %c0_i32_0 = arith.constant 0 : i32
    %c0_i32_1 = arith.constant 0 : i32
    return %c0_i32, %c0_i32_0 : i32, i32
  }
  func.func @transform_17(%arg0: i32) -> (i32, i32) {
    %c0_i32 = arith.constant 0 : i32
    %c0_i32_0 = arith.constant 0 : i32
    %c0_i32_1 = arith.constant 0 : i32
    return %c0_i32, %c0_i32_0 : i32, i32
  }
  func.func @transform_18(%arg0: i32) -> (i32, i32) {
    %c0_i32 = arith.constant 0 : i32
    %c0_i32_0 = arith.constant 0 : i32
    %c0_i32_1 = arith.constant 0 : i32
    return %c0_i32, %c0_i32_0 : i32, i32
  }
  func.func @transform_19(%arg0: i32) -> (i32, i32) {
    %c0_i32 = arith.constant 0 : i32
    %c0_i32_0 = arith.constant 0 : i32
    %c0_i32_1 = arith.constant 0 : i32
    return %c0_i32, %c0_i32_0 : i32, i32
  }
  func.func @transform_20(%arg0: i32) -> (i32, i32) {
    %c0_i32 = arith.constant 0 : i32
    %c0_i32_0 = arith.constant 0 : i32
    %c0_i32_1 = arith.constant 0 : i32
    return %c0_i32, %c0_i32_0 : i32, i32
  }
}

</mosaic_0001>

<bundles_post_ra>
// kernel: forward.8
= control target key start
LH: loop header
LB: loop body
LE: loop exit
PB: predicated region body
PF: predicated region fallthrough
CT: control target
= control target key end

     0   :  { %s587_s12 = smov 0   ;;  %s645_s0 = inlined_call_operand.vmem [shape: f32[2,8,128], index: 0, kind: input, shape index: {}]   ;;  %s646_s1 = inlined_call_operand.vmem [shape: bf16[64,192], index: 1, kind: input, shape index: {}]   ;;  %s647_s2 = inlined_call_operand.vmem [shape: f32[1,192], index: 2, kind: input, shape index: {}]   ;;  %s648_s3 = inlined_call_operand.vmem [shape: f32[2,1,128], index: 3, kind: output, shape index: {}]  }
   0x1 LB: > { %s493_s13 = sadd.s32 4294967295, %s561_s12   ;;  %p497_p0 = scmp.ge.s32.totalorder %s561_s12, 1  ;;  %s561_s12 = sphi %s587_s12, %s13_s12  }
   0x2   : > { %p136_p1 = scmp.lt.s32.totalorder %s561_s12, 3 }
   0x4   : > { %p137_p2 = pnand %p497_p0, %p136_p1 }
   0x5   : > { %v539_v0 = vld [vmem:[%s646_s1 + $0x4] ss:$8 sps:$4 sm:$0xff] (!%p137_p2)   ;;  %p157_p3 = scmp.lt.s32.totalorder (!%p137_p2), %s493_s13, 1  ;;  %v541_v1 = vld [vmem:[%s646_s1] ss:$8 sps:$4 sm:$0xff] (!%p137_p2)   ;;  %v563_v2 = vmov (!%p137_p2), 0   ;;  %v177_v12 = vlaneseq (!%p137_p2) }
   0x6   : > { %140 = sbr.rel (%p137_p2) target bundleno = 1111 (0x457), region = 32  ;;  %263 = vmatprep.mubr.bf16.mxu0 (!%p137_p2), %v563_v2  ;;  %231 = vmatprep.subr.bf16.mxu0 (!%p137_p2), %v539_v0  ;;  %v542_v3 = vld [vmem:[%s646_s1 + $0x14] ss:$8 sps:$4 sm:$0xff] (!%p137_p2)   ;;  %v544_v4 = vld [vmem:[%s646_s1 + $0x10] ss:$8 sps:$4 sm:$0xff] (!%p137_p2)   ;;  %vm227_vm0 = vcmask (!%p137_p2), 523264  }
   0x7   : > { %232 = vmatpush1.bf16.msra.mxu0 (!%p137_p2), %v541_v1  ;;  %v545_v5 = vld [vmem:[%s646_s1 + $0x24] ss:$8 sps:$4 sm:$0xff] (!%p137_p2)   ;;  %v547_v6 = vld [vmem:[%s646_s1 + $0x20] ss:$8 sps:$4 sm:$0xff] (!%p137_p2)   ;;  %v548_v7 = vld [vmem:[%s646_s1 + $0x34] ss:$8 sps:$4 sm:$0xff] (!%p137_p2)  }
   0x8   : > { %233 = vmatprep.subr.bf16.mxu0 (!%p137_p2), %v542_v3  ;;  %v550_v8 = vld [vmem:[%s646_s1 + $0x30] ss:$8 sps:$4 sm:$0xff] (!%p137_p2)   ;;  %v564_v11 = vmov (!%p137_p2), 0.0   ;;  %v178_v13 = vshrl.u32 (!%p137_p2), %v177_v12, 7  ;;  %vm565_vm1 = vmmov (!%p137_p2), 0   ;;  %s566_s9 = smov (!%p137_p2), 64  }
   0x9   : > { %517 = vmatprep.subr.mxu1 (!%p137_p2), %v564_v11  ;;  %519 = vmatprep.mubr.msk.f32.mxu1 (!%p137_p2), %vm565_vm1, %v564_v11  ;;  %v175_v15 = vld [vmem:[%s647_s2] sm:$0x3] (!%p137_p2)  ;;  %vm350_vm2 = vcmask (!%p137_p2), 64512  }
   0xa   : > { %v179_v14 = vsub.s32 (!%p137_p2), 0, %v178_v13  ;;  %v183_v22 = vsub.s32 (!%p137_p2), 1, %v178_v13 }
   0xb   : > { %234 = vmatpush1.bf16.msra.mxu0 (!%p137_p2), %v544_v4 }
   0xc   : > { %235 = vmatprep.subr.bf16.mxu0 (!%p137_p2), %v545_v5  ;;  %v180_v16 = vrot.slane (!%p137_p2), %v175_v15, %v179_v14  ;;  %v184_v23 = vrot.slane (!%p137_p2), %v175_v15, %v183_v22 }
   0xd   : > { %s650_s13 = smov (!%p157_p3, %s493_s13), 1 }
   0xe   : > { %s498_s24 = sshll.u32 %s650_s13, 3  ;;  %s163_s14 = scalar_lea.vmem %s648_s3, %s650_s13 }
   0xf   : > { %s160_s4 = scalar_lea.vmem %s645_s0, %s498_s24  ;;  %236 = vmatpush1.bf16.msra.mxu0 %v547_v6 }
  0x10   : > { %v165_v9 = vld [vmem:[%s160_s4] sm:$0xff]  ;;  %237 = vmatprep.subr.bf16.mxu0 %v548_v7 }
  0x11   : > { %v166_v10 = vpack.c.bf16 %v165_v9, %v165_v9 }
  0x13   : > { %238 = vmatpush1.bf16.msra.mxu0 %v550_v8 }
  0x16   : > { %507 = vmatmul.mubr.msk.bf16.vlgmr.msra.gmra.mrb[0].mxu0 %vm227_vm0, %v166_v10 }
  0xe9   : > { %v265_v17 = vpop.f32.mrb[0].mxu0 }
  0xea   : > { %v266_v18 = vadd.f32 %v265_v17, %v180_v16  ;;  %v267_v19 = vpop.f32.mrb[1].mxu0 }
  0xeb   : > { %v269_v20 = vpop.f32.mrb[2].mxu0  ;;  %v268_v25 = vadd.f32 %v267_v19, %v184_v23 }
  0xec   : > { %v270_v21 = vpop.f32.mrb[3].mxu0  ;;  %273 = vrot.lane.b32.xlu0 %v266_v18, %s566_s9 }
 0x15e   : > { %v274_v24 = vpop.permute.xlu0 %273 }
 0x15f   : > { %518 = vmatpush3.xpose.msk.msra.mxu1 %vm227_vm0, %v274_v24 }
 0x160   : > { %522 = vmatprep.subr.mxu1 %v564_v11 }
 0x162   : > { %520 = vmatmul.mubr.msk.f32.vlgmr.msra.gmra.mrb[0].mxu1 %vm227_vm0, %v266_v18 }
 0x163   : > { %523 = vmatpush3.msra.mxu1 %v268_v25  ;;  %524 = vmatprep.mubr.msk.f32.mxu1 %vm565_vm1, %v564_v11 }
 0x235   : > { %v345_v26 = vpop.f32.mrb[0].mxu1 }
 0x236   : > { %v349_v27 = vmul.f32 0.125, %v345_v26  ;;  %v521_v28 = vpop.f32.mrb[1].mxu1 }
 0x238   : > { %v351_v29 = vsel %vm350_vm2, %v349_v27, -inf }
 0x239   : > { %352 = vmax.xlane.f32.xlu0 %v351_v29 }
 0x2c6   : > { %v353_v30 = vpop.xlane.xlu0 %352 }
 0x2c7   : > { %v354_v31 = vsub.f32 %v349_v27, %v353_v30 }
 0x2c9   : > { %v355_v32 = vmul.f32 1.442695, %v354_v31 }
 0x2cb   : > { %551 = vpow2.f32 %v355_v32 }
 0x2d5   : > { %v552_v33 = vpop.eup %551 }
 0x2d6   : > { %v357_v34 = vsel %vm350_vm2, %v552_v33, 0.0 }
 0x2d7   : > { %358 = vadd.xlane.f32.xlu1 %v357_v34 }
 0x364   : > { %v359_v35 = vpop.xlane.xlu1 %358 }
 0x365   : > { %553 = vrcp.f32 %v359_v35 }
 0x36f   : > { %v554_v36 = vpop.eup %553 }
 0x370   : > { %v361_v37 = vmul.f32 %v554_v36, %v552_v33 }
 0x372   : > { %525 = vmatmul.mubr.msk.f32.vlgmr.msra.gmra.mrb[2].mxu1 %vm350_vm2, %v361_v37 }
 0x445   : > { %v431_v38 = vpop.f32.mrb[2].mxu1 }
 0x446   : > { %v435_v39 = vsel %vm227_vm0, %v431_v38, 0.0  ;;  %v526_v40 = vpop.f32.mrb[3].mxu1 }
 0x447   : > { %v436_v41 = vrot.slane %v435_v39, 4 }
 0x449   : > { %v437_v42 = vadd.f32 %v436_v41, %v435_v39 }
 0x44b   : > { %v438_v43 = vrot.slane %v437_v42, 2 }
 0x44d   : > { %v439_v44 = vadd.f32 %v438_v43, %v437_v42 }
 0x44f   : > { %v440_v45 = vrot.slane %v439_v44, 1 }
 0x451   : > { %v441_v46 = vadd.f32 %v440_v45, %v439_v44 }
 0x453   : > { %v443_v47 = vmul.f32 0.125, %v441_v46 }
 0x455   : > { %v444_v48 = vsel %vm227_vm0, %v443_v47, 0.0 }
 0x456   : > { %445 = vst [vmem:[%s163_s14] sm:$0x1] %v444_v48 }
 0x457 PF: > { %s13_s12 = sadd.s32 1, %s561_s12  }
 0x458   : > { %p10_p4 = scmp.ge.s32.totalorder %s13_s12, 4  }
 0x45a   :  { %12 = sbr.rel (!%p10_p4) target bundleno = 1 (0x1), region = 62 }

// kernel: forward.5
= control target key start
LH: loop header
LB: loop body
LE: loop exit
PB: predicated region body
PF: predicated region fallthrough
CT: control target
= control target key end

     0   :  { %v1960_v0 = vmov 0   ;;  %s1961_s28 = smov 64   ;;  %v56_v13 = vlaneseq  ;;  %vm114_vm0 = vcmask 130048   ;;  %v1962_v17 = vmov 0.0   ;;  %s1964_s17 = smov 41   ;;  %s2363_s1 = inlined_call_operand.vmem [shape: s32[32,1], index: 1, kind: input, shape index: {}]   ;;  %s2364_s2 = inlined_call_operand.vmem [shape: s32[32,1], index: 2, kind: input, shape index: {}]   ;;  %s2365_s0 = inlined_call_operand.vmem [shape: f32[16,128], index: 0, kind: input, shape index: {}]   ;;  %s2366_s4 = inlined_call_operand.vmem [shape: f32[32,1], index: 4, kind: input, shape index: {}]   ;;  %s2367_s5 = inlined_call_operand.vmem [shape: bf16[42,64], index: 5, kind: input, shape index: {}]   ;;  %s2368_s7 = inlined_call_operand.vmem [shape: bf16[64,64], index: 7, kind: input, shape index: {}]   ;;  %s2369_s6 = inlined_call_operand.vmem [shape: f32[1,64], index: 6, kind: input, shape index: {}]   ;;  %s2370_s9 = inlined_call_operand.vmem [shape: bf16[64,64], index: 9, kind: input, shape index: {}]   ;;  %s2371_s8 = inlined_call_operand.vmem [shape: f32[1,64], index: 8, kind: input, shape index: {}]   ;;  %s2372_s3 = inlined_call_operand.vmem [shape: s32[1,32], index: 3, kind: input, shape index: {}]   ;;  %s2373_s11 = inlined_call_operand.vmem [shape: bf16[64,1], index: 11, kind: input, shape index: {}]   ;;  %s2374_s12 = inlined_call_operand.vmem [shape: bf16[84,64], index: 12, kind: input, shape index: {}]   ;;  %s2375_s10 = inlined_call_operand.vmem [shape: f32[1,64], index: 10, kind: input, shape index: {}]   ;;  %s2376_s14 = inlined_call_operand.vmem [shape: bf16[64,64], index: 14, kind: input, shape index: {}]   ;;  %s2377_s13 = inlined_call_operand.vmem [shape: f32[1,64], index: 13, kind: input, shape index: {}]   ;;  %s2378_s15 = inlined_call_operand.vmem [shape: f32[1,64], index: 15, kind: input, shape index: {}]   ;;  %s2379_s16 = inlined_call_operand.vmem [shape: f32[16,128], index: 16, kind: output, shape index: {}]  }
   0x1   :  { %2381 = sst [smem:[#allocation2_spill]] %s2363_s1  ;;  %1826 = vset.pattern.permute.xlu1 %v1960_v0  ;;  %1825 = vset.pattern.permute.xlu0 %v1960_v0  ;;  %v87_v3 = vld [vmem:[%s2364_s2 + $0x8] sm:$0xff]  ;;  %v86_v4 = vld [vmem:[%s2364_s2] sm:$0xff]  ;;  %v88_v8 = vld [vmem:[%s2364_s2 + $0x10] sm:$0xff]  ;;  %vm495_vm9 = vcmask 23552   ;;  %vm638_vm10 = vcmask 1044480  }
   0x2   :  { %s2382_s23 = sld [smem:[#allocation2_spill]]  ;;  %v2066_v5 = vld [vmem:[%s2365_s0] sm:$0xff]  ;;  %v2071_v6 = vld [vmem:[%s2365_s0 + $0x8] sm:$0xff]  ;;  %v89_v10 = vld [vmem:[%s2364_s2 + $0x18] sm:$0xff]  ;;  %v57_v14 = vand.u32 127, %v56_v13  ;;  %s1963_s2 = smov 20  }
   0x3   :  { %v1786_v7 = vpack.c.bf16 %v2071_v6, %v2066_v5  ;;  %v1827_v12 = vpack.i.bf16 %v2071_v6, %v2066_v5  ;;  %vm584_vm11 = vcmask 162816   ;;  %vm589_vm12 = vcmask 326656  }
   0x4   :  { %vm594_vm13 = vcmask 334848   ;;  %vm631_vm14 = vcmask 343040   ;;  %vm760_vm15 = vcmask 523264  }
   0x5   :  { %1787 = vmatprep.subr.bf16.mxu0 %v1786_v7  ;;  %1791 = vmatprep.subr.bf16.mxu1 %v1786_v7 }
   0x6   :  { %1789 = vmatpush3.bf16.msra.mxu0 %v1786_v7  ;;  %1793 = vmatpush3.bf16.msra.mxu1 %v1786_v7  ;;  %v548_v7 = vld [vmem:[%s2366_s4] sm:$0xff] }
   0x8   :  { %v59_v1 = vld [vmem:[%s2382_s23 + $0x8] sm:$0xff]  ;;  %v58_v2 = vld [vmem:[%s2382_s23] sm:$0xff]  ;;  %v60_v9 = vld [vmem:[%s2382_s23 + $0x10] sm:$0xff] }
   0x9   :  { %66 = vperm.xlu1 %1826, %v59_v1   ;;  %63 = vperm.xlu0 %1825, %v58_v2   ;;  %v61_v11 = vld [vmem:[%s2382_s23 + $0x18] sm:$0xff]  ;;  %v550_v2 = vld [vmem:[%s2366_s4 + $0x10] sm:$0xff] }
   0xd   :  { %94 = vperm.xlu1 %1826, %v87_v3   ;;  %91 = vperm.xlu0 %1825, %v86_v4   ;;  %v551_v3 = vld [vmem:[%s2366_s4 + $0x18] sm:$0xff] }
   0xe   :  { %v1847_v4 = vpack.i.bf16 %v551_v3, %v550_v2 }
  0x11   :  { %97 = vperm.xlu1 %1826, %v88_v8   ;;  %69 = vperm.xlu0 %1825, %v60_v9   ;;  %v549_v8 = vld [vmem:[%s2366_s4 + $0x8] sm:$0xff]  ;;  %v1857_v9 = vld [vmem:[%s2367_s5] sm:$0xff]  }
  0x15   :  { %100 = vperm.xlu1 %1826, %v89_v10   ;;  %72 = vperm.xlu0 %1825, %v61_v11   ;;  %v1842_v10 = vpack.i.bf16 %v549_v8, %v548_v7  ;;  %v1858_v11 = vld [vmem:[%s2367_s5 + $0x8] sm:$0xff]  }
  0x19   :  { %1828 = vrot.lane.b32.xlu0 %v1827_v12, %s1961_s28  ;;  %v1859_v12 = vld [vmem:[%s2367_s5 + $0x10] sm:$0x1f]  }
  0x88   :  { %v67_v15 = vpop.permute.xlu1 %66  ;;  %v64_v16 = vpop.permute.xlu0 %63 }
  0x89   :  { %vm75_vm1 = vcmp.eq.s32.totalorder %v57_v14, %v67_v15  ;;  %vm74_vm2 = vcmp.eq.s32.totalorder %v57_v14, %v64_v16 }
  0x8a   :  { %v1495_v18 = vsel %vm75_vm1, 1.0, %v1962_v17  ;;  %v1494_v19 = vsel %vm74_vm2, 1.0, %v1962_v17  ;;  %vm1095_vm1 = vcmask 261120  }
  0x8b   :  { %1654 = vmatprep.mubr.msk.f32.mxu0 %vm114_vm0, %v1494_v19 }
  0x8c   :  { %v95_v20 = vpop.permute.xlu1 %94  ;;  %v92_v21 = vpop.permute.xlu0 %91  ;;  %1655 = vmatmul.mubr.msk.f32.vlgmr.msra.gmra.mrb[0].mxu0 %vm114_vm0, %v1495_v18 }
  0x8d   :  { %vm103_vm3 = vcmp.eq.s32.totalorder %v57_v14, %v95_v20  ;;  %vm102_vm4 = vcmp.eq.s32.totalorder %v57_v14, %v92_v21 }
  0x8e   :  { %v1499_v22 = vsel %vm103_vm3, 1.0, %v1962_v17  ;;  %v1498_v23 = vsel %vm102_vm4, 1.0, %v1962_v17  ;;  %vm1330_vm3 = vcmask 1041408   ;;  %vm1965_vm4 = vmmov 0  }
  0x8f   :  { %1664 = vmatprep.mubr.msk.f32.mxu1 %vm114_vm0, %v1498_v23 }
  0x90   :  { %v98_v24 = vpop.permute.xlu1 %97  ;;  %v70_v25 = vpop.permute.xlu0 %69  ;;  %1665 = vmatmul.mubr.msk.f32.vlgmr.msra.gmra.mrb[0].mxu1 %vm114_vm0, %v1499_v22 }
  0x91   :  { %vm104_vm5 = vcmp.eq.s32.totalorder %v57_v14, %v98_v24  ;;  %vm76_vm6 = vcmp.eq.s32.totalorder %v57_v14, %v70_v25 }
  0x92   :  { %v1500_v26 = vsel %vm104_vm5, 1.0, %v1962_v17  ;;  %v1496_v27 = vsel %vm76_vm6, 1.0, %v1962_v17  ;;  %vm1326_vm5 = vcmask 687104  }
  0x93   :  { %1657 = vmatprep.mubr.msk.f32.mxu0 %vm114_vm0, %v1496_v27  ;;  %1667 = vmatprep.mubr.msk.f32.mxu1 %vm114_vm0, %v1500_v26 }
  0x94   :  { %v101_v28 = vpop.permute.xlu1 %100  ;;  %v73_v29 = vpop.permute.xlu0 %72 }
  0x95   :  { %vm105_vm7 = vcmp.eq.s32.totalorder %v57_v14, %v101_v28  ;;  %vm77_vm8 = vcmp.eq.s32.totalorder %v57_v14, %v73_v29  ;;  %v640_v14 = vsel %vm638_vm10, %v1859_v12, 0 }
  0x96   :  { %v1501_v30 = vsel %vm105_vm7, 1.0, %v1962_v17  ;;  %v1497_v31 = vsel %vm77_vm8, 1.0, %v1962_v17 }
  0x97   :  { %1658 = vmatmul.mubr.msk.f32.gmra.mrb[2].mxu0 %vm114_vm0, %v1497_v31  ;;  %1668 = vmatmul.mubr.msk.f32.gmra.mrb[2].mxu1 %vm114_vm0, %v1501_v30 }
  0x98   :  { %v1829_v32 = vpop.permute.xlu0 %1828  ;;  %1674 = vmatprep.mubr.msk.f32.mxu0 %vm114_vm0, %v1494_v19  ;;  %1684 = vmatprep.mubr.msk.f32.mxu1 %vm114_vm0, %v1498_v23 }
  0x99   :  { %v1831_v33 = vunpack.i.h.bf16 %v1829_v32  ;;  %v1830_v34 = vunpack.i.l.bf16 %v1829_v32 }
  0x9b   :  { %v1794_v35 = vpack.c.bf16 %v1831_v33, %v1830_v34 }
  0x9d   :  { %1795 = vmatprep.subr.bf16.mxu0 %v1794_v35  ;;  %1799 = vmatprep.subr.bf16.mxu1 %v1794_v35 }
  0x9e   :  { %1797 = vmatpush3.bf16.msra.mxu0 %v1794_v35  ;;  %1801 = vmatpush3.bf16.msra.mxu1 %v1794_v35 }
  0x9f   :  { %1690 = vmatprep.subr.bf16.mxu0 %v1857_v9 }
  0xa1   :  { %1675 = vmatmul.mubr.msk.f32.vlgmr.msra.gmra.mrb[4].mxu0 %vm114_vm0, %v1495_v18  ;;  %1685 = vmatmul.mubr.msk.f32.vlgmr.msra.gmra.mrb[4].mxu1 %vm114_vm0, %v1499_v22 }
  0xa2   :  { %1677 = vmatprep.mubr.msk.f32.mxu0 %vm114_vm0, %v1496_v27  ;;  %1687 = vmatprep.mubr.msk.f32.mxu1 %vm114_vm0, %v1500_v26 }
  0xa3   :  { %1691 = vmatpush3.bf16.msra.mxu0 %v1857_v9 }
  0xa4   :  { %1692 = vmatprep.subr.bf16.mxu0 %v1858_v11 }
  0xa5   :  { %1678 = vmatmul.mubr.msk.f32.gmra.mrb[6].mxu0 %vm114_vm0, %v1497_v31  ;;  %1688 = vmatmul.mubr.msk.f32.gmra.mrb[6].mxu1 %vm114_vm0, %v1501_v30 }
  0xa7   :  { %1693 = vmatpush3.bf16.msra.mxu0 %v1858_v11 }
  0xa8   :  { %1818 = vmatprep.subr.msk.bf16.mxu0 %vm638_vm10, %v1859_v12 }
  0xab   :  { %1695 = vmatpush3.bf16.msra.mxu0 %v640_v14 }
 0x15f   :  { %v2115_v36 = vpop.f32.mrb[0].mxu0 }
 0x160   :  { %v2117_v37 = vpop.f32.mrb[1].mxu0 }
 0x163   :  { %v1666_v38 = vpop.f32.mrb[0].mxu1 }
 0x164   :  { %v290_v39 = vpop.f32.mrb[1].mxu1 }
 0x165   :  { %v1832_v40 = vpack.i.bf16 %v1666_v38, %v290_v39 }
 0x167   :  { %1833 = vrot.lane.b32.xlu0 %v1832_v40, %s1963_s2 }
 0x16a   :  { %v2120_v41 = vpop.f32.mrb[2].mxu0  ;;  %v1669_v42 = vpop.f32.mrb[2].mxu1 }
 0x16b   :  { %v2122_v43 = vpop.f32.mrb[3].mxu0  ;;  %v300_v44 = vpop.f32.mrb[3].mxu1 }
 0x16c   :  { %v1837_v45 = vpack.i.bf16 %v1669_v42, %v300_v44 }
 0x16e   :  { %1838 = vrot.lane.b32.xlu1 %v1837_v45, %s1963_s2 }
 0x174   :  { %v1676_v46 = vpop.f32.mrb[4].mxu0  ;;  %v1686_v47 = vpop.f32.mrb[4].mxu1 }
 0x175   :  { %v2125_v48 = vsub.f32 %v1676_v46, %v1686_v47  ;;  %v383_v49 = vpop.f32.mrb[5].mxu0  ;;  %v468_v50 = vpop.f32.mrb[5].mxu1 }
 0x176   :  { %v2127_v51 = vsub.f32 %v383_v49, %v468_v50  ;;  %v1862_v49 = vld [vmem:[%s2368_s7 + $0x10] sm:$0xff]   ;;  %v1863_v50 = vld [vmem:[%s2368_s7 + $0x18] sm:$0xff]  }
 0x177   :  { %v492_v58 = vmul.f32 %v2125_v48, %v2125_v48 }
 0x178   :  { %v1679_v52 = vpop.f32.mrb[6].mxu0  ;;  %v1689_v53 = vpop.f32.mrb[6].mxu1  ;;  %v491_v62 = vmul.f32 %v2127_v51, %v2127_v51 }
 0x179   :  { %v2129_v54 = vsub.f32 %v1679_v52, %v1689_v53  ;;  %v393_v55 = vpop.f32.mrb[7].mxu0  ;;  %v478_v56 = vpop.f32.mrb[7].mxu1  ;;  %v499_v59 = vsel %vm495_vm9, %v492_v58, 0.0  ;;  %v1518_v52 = vld [vmem:[%s2369_s6] ss:$0 sm:$0xff] }
 0x17a   :  { %v2131_v57 = vsub.f32 %v393_v55, %v478_v56  ;;  %v496_v63 = vsel %vm495_vm9, %v491_v62, 0.0 }
 0x17b   :  { %v494_v0 = vmul.f32 %v2129_v54, %v2129_v54 }
 0x17c   :  { %v493_v60 = vmul.f32 %v2131_v57, %v2131_v57 }
 0x17d   :  { %v505_v1 = vsel %vm495_vm9, %v494_v0, 0.0 }
 0x17e   :  { %v502_v61 = vsel %vm495_vm9, %v493_v60, 0.0 }
 0x186   :  { %500 = vadd.xlane.f32.xlu0 %v499_v59 }
 0x18a   :  { %503 = vadd.xlane.f32.xlu0 %v502_v61 }
 0x192   :  { %497 = vadd.xlane.f32.xlu1 %v496_v63 }
 0x196   :  { %506 = vadd.xlane.f32.xlu1 %v505_v1 }
 0x1a0   :  { %1848 = vrot.lane.b32.xlu0 %v1847_v4, %s1964_s17 }
 0x1a7   :  { %1843 = vrot.lane.b32.xlu1 %v1842_v10, %s1964_s17 }
 0x1d9   :  { %v1834_v15 = vpop.permute.xlu0 %1833 }
 0x1da   :  { %v1836_v27 = vunpack.i.h.bf16 %v1834_v15  ;;  %v1835_v28 = vunpack.i.l.bf16 %v1834_v15 }
 0x1dc   :  { %v585_v39 = vsel %vm584_vm11, %v2117_v37, %v1835_v28  ;;  %v586_v40 = vsel %vm584_vm11, %v2115_v36, %v1836_v27  ;;  %v1860_v36 = vld [vmem:[%s2368_s7] sm:$0xff]   ;;  %v1861_v37 = vld [vmem:[%s2368_s7 + $0x8] sm:$0xff]  }
 0x1dd   :  { %1700 = vmatprep.subr.bf16.mxu1 %v1860_v36 }
 0x1de   :  { %1701 = vmatpush3.bf16.msra.mxu1 %v1860_v36 }
 0x1df   :  { %1702 = vmatprep.subr.bf16.mxu1 %v1861_v37 }
 0x1e0   :  { %v1839_v19 = vpop.permute.xlu1 %1838 }
 0x1e1   :  { %v1841_v22 = vunpack.i.h.bf16 %v1839_v19  ;;  %v1840_v23 = vunpack.i.l.bf16 %v1839_v19 }
 0x1e2   :  { %1703 = vmatpush3.bf16.msra.mxu1 %v1861_v37 }
 0x1e3   :  { %v587_v29 = vsel %vm584_vm11, %v2122_v43, %v1840_v23  ;;  %v588_v30 = vsel %vm584_vm11, %v2120_v41, %v1841_v22  ;;  %1704 = vmatprep.subr.bf16.mxu1 %v1862_v49 }
 0x1e6   :  { %1705 = vmatpush3.bf16.msra.mxu1 %v1862_v49 }
 0x1e7   :  { %1706 = vmatprep.subr.bf16.mxu1 %v1863_v50 }
 0x1ea   :  { %1707 = vmatpush3.bf16.msra.mxu1 %v1863_v50 }
 0x213   :  { %v2162_v16 = vpop.xlane.xlu0 %500 }
 0x214   :  { %v591_v44 = vsel %vm589_vm12, %v586_v40, %v2162_v16  ;;  %vm517_vm6 = vcmp.eq.f32.partialorder %v2162_v16, inf  ;;  %vm519_vm8 = vcmp.eq.f32.partialorder %v2162_v16, 0.0 }
 0x217   :  { %v2164_v18 = vpop.xlane.xlu0 %503 }
 0x218   :  { %v592_v31 = vsel %vm589_vm12, %v587_v29, %v2164_v18  ;;  %v1864_v29 = vld [vmem:[%s2370_s9] sm:$0xff]   ;;  %vm524_vm9 = vcmp.eq.f32.partialorder %v2164_v18, inf }
 0x219   :  { %1712 = vmatprep.subr.bf16.mxu0 %v1864_v29 }
 0x21b   :  { %v1849_v20 = vpop.permute.xlu0 %1848 }
 0x21c   :  { %v1851_v24 = vunpack.i.h.bf16 %v1849_v20  ;;  %v1850_v25 = vunpack.i.l.bf16 %v1849_v20 }
 0x21e   :  { %v597_v33 = vsel %vm594_vm13, %v592_v31, %v1850_v25  ;;  %v1866_v31 = vld [vmem:[%s2370_s9 + $0x10] sm:$0xff]  }
 0x21f   :  { %v2166_v21 = vpop.xlane.xlu1 %497 }
 0x220   :  { %v590_v43 = vsel %vm589_vm12, %v585_v39, %v2166_v21  ;;  %vm510_vm7 = vcmp.eq.f32.partialorder %v2166_v21, inf  ;;  %vm512_vm10 = vcmp.eq.f32.partialorder %v2166_v21, 0.0 }
 0x223   :  { %v2168_v26 = vpop.xlane.xlu1 %506 }
 0x224   :  { %v593_v32 = vsel %vm589_vm12, %v588_v30, %v2168_v26  ;;  %v1865_v30 = vld [vmem:[%s2370_s9 + $0x8] sm:$0xff]   ;;  %vm526_vm12 = vcmp.eq.f32.partialorder %v2164_v18, 0.0 }
 0x225   :  { %v598_v34 = vsel %vm594_vm13, %v593_v32, %v1851_v24  ;;  %v1867_v32 = vld [vmem:[%s2370_s9 + $0x18] sm:$0xff]  }
 0x226   :  { %v600_v38 = vpack.c.bf16 %v598_v34, %v597_v33  ;;  %v1528_v33 = vld [vmem:[%s2371_s8] ss:$0 sm:$0xff] }
 0x227   :  { %v1844_v35 = vpop.permute.xlu1 %1843 }
 0x228   :  { %v1846_v42 = vunpack.i.h.bf16 %v1844_v35  ;;  %v1845_v41 = vunpack.i.l.bf16 %v1844_v35 }
 0x22a   :  { %v596_v45 = vsel %vm594_vm13, %v591_v44, %v1846_v42  ;;  %v595_v46 = vsel %vm594_vm13, %v590_v43, %v1845_v41  ;;  %vm533_vm13 = vcmp.eq.f32.partialorder %v2168_v26, 0.0 }
 0x22b   :  { %v599_v47 = vpack.c.bf16 %v596_v45, %v595_v46 }
 0x22d   :  { %1696 = vmatprep.mubr.msk.bf16.mxu0 %vm631_vm14, %v599_v47 }
 0x22e   :  { %1697 = vmatmul.mubr.msk.bf16.vlgmr.msra.gmra.mrb[8].mxu0 %vm631_vm14, %v600_v38  ;;  %vm1485_vm14 = vcmask 547840  }
 0x22f   :  { %1713 = vmatpush3.bf16.msra.mxu0 %v1864_v29 }
 0x230   :  { %1714 = vmatprep.subr.bf16.mxu0 %v1865_v30 }
 0x233   :  { %1715 = vmatpush3.bf16.msra.mxu0 %v1865_v30 }
 0x234   :  { %1716 = vmatprep.subr.bf16.mxu0 %v1866_v31 }
 0x237   :  { %1717 = vmatpush3.bf16.msra.mxu0 %v1866_v31  ;;  %v1877_v31 = vld [vmem:[%s2374_s12 + $0x28] ss:$0 sps:$4 sm:$0x33]  }
 0x238   :  { %1718 = vmatprep.subr.bf16.mxu0 %v1867_v32 }
 0x23b   :  { %1719 = vmatpush3.bf16.msra.mxu0 %v1867_v32 }
 0x301   :  { %v1698_v53 = vpop.f32.mrb[8].mxu0 }
 0x302   :  { %v685_v55 = vadd.f32 %v1698_v53, %v1518_v52  ;;  %v676_v56 = vpop.f32.mrb[9].mxu0 }
 0x303   :  { %v677_v58 = vadd.f32 %v1518_v52, %v676_v56  ;;  %v1699_v59 = vpop.f32.mrb[10].mxu0 }
 0x304   :  { %v1526_v60 = vmul.f32 -1.442695, %v685_v55  ;;  %v688_v61 = vadd.f32 %v1699_v59, %v1518_v52  ;;  %v679_v62 = vpop.f32.mrb[11].mxu0  ;;  %v1082_v59 = vshrl.u32 %v56_v13, 7 }
 0x305   :  { %v1524_v63 = vmul.f32 -1.442695, %v677_v58  ;;  %v680_v0 = vadd.f32 %v1518_v52, %v679_v62 }
 0x306   :  { %1882 = vpow2.f32 %v1526_v60  ;;  %v1527_v1 = vmul.f32 -1.442695, %v688_v61 }
 0x307   :  { %1884 = vpow2.f32 %v1524_v63  ;;  %v1525_v2 = vmul.f32 -1.442695, %v680_v0 }
 0x308   :  { %1886 = vpow2.f32 %v1527_v1 }
 0x309   :  { %1888 = vpow2.f32 %v1525_v2 }
 0x310   :  { %v1883_v3 = vpop.eup %1882 }
 0x311   :  { %v1885_v4 = vpop.eup %1884  ;;  %v705_v7 = vadd.f32 1.0, %v1883_v3 }
 0x312   :  { %v1887_v8 = vpop.eup %1886  ;;  %v703_v9 = vadd.f32 1.0, %v1885_v4 }
 0x313   :  { %v1889_v10 = vpop.eup %1888  ;;  %1890 = vrcp.f32 %v705_v7  ;;  %v706_v11 = vadd.f32 1.0, %v1887_v8  ;;  %v1083_v8 = vadd.s32 8, %v1082_v59 }
 0x314   :  { %1892 = vrcp.f32 %v703_v9  ;;  %v704_v12 = vadd.f32 1.0, %v1889_v10  ;;  %v1868_v10 = vld [vmem:[%s2373_s11] sm:$0xff]  }
 0x315   :  { %1894 = vrcp.f32 %v706_v11  ;;  %1724 = vmatprep.subr.bf16.mxu1 %v1868_v10  ;;  %v1869_v11 = vld [vmem:[%s2373_s11 + $0x8] sm:$0xff]  }
 0x316   :  { %1896 = vrcp.f32 %v704_v12  ;;  %v1870_v12 = vld [vmem:[%s2373_s11 + $0x10] sm:$0xff]  }
 0x31d   :  { %v1891_v14 = vpop.eup %1890 }
 0x31e   :  { %v1893_v15 = vpop.eup %1892  ;;  %v717_v22 = vmul.f32 %v1891_v14, %v685_v55  ;;  %v1871_v14 = vld [vmem:[%s2373_s11 + $0x18] sm:$0xff]  }
 0x31f   :  { %v1895_v19 = vpop.eup %1894  ;;  %v715_v24 = vmul.f32 %v1893_v15, %v677_v58  ;;  %v1872_v15 = vld [vmem:[%s2374_s12] sm:$0xff]  }
 0x320   :  { %v1897_v20 = vpop.eup %1896  ;;  %v718_v23 = vmul.f32 %v1895_v19, %v688_v61  ;;  %v1556_v61 = vld [vmem:[%s2372_s3] ss:$0 sm:$0xff]  ;;  %v1873_v19 = vld [vmem:[%s2374_s12 + $0x8] sm:$0xff]  }
 0x321   :  { %v716_v25 = vmul.f32 %v1897_v20, %v680_v0  ;;  %vm1089_vm0 = vcmp.eq.s32.totalorder %v1082_v59, %v1556_v61  ;;  %vm1090_vm2 = vcmp.eq.s32.totalorder %v1083_v8, %v1556_v61  ;;  %v1874_v20 = vld [vmem:[%s2374_s12 + $0x10] sm:$0xff]  }
 0x322   :  { %v720_v27 = vpack.c.bf16 %v718_v23, %v717_v22  ;;  %v2227_v9 = vsel %vm1089_vm0, 1.0, %v1962_v17  ;;  %v2234_v13 = vsel %vm1090_vm2, 1.0, %v1962_v17  ;;  %v1875_v22 = vld [vmem:[%s2374_s12 + $0x18] sm:$0xff]   ;;  %v1876_v23 = vld [vmem:[%s2374_s12 + $0x20] sm:$0xff]  }
 0x323   :  { %v719_v28 = vpack.c.bf16 %v716_v25, %v715_v24  ;;  %v1539_v24 = vld [vmem:[%s2375_s10] ss:$0 sm:$0xff] }
 0x325   :  { %1708 = vmatprep.mubr.msk.bf16.mxu1 %vm760_vm15, %v719_v28 }
 0x326   :  { %1709 = vmatmul.mubr.msk.bf16.vlgmr.msra.gmra.mrb[8].mxu1 %vm760_vm15, %v720_v27 }
 0x327   :  { %1725 = vmatpush3.bf16.msra.mxu1 %v1868_v10 }
 0x328   :  { %1726 = vmatprep.subr.bf16.mxu1 %v1869_v11 }
 0x32b   :  { %1727 = vmatpush3.bf16.msra.mxu1 %v1869_v11 }
 0x32c   :  { %1728 = vmatprep.subr.bf16.mxu1 %v1870_v12 }
 0x32f   :  { %1729 = vmatpush3.bf16.msra.mxu1 %v1870_v12 }
 0x330   :  { %1730 = vmatprep.subr.bf16.mxu1 %v1871_v14 }
 0x333   :  { %1731 = vmatpush3.bf16.msra.mxu1 %v1871_v14 }
 0x3f9   :  { %v1710_v34 = vpop.f32.mrb[8].mxu1 }
 0x3fa   :  { %v810_v35 = vadd.f32 %v1710_v34, %v1528_v33  ;;  %v801_v38 = vpop.f32.mrb[9].mxu1 }
 0x3fb   :  { %v802_v39 = vadd.f32 %v1528_v33, %v801_v38  ;;  %v1711_v40 = vpop.f32.mrb[10].mxu1 }
 0x3fc   :  { %v1537_v42 = vmul.f32 -1.442695, %v810_v35  ;;  %v813_v41 = vadd.f32 %v1711_v40, %v1528_v33  ;;  %v804_v43 = vpop.f32.mrb[11].mxu1 }
 0x3fd   :  { %v1535_v44 = vmul.f32 -1.442695, %v802_v39  ;;  %v805_v45 = vadd.f32 %v1528_v33, %v804_v43 }
 0x3fe   :  { %1898 = vpow2.f32 %v1537_v42  ;;  %v1538_v46 = vmul.f32 -1.442695, %v813_v41 }
 0x3ff   :  { %1900 = vpow2.f32 %v1535_v44  ;;  %v1536_v47 = vmul.f32 -1.442695, %v805_v45 }
 0x400   :  { %1902 = vpow2.f32 %v1538_v46 }
 0x401   :  { %1904 = vpow2.f32 %v1536_v47 }
 0x408   :  { %v1899_v36 = vpop.eup %1898 }
 0x409   :  { %v1901_v37 = vpop.eup %1900  ;;  %v830_v49 = vadd.f32 1.0, %v1899_v36 }
 0x40a   :  { %v1903_v50 = vpop.eup %1902  ;;  %v828_v52 = vadd.f32 1.0, %v1901_v37 }
 0x40b   :  { %v1905_v53 = vpop.eup %1904  ;;  %1906 = vrcp.f32 %v830_v49  ;;  %v831_v55 = vadd.f32 1.0, %v1903_v50 }
 0x40c   :  { %1908 = vrcp.f32 %v828_v52  ;;  %v829_v56 = vadd.f32 1.0, %v1905_v53 }
 0x40d   :  { %1910 = vrcp.f32 %v831_v55 }
 0x40e   :  { %1912 = vrcp.f32 %v829_v56 }
 0x415   :  { %v1907_v58 = vpop.eup %1906 }
 0x416   :  { %v1909_v60 = vpop.eup %1908  ;;  %v842_v0 = vmul.f32 %v1907_v58, %v810_v35 }
 0x417   :  { %v1911_v62 = vpop.eup %1910  ;;  %v840_v2 = vmul.f32 %v1909_v60, %v802_v39  ;;  %v1332_v39 = vsel %vm1330_vm3, %v1877_v31, 0 }
 0x418   :  { %v1913_v63 = vpop.eup %1912  ;;  %v843_v1 = vmul.f32 %v1911_v62, %v813_v41 }
 0x419   :  { %v841_v3 = vmul.f32 %v1913_v63, %v805_v45 }
 0x41a   :  { %v845_v4 = vpack.c.bf16 %v843_v1, %v842_v0 }
 0x41b   :  { %v844_v7 = vpack.c.bf16 %v841_v3, %v840_v2 }
 0x41d   :  { %1720 = vmatprep.mubr.msk.bf16.mxu0 %vm760_vm15, %v844_v7  ;;  %1803 = vmatprep.subr.bf16.mxu0 %v844_v7 }
 0x41e   :  { %1721 = vmatmul.mubr.msk.bf16.vlgmr.msra.gmra.mrb[12].mxu0 %vm760_vm15, %v845_v4 }
 0x41f   :  { %1805 = vmatpush3.bf16.msra.mxu0 %v844_v7  ;;  %1744 = vmatprep.mubr.msk.f32.mxu0 %vm1095_vm1, %v2227_v9 }
 0x420   :  { %1807 = vmatprep.subr.bf16.mxu0 %v845_v4 }
 0x423   :  { %1809 = vmatpush3.bf16.msra.mxu0 %v845_v4 }
 0x424   :  { %1758 = vmatprep.subr.bf16.mxu0 %v1962_v17 }
 0x426   :  { %1745 = vmatmul.mubr.msk.f32.vlgmr.msra.gmra.mrb[16].mxu0 %vm1095_vm1, %v2234_v13 }
 0x427   :  { %1759 = vmatpush3.bf16.msra.mxu0 %v1872_v15  ;;  %1770 = vmatprep.mubr.msk.bf16.mxu0 %vm1965_vm4, %v1962_v17  ;;  %v1252_v15 = vsel %vm1095_vm1, %v2227_v9, 0.0 }
 0x428   :  { %1760 = vmatprep.subr.bf16.mxu0 %v1962_v17 }
 0x42b   :  { %1761 = vmatpush3.bf16.msra.mxu0 %v1873_v19 }
 0x42c   :  { %1762 = vmatprep.subr.bf16.mxu0 %v1962_v17 }
 0x42f   :  { %1763 = vmatpush3.bf16.msra.mxu0 %v1874_v20 }
 0x430   :  { %1764 = vmatprep.subr.bf16.mxu0 %v1962_v17 }
 0x433   :  { %1765 = vmatpush3.bf16.msra.mxu0 %v1875_v22 }
 0x434   :  { %1766 = vmatprep.subr.bf16.mxu0 %v1962_v17 }
 0x437   :  { %1767 = vmatpush3.bf16.msra.mxu0 %v1876_v23 }
 0x438   :  { %1768 = vmatprep.subr.bf16.mxu0 %v1962_v17 }
 0x43b   :  { %1769 = vmatpush3.bf16.msra.mxu0 %v1332_v39 }
 0x4f1   :  { %v1722_v25 = vpop.f32.mrb[12].mxu0 }
 0x4f2   :  { %v934_v27 = vadd.f32 %v1722_v25, %v1539_v24  ;;  %v925_v28 = vpop.f32.mrb[13].mxu0 }
 0x4f3   :  { %v926_v29 = vadd.f32 %v1539_v24, %v925_v28  ;;  %v1723_v30 = vpop.f32.mrb[14].mxu0 }
 0x4f4   :  { %v1548_v32 = vmul.f32 -1.442695, %v934_v27  ;;  %v937_v33 = vadd.f32 %v1723_v30, %v1539_v24  ;;  %v928_v34 = vpop.f32.mrb[15].mxu0 }
 0x4f5   :  { %v1546_v35 = vmul.f32 -1.442695, %v926_v29  ;;  %v929_v38 = vadd.f32 %v1539_v24, %v928_v34 }
 0x4f6   :  { %1914 = vpow2.f32 %v1548_v32  ;;  %v1549_v40 = vmul.f32 -1.442695, %v937_v33 }
 0x4f7   :  { %1916 = vpow2.f32 %v1546_v35  ;;  %v1547_v42 = vmul.f32 -1.442695, %v929_v38 }
 0x4f8   :  { %1918 = vpow2.f32 %v1549_v40 }
 0x4f9   :  { %1920 = vpow2.f32 %v1547_v42  ;;  %v1746_v41 = vpop.f32.mrb[16].mxu0  ;;  %v513_v42 = vand.u32 2147483648, %v2166_v21 }
 0x4fa   :  { %v1168_v43 = vpop.f32.mrb[17].mxu0 }
 0x4fb   :  { %v1852_v44 = vpack.i.bf16 %v1746_v41, %v1168_v43 }
 0x4fd   :  { %1853 = vrot.lane.b32.xlu1 %v1852_v44, %s1963_s2 }
 0x500   :  { %v1915_v45 = vpop.eup %1914 }
 0x501   :  { %v1917_v46 = vpop.eup %1916  ;;  %v954_v47 = vadd.f32 1.0, %v1915_v45 }
 0x502   :  { %v1919_v36 = vpop.eup %1918  ;;  %v952_v37 = vadd.f32 1.0, %v1917_v46  ;;  %v527_v46 = vand.u32 2147483648, %v2164_v18 }
 0x503   :  { %v1921_v49 = vpop.eup %1920  ;;  %1922 = vrcp.f32 %v954_v47  ;;  %v955_v50 = vadd.f32 1.0, %v1919_v36 }
 0x504   :  { %1924 = vrcp.f32 %v952_v37  ;;  %v953_v52 = vadd.f32 1.0, %v1921_v49 }
 0x505   :  { %1926 = vrcp.f32 %v955_v50 }
 0x506   :  { %1928 = vrcp.f32 %v953_v52 }
 0x507   :  { %1930 = vrsqrt.f32 %v2162_v16 }
 0x508   :  { %1932 = vrsqrt.f32 %v2166_v21 }
 0x509   :  { %1934 = vrsqrt.f32 %v2164_v18 }
 0x50a   :  { %1936 = vrsqrt.f32 %v2168_v26 }
 0x50d   :  { %v1923_v53 = vpop.eup %1922 }
 0x50e   :  { %v1925_v55 = vpop.eup %1924  ;;  %v966_v59 = vmul.f32 %v1923_v53, %v934_v27 }
 0x50f   :  { %v1927_v56 = vpop.eup %1926  ;;  %v964_v61 = vmul.f32 %v1925_v55, %v926_v29 }
 0x510   :  { %v1929_v58 = vpop.eup %1928  ;;  %v967_v60 = vmul.f32 %v1927_v56, %v937_v33 }
 0x511   :  { %v965_v62 = vmul.f32 %v1929_v58, %v929_v38  ;;  %v1931_v27 = vpop.eup %1930  ;;  %v520_v38 = vand.u32 2147483648, %v2162_v16 }
 0x512   :  { %v969_v63 = vpack.c.bf16 %v967_v60, %v966_v59  ;;  %v1933_v28 = vpop.eup %1932  ;;  %v516_v30 = vmul.f32 %v1931_v27, %v2162_v16 }
 0x513   :  { %v968_v0 = vpack.c.bf16 %v965_v62, %v964_v61  ;;  %v1935_v31 = vpop.eup %1934  ;;  %v509_v32 = vmul.f32 %v1933_v28, %v2166_v21 }
 0x514   :  { %v1937_v33 = vpop.eup %1936  ;;  %v518_v34 = vsel %vm517_vm6, %v2162_v16, %v516_v30  ;;  %v523_v35 = vmul.f32 %v1935_v31, %v2164_v18  ;;  %v534_v16 = vand.u32 2147483648, %v2168_v26 }
 0x515   :  { %1732 = vmatprep.mubr.msk.bf16.mxu1 %vm760_vm15, %v968_v0  ;;  %v511_v39 = vsel %vm510_vm7, %v2166_v21, %v509_v32  ;;  %v530_v40 = vmul.f32 %v1937_v33, %v2168_v26  ;;  %v521_v41 = vsel %vm519_vm8, %v520_v38, %v518_v34  ;;  %v1573_v33 = vld [vmem:[%s2378_s15] ss:$0 sm:$0xff]  ;;  %v1958_v38 = vld [vmem:[%s2365_s0 + $0x8] sm:$0xff] }
 0x516   :  { %1733 = vmatmul.mubr.msk.bf16.vlgmr.msra.gmra.mrb[12].mxu1 %vm760_vm15, %v969_v63  ;;  %v525_v44 = vsel %vm524_vm9, %v2164_v18, %v523_v35  ;;  %v514_v45 = vsel %vm512_vm10, %v513_v42, %v511_v39  ;;  %v537_v21 = vadd.f32 1e-30, %v521_v41  ;;  %v1959_v41 = vld [vmem:[%s2365_s0] sm:$0xff] }
 0x517   :  { %1755 = vmatprep.mubr.msk.f32.mxu1 %vm1095_vm1, %v2227_v9  ;;  %v536_v49 = vadd.f32 1e-30, %v514_v45  ;;  %v528_v50 = vsel %vm526_vm12, %v527_v46, %v525_v44 }
 0x518   :  { %v538_v55 = vadd.f32 1e-30, %v528_v50 }
 0x56f   :  { %v1854_v1 = vpop.permute.xlu1 %1853 }
 0x570   :  { %v1856_v2 = vunpack.i.h.bf16 %v1854_v1  ;;  %v1855_v3 = vunpack.i.l.bf16 %v1854_v1 }
 0x572   :  { %v1273_v4 = vsel %vm584_vm11, %v2071_v6, %v1856_v2  ;;  %v1272_v7 = vsel %vm584_vm11, %v2066_v5, %v1855_v3  ;;  %v1255_v6 = vsel %vm1095_vm1, %v2234_v13, 0.0  ;;  %v1563_v5 = vld [vmem:[%s2377_s13] ss:$0 sm:$0xff]  ;;  %vm531_vm11 = vcmp.eq.f32.partialorder %v2168_v26, inf }
 0x573   :  { %v1274_v8 = vpack.c.bf16 %v1273_v4, %v1272_v7  ;;  %v532_v47 = vsel %vm531_vm11, %v2168_v26, %v530_v40 }
 0x574   :  { %v535_v53 = vsel %vm533_vm13, %v534_v16, %v532_v47 }
 0x575   :  { %1771 = vmatmul.mubr.msk.bf16.vlgmr.msra.gmra.mrb[20].mxu0 %vm1326_vm5, %v1274_v8  ;;  %v539_v56 = vadd.f32 1e-30, %v535_v53 }
 0x5e9   :  { %v1734_v10 = vpop.f32.mrb[12].mxu1 }
 0x5ea   :  { %v1042_v11 = vpop.f32.mrb[13].mxu1 }
 0x5eb   :  { %1059 = vperm.xlu0 %1825, %v1042_v11   ;;  %v1735_v12 = vpop.f32.mrb[14].mxu1 }
 0x5ec   :  { %v1045_v14 = vpop.f32.mrb[15].mxu1 }
 0x5ed   :  { %1064 = vperm.xlu1 %1826, %v1045_v14  }
 0x5ef   :  { %1069 = vperm.xlu0 %1825, %v1734_v10  }
 0x5f1   :  { %1074 = vperm.xlu1 %1826, %v1735_v12  }
 0x60e   :  { %1253 = vadd.xlane.f32.xlu0 %v1252_v15 }
 0x615   :  { %1256 = vadd.xlane.f32.xlu1 %v1255_v6 }
 0x648   :  { %v1368_v19 = vpop.f32.mrb[20].mxu0 }
 0x649   :  { %v1369_v20 = vadd.f32 %v1563_v5, %v1368_v19  ;;  %v1772_v9 = vpop.f32.mrb[21].mxu0 }
 0x64a   :  { %v1371_v22 = vpop.f32.mrb[22].mxu0 }
 0x64b   :  { %v1571_v23 = vmul.f32 -1.442695, %v1369_v20  ;;  %v1372_v24 = vadd.f32 %v1563_v5, %v1371_v22  ;;  %v1773_v25 = vpop.f32.mrb[23].mxu0 }
 0x64d   :  { %1938 = vpow2.f32 %v1571_v23  ;;  %v1572_v29 = vmul.f32 -1.442695, %v1372_v24 }
 0x64f   :  { %1940 = vpow2.f32 %v1572_v29 }
 0x657   :  { %v1939_v43 = vpop.eup %1938 }
 0x658   :  { %v1381_v36 = vadd.f32 1.0, %v1939_v43 }
 0x659   :  { %v1941_v37 = vpop.eup %1940 }
 0x65a   :  { %1942 = vrcp.f32 %v1381_v36  ;;  %v1382_v52 = vadd.f32 1.0, %v1941_v37 }
 0x65c   :  { %1944 = vrcp.f32 %v1382_v52 }
 0x65d   :  { %1946 = vrcp.f32 %v537_v21 }
 0x65e   :  { %1948 = vrcp.f32 %v536_v49 }
 0x65f   :  { %1950 = vrcp.f32 %v538_v55 }
 0x660   :  { %1952 = vrcp.f32 %v539_v56 }
 0x664   :  { %v1943_v58 = vpop.eup %1942 }
 0x665   :  { %v1387_v59 = vmul.f32 %v1943_v58, %v1369_v20 }
 0x666   :  { %v1945_v18 = vpop.eup %1944 }
 0x667   :  { %v1947_v60 = vpop.eup %1946  ;;  %v1388_v61 = vmul.f32 %v1945_v18, %v1372_v24 }
 0x668   :  { %v1949_v62 = vpop.eup %1948  ;;  %v543_v2 = vmul.f32 %v1947_v60, %v2125_v48  ;;  %v1878_v48 = vld [vmem:[%s2376_s14] sm:$0xff]  }
 0x669   :  { %v1389_v26 = vpack.c.bf16 %v1388_v61, %v1387_v59  ;;  %v1951_v0 = vpop.eup %1950  ;;  %v541_v1 = vmul.f32 %v1949_v62, %v2127_v51  ;;  %v1879_v51 = vld [vmem:[%s2376_s14 + $0x8] sm:$0xff]  }
 0x66a   :  { %v1060_v63 = vpop.permute.xlu0 %1059  ;;  %v1953_v3 = vpop.eup %1952  ;;  %v545_v12 = vmul.f32 %v1951_v0, %v2131_v57  ;;  %v1881_v57 = vld [vmem:[%s2376_s14 + $0x18] sm:$0xff]  }
 0x66b   :  { %v1077_v7 = vmul.f32 %v1060_v63, %v541_v1  ;;  %v547_v14 = vmul.f32 %v1953_v3, %v2129_v54  ;;  %v1880_v54 = vld [vmem:[%s2376_s14 + $0x10] sm:$0xff]  }
 0x66c   :  { %v1065_v4 = vpop.permute.xlu1 %1064 }
 0x66d   :  { %v1078_v8 = vmul.f32 %v1065_v4, %v543_v2 }
 0x66e   :  { %v1070_v10 = vpop.permute.xlu0 %1069 }
 0x66f   :  { %v1810_v11 = vpack.c.bf16 %v1078_v8, %v1077_v7  ;;  %v1079_v6 = vmul.f32 %v1070_v10, %v545_v12 }
 0x670   :  { %v1075_v15 = vpop.permute.xlu1 %1074 }
 0x671   :  { %v1080_v5 = vmul.f32 %v1075_v15, %v547_v14  ;;  %1811 = vmatprep.subr.bf16.mxu1 %v1810_v11 }
 0x672   :  { %1813 = vmatpush3.bf16.msra.mxu1 %v1810_v11 }
 0x673   :  { %v1814_v19 = vpack.c.bf16 %v1080_v5, %v1079_v6 }
 0x675   :  { %1815 = vmatprep.subr.bf16.mxu1 %v1814_v19 }
 0x676   :  { %1817 = vmatpush3.bf16.msra.mxu1 %v1814_v19 }
 0x677   :  { %1774 = vmatprep.subr.bf16.mxu1 %v1962_v17 }
 0x679   :  { %1756 = vmatmul.mubr.msk.f32.vlgmr.msra.gmra.mrb[16].mxu1 %vm1095_vm1, %v2234_v13 }
 0x67a   :  { %1775 = vmatpush3.bf16.msra.mxu1 %v1878_v48  ;;  %1782 = vmatprep.mubr.msk.bf16.mxu1 %vm1965_vm4, %v1962_v17 }
 0x67b   :  { %1776 = vmatprep.subr.bf16.mxu1 %v1962_v17 }
 0x67e   :  { %1777 = vmatpush3.bf16.msra.mxu1 %v1879_v51 }
 0x67f   :  { %1778 = vmatprep.subr.bf16.mxu1 %v1962_v17 }
 0x682   :  { %1779 = vmatpush3.bf16.msra.mxu1 %v1880_v54 }
 0x683   :  { %1780 = vmatprep.subr.bf16.mxu1 %v1962_v17 }
 0x686   :  { %1781 = vmatpush3.bf16.msra.mxu1 %v1881_v57 }
 0x689   :  { %1783 = vmatmul.mubr.msk.bf16.vlgmr.msra.gmra.mrb[20].mxu1 %vm760_vm15, %v1389_v26 }
 0x69b   :  { %v1254_v20 = vpop.xlane.xlu0 %1253 }
 0x69c   :  { %v1258_v22 = vmax.f32 %v1254_v20, 1.0 }
 0x6a2   :  { %v1257_v13 = vpop.xlane.xlu1 %1256 }
 0x6a3   :  { %v1259_v9 = vmax.f32 %v1257_v13, 1.0 }
 0x6a5   :  { %1954 = vrcp.f32 %v1259_v9 }
 0x6a6   :  { %1956 = vrcp.f32 %v1258_v22 }
 0x6af   :  { %v1955_v23 = vpop.eup %1954 }
 0x6b0   :  { %v1957_v24 = vpop.eup %1956 }
 0x74c   :  { %v1757_v25 = vpop.f32.mrb[16].mxu1 }
 0x74d   :  { %v1263_v27 = vmul.f32 %v1955_v23, %v1757_v25  ;;  %v1243_v28 = vpop.f32.mrb[17].mxu1 }
 0x74e   :  { %v1261_v29 = vmul.f32 %v1957_v24, %v1243_v28 }
 0x74f   :  { %1477 = vrot.lane.b32.xlu1 %v1263_v27, %s1961_s28 }
 0x750   :  { %1475 = vrot.lane.b32.xlu0 %v1261_v29, %s1961_s28 }
 0x75c   :  { %v1466_v17 = vpop.f32.mrb[20].mxu1 }
 0x75d   :  { %v1784_v30 = vpop.f32.mrb[21].mxu1  ;;  %v1467_v42 = vadd.f32 %v1573_v33, %v1466_v17 }
 0x75e   :  { %v1469_v31 = vpop.f32.mrb[22].mxu1 }
 0x75f   :  { %v1785_v32 = vpop.f32.mrb[23].mxu1  ;;  %v1470_v35 = vadd.f32 %v1573_v33, %v1469_v31 }
 0x7c1   :  { %v1478_v34 = vpop.permute.xlu1 %1477 }
 0x7c2   :  { %v1482_v39 = vadd.f32 %v1958_v38, %v1478_v34  ;;  %v1476_v40 = vpop.permute.xlu0 %1475 }
 0x7c3   :  { %v1481_v43 = vadd.f32 %v1959_v41, %v1476_v40 }
 0x7c4   :  { %v1484_v44 = vsel %vm760_vm15, %v1470_v35, %v1482_v39 }
 0x7c5   :  { %v1487_v45 = vsel %vm1485_vm14, %v1484_v44, 0.0  ;;  %v1483_v46 = vsel %vm760_vm15, %v1467_v42, %v1481_v43 }
 0x7c6   :  { %1489 = vst [vmem:[%s2379_s16 + $0x8] sm:$0xff] %v1487_v45  ;;  %v1486_v47 = vsel %vm1485_vm14, %v1483_v46, 0.0 }
 0x7c7   :  { %1488 = vst [vmem:[%s2379_s16] sm:$0xff] %v1486_v47 }

// kernel: forward.6
= control target key start
LH: loop header
LB: loop body
LE: loop exit
PB: predicated region body
PF: predicated region fallthrough
CT: control target
= control target key end

     0   :  { %v2017_v0 = vmov 0   ;;  %s2018_s27 = smov 64   ;;  %s2019_s17 = smov 1   ;;  %v56_v16 = vlaneseq  ;;  %vm114_vm0 = vcmask 130048   ;;  %v2020_v20 = vmov 0.0   ;;  %s2455_s1 = inlined_call_operand.vmem [shape: s32[32,1], index: 1, kind: input, shape index: {}]   ;;  %s2456_s0 = inlined_call_operand.vmem [shape: f32[16,128], index: 0, kind: input, shape index: {}]   ;;  %s2457_s2 = inlined_call_operand.vmem [shape: s32[32,1], index: 2, kind: input, shape index: {}]   ;;  %s2458_s4 = inlined_call_operand.vmem [shape: f32[32,1], index: 4, kind: input, shape index: {}]   ;;  %s2459_s5 = inlined_call_operand.vmem [shape: bf16[130,64], index: 5, kind: input, shape index: {}]   ;;  %s2460_s7 = inlined_call_operand.vmem [shape: bf16[64,64], index: 7, kind: input, shape index: {}]   ;;  %s2461_s6 = inlined_call_operand.vmem [shape: f32[1,64], index: 6, kind: input, shape index: {}]   ;;  %s2462_s9 = inlined_call_operand.vmem [shape: bf16[64,64], index: 9, kind: input, shape index: {}]   ;;  %s2463_s3 = inlined_call_operand.vmem [shape: s32[1,32], index: 3, kind: input, shape index: {}]   ;;  %s2464_s8 = inlined_call_operand.vmem [shape: f32[1,64], index: 8, kind: input, shape index: {}]   ;;  %s2465_s11 = inlined_call_operand.vmem [shape: bf16[64,1], index: 11, kind: input, shape index: {}]   ;;  %s2466_s12 = inlined_call_operand.vmem [shape: bf16[128,64], index: 12, kind: input, shape index: {}]   ;;  %s2467_s10 = inlined_call_operand.vmem [shape: f32[1,64], index: 10, kind: input, shape index: {}]   ;;  %s2468_s14 = inlined_call_operand.vmem [shape: bf16[64,64], index: 14, kind: input, shape index: {}]   ;;  %s2469_s13 = inlined_call_operand.vmem [shape: f32[1,64], index: 13, kind: input, shape index: {}]   ;;  %s2470_s15 = inlined_call_operand.vmem [shape: f32[1,64], index: 15, kind: input, shape index: {}]   ;;  %s2471_s16 = inlined_call_operand.vmem [shape: f32[16,128], index: 16, kind: output, shape index: {}]  }
   0x1   :  { %2473 = sst [smem:[#allocation2_spill]] %s2455_s1  ;;  %1875 = vset.pattern.permute.xlu1 %v2017_v0  ;;  %1874 = vset.pattern.permute.xlu0 %v2017_v0  ;;  %v2124_v5 = vld [vmem:[%s2456_s0] sm:$0xff]  ;;  %v2129_v6 = vld [vmem:[%s2456_s0 + $0x8] sm:$0xff]  ;;  %v89_v10 = vld [vmem:[%s2457_s2 + $0x18] sm:$0xff]  ;;  %vm495_vm9 = vcmask 23552   ;;  %vm680_vm10 = vcmask 1040384  }
   0x2   :  { %s2474_s23 = sld [smem:[#allocation2_spill]]  ;;  %v1837_v7 = vpack.c.bf16 %v2129_v6, %v2124_v5  ;;  %v87_v8 = vld [vmem:[%s2457_s2 + $0x8] sm:$0xff]  ;;  %v86_v9 = vld [vmem:[%s2457_s2] sm:$0xff]  ;;  %v88_v11 = vld [vmem:[%s2457_s2 + $0x10] sm:$0xff]  ;;  %v1876_v12 = vpack.i.bf16 %v2129_v6, %v2124_v5  ;;  %v57_v17 = vand.u32 127, %v56_v16  ;;  %vm584_vm11 = vcmask 523264  }
   0x3   :  { %v548_v13 = vld [vmem:[%s2458_s4] sm:$0xff]  ;;  %v549_v14 = vld [vmem:[%s2458_s4 + $0x8] sm:$0xff]  ;;  %vm589_vm12 = vcmask 7168   ;;  %vm673_vm13 = vcmask 15360   ;;  %vm1136_vm14 = vcmask 261120  }
   0x4   :  { %1838 = vmatprep.subr.bf16.mxu1 %v1837_v7  ;;  %v1881_v15 = vpack.i.bf16 %v549_v14, %v548_v13  ;;  %v1906_v41 = vld [vmem:[%s2459_s5] sm:$0xff]   ;;  %v1907_v44 = vld [vmem:[%s2459_s5 + $0x8] sm:$0xff]   ;;  %v1912_v14 = vld [vmem:[%s2459_s5 + $0x30] sm:$0xff]  }
   0x5   :  { %1840 = vmatpush3.bf16.msra.mxu1 %v1837_v7 }
   0x6   :  { %1842 = vmatprep.subr.bf16.mxu1 %v1837_v7 }
   0x8   :  { %v60_v1 = vld [vmem:[%s2474_s23 + $0x10] sm:$0xff]  ;;  %v58_v2 = vld [vmem:[%s2474_s23] sm:$0xff]  ;;  %v61_v3 = vld [vmem:[%s2474_s23 + $0x18] sm:$0xff] }
   0x9   :  { %69 = vperm.xlu1 %1875, %v60_v1   ;;  %63 = vperm.xlu0 %1874, %v58_v2   ;;  %v59_v4 = vld [vmem:[%s2474_s23 + $0x8] sm:$0xff] }
   0xd   :  { %72 = vperm.xlu1 %1875, %v61_v3   ;;  %66 = vperm.xlu0 %1874, %v59_v4   ;;  %v1908_v4 = vld [vmem:[%s2459_s5 + $0x10] sm:$0xff]  }
  0x11   :  { %94 = vperm.xlu1 %1875, %v87_v8   ;;  %91 = vperm.xlu0 %1874, %v86_v9   ;;  %v1910_v9 = vld [vmem:[%s2459_s5 + $0x20] sm:$0xff]  }
  0x15   :  { %100 = vperm.xlu1 %1875, %v89_v10   ;;  %97 = vperm.xlu0 %1874, %v88_v11  }
  0x19   :  { %1877 = vrot.lane.b32.xlu0 %v1876_v12, %s2018_s27  ;;  %v1911_v12 = vld [vmem:[%s2459_s5 + $0x28] sm:$0xff]  }
  0x1d   :  { %1882 = vrot.lane.b32.xlu0 %v1881_v15, %s2019_s17  ;;  %v1913_v15 = vld [vmem:[%s2459_s5 + $0x38] sm:$0xff]  }
  0x88   :  { %v70_v18 = vpop.permute.xlu1 %69  ;;  %v64_v19 = vpop.permute.xlu0 %63 }
  0x89   :  { %vm74_vm1 = vcmp.eq.s32.totalorder %v57_v17, %v64_v19  ;;  %vm76_vm2 = vcmp.eq.s32.totalorder %v57_v17, %v70_v18  ;;  %v550_v18 = vld [vmem:[%s2458_s4 + $0x10] sm:$0xff]  ;;  %v551_v19 = vld [vmem:[%s2458_s4 + $0x18] sm:$0xff] }
  0x8a   :  { %v1547_v21 = vsel %vm74_vm1, 1.0, %v2020_v20  ;;  %v1549_v24 = vsel %vm76_vm2, 1.0, %v2020_v20  ;;  %vm2021_vm1 = vmmov 0  }
  0x8b   :  { %1711 = vmatprep.mubr.msk.f32.mxu1 %vm114_vm0, %v1547_v21  ;;  %1731 = vmatprep.mubr.msk.f32.mxu0 %vm114_vm0, %v1547_v21 }
  0x8c   :  { %v73_v22 = vpop.permute.xlu1 %72  ;;  %v67_v23 = vpop.permute.xlu0 %66 }
  0x8d   :  { %vm75_vm3 = vcmp.eq.s32.totalorder %v57_v17, %v67_v23  ;;  %vm77_vm4 = vcmp.eq.s32.totalorder %v57_v17, %v73_v22  ;;  %v1891_v22 = vpack.i.bf16 %v551_v19, %v550_v18 }
  0x8e   :  { %v1548_v25 = vsel %vm75_vm3, 1.0, %v2020_v20  ;;  %v1550_v28 = vsel %vm77_vm4, 1.0, %v2020_v20 }
  0x8f   :  { %1712 = vmatmul.mubr.msk.f32.vlgmr.msra.gmra.mrb[0].mxu1 %vm114_vm0, %v1548_v25 }
  0x90   :  { %v95_v26 = vpop.permute.xlu1 %94  ;;  %v92_v27 = vpop.permute.xlu0 %91  ;;  %1714 = vmatprep.mubr.msk.f32.mxu1 %vm114_vm0, %v1549_v24  ;;  %1844 = vmatpush3.bf16.msra.mxu1 %v1837_v7  ;;  %v1909_v7 = vld [vmem:[%s2459_s5 + $0x18] sm:$0xff]  }
  0x91   :  { %vm102_vm5 = vcmp.eq.s32.totalorder %v57_v17, %v92_v27  ;;  %vm103_vm6 = vcmp.eq.s32.totalorder %v57_v17, %v95_v26 }
  0x92   :  { %v1551_v29 = vsel %vm102_vm5, 1.0, %v2020_v20  ;;  %v1552_v32 = vsel %vm103_vm6, 1.0, %v2020_v20 }
  0x93   :  { %1715 = vmatmul.mubr.msk.f32.gmra.mrb[2].mxu1 %vm114_vm0, %v1550_v28 }
  0x94   :  { %v101_v30 = vpop.permute.xlu1 %100  ;;  %v98_v31 = vpop.permute.xlu0 %97  ;;  %1721 = vmatprep.mubr.msk.f32.mxu1 %vm114_vm0, %v1551_v29 }
  0x95   :  { %vm104_vm7 = vcmp.eq.s32.totalorder %v57_v17, %v98_v31  ;;  %vm105_vm8 = vcmp.eq.s32.totalorder %v57_v17, %v101_v30  ;;  %v1914_v17 = vld [vmem:[%s2459_s5 + $0x40] ss:$0 sps:$4 sm:$0x11]  }
  0x96   :  { %v1553_v33 = vsel %vm104_vm7, 1.0, %v2020_v20  ;;  %v1554_v37 = vsel %vm105_vm8, 1.0, %v2020_v20  ;;  %v682_v21 = vsel %vm680_vm10, %v1914_v17, 0  ;;  %vm1538_vm10 = vcmask 547840  }
  0x97   :  { %1722 = vmatmul.mubr.msk.f32.vlgmr.msra.gmra.mrb[4].mxu1 %vm114_vm0, %v1552_v32 }
  0x98   :  { %v1878_v34 = vpop.permute.xlu0 %1877  ;;  %1724 = vmatprep.mubr.msk.f32.mxu1 %vm114_vm0, %v1553_v33 }
  0x99   :  { %v1880_v35 = vunpack.i.h.bf16 %v1878_v34  ;;  %v1879_v36 = vunpack.i.l.bf16 %v1878_v34 }
  0x9b   :  { %v1845_v38 = vpack.c.bf16 %v1880_v35, %v1879_v36  ;;  %1725 = vmatmul.mubr.msk.f32.gmra.mrb[6].mxu1 %vm114_vm0, %v1554_v37 }
  0x9c   :  { %1741 = vmatprep.mubr.msk.f32.mxu1 %vm114_vm0, %v1551_v29 }
  0x9d   :  { %1846 = vmatprep.subr.bf16.mxu0 %v1845_v38  ;;  %1850 = vmatprep.subr.bf16.mxu1 %v1845_v38 }
  0x9e   :  { %1848 = vmatpush3.bf16.msra.mxu0 %v1845_v38  ;;  %1852 = vmatpush3.bf16.msra.mxu1 %v1845_v38 }
  0x9f   :  { %684 = vmatprep.subr.bf16.mxu0 %v2017_v0 }
  0xa1   :  { %1732 = vmatmul.mubr.msk.f32.vlgmr.msra.gmra.mrb[0].mxu0 %vm114_vm0, %v1548_v25  ;;  %1742 = vmatmul.mubr.msk.f32.vlgmr.msra.gmra.mrb[8].mxu1 %vm114_vm0, %v1552_v32 }
  0xa2   :  { %1734 = vmatprep.mubr.msk.f32.mxu0 %vm114_vm0, %v1549_v24  ;;  %1744 = vmatprep.mubr.msk.f32.mxu1 %vm114_vm0, %v1553_v33 }
  0xa3   :  { %685 = vmatpush1.bf16.msra.mxu0 %v1906_v41 }
  0xa4   :  { %686 = vmatprep.subr.bf16.mxu0 %v2017_v0 }
  0xa5   :  { %1735 = vmatmul.mubr.msk.f32.gmra.mrb[2].mxu0 %vm114_vm0, %v1550_v28  ;;  %1745 = vmatmul.mubr.msk.f32.gmra.mrb[10].mxu1 %vm114_vm0, %v1554_v37  ;;  %v1883_v28 = vpop.permute.xlu0 %1882 }
  0xa6   :  { %v1885_v37 = vunpack.i.h.bf16 %v1883_v28  ;;  %v1884_v38 = vunpack.i.l.bf16 %v1883_v28 }
  0xa7   :  { %687 = vmatpush1.bf16.msra.mxu0 %v1907_v44 }
  0xa8   :  { %688 = vmatprep.subr.bf16.mxu0 %v2017_v0 }
  0xab   :  { %689 = vmatpush1.bf16.msra.mxu0 %v1908_v4 }
  0xac   :  { %690 = vmatprep.subr.bf16.mxu0 %v2017_v0 }
  0xaf   :  { %691 = vmatpush1.bf16.msra.mxu0 %v1909_v7 }
  0xb0   :  { %692 = vmatprep.subr.bf16.mxu0 %v2017_v0 }
  0xb3   :  { %693 = vmatpush1.bf16.msra.mxu0 %v1910_v9 }
  0xb4   :  { %694 = vmatprep.subr.bf16.mxu0 %v2017_v0 }
  0xb7   :  { %695 = vmatpush1.bf16.msra.mxu0 %v1911_v12 }
  0xb8   :  { %696 = vmatprep.subr.bf16.mxu0 %v2017_v0 }
  0xbb   :  { %697 = vmatpush1.bf16.msra.mxu0 %v1912_v14 }
  0xbc   :  { %698 = vmatprep.subr.bf16.mxu0 %v2017_v0 }
  0xbf   :  { %699 = vmatpush1.bf16.msra.mxu0 %v1913_v15 }
  0xc0   :  { %700 = vmatprep.subr.bf16.mxu0 %v2017_v0 }
  0xc3   :  { %701 = vmatpush1.bf16.msra.mxu0 %v682_v21 }
 0x162   :  { %v2181_v39 = vpop.f32.mrb[0].mxu1 }
 0x163   :  { %v2183_v40 = vpop.f32.mrb[1].mxu1 }
 0x166   :  { %v2188_v42 = vpop.f32.mrb[2].mxu1 }
 0x167   :  { %v2190_v43 = vpop.f32.mrb[3].mxu1 }
 0x16a   :  { %v1723_v45 = vpop.f32.mrb[4].mxu1 }
 0x16b   :  { %v290_v46 = vpop.f32.mrb[5].mxu1 }
 0x16c   :  { %v1886_v47 = vpack.i.bf16 %v1723_v45, %v290_v46 }
 0x16e   :  { %1887 = vrot.lane.b32.xlu1 %v1886_v47, %s2018_s27  ;;  %v1726_v48 = vpop.f32.mrb[6].mxu1 }
 0x16f   :  { %v300_v49 = vpop.f32.mrb[7].mxu1 }
 0x170   :  { %v1896_v50 = vpack.i.bf16 %v1726_v48, %v300_v49 }
 0x174   :  { %v1733_v51 = vpop.f32.mrb[0].mxu0  ;;  %v1743_v52 = vpop.f32.mrb[8].mxu1 }
 0x175   :  { %v2198_v53 = vsub.f32 %v1733_v51, %v1743_v52  ;;  %v383_v54 = vpop.f32.mrb[1].mxu0  ;;  %v468_v55 = vpop.f32.mrb[9].mxu1  ;;  %v1916_v51 = vld [vmem:[%s2460_s7 + $0x8] sm:$0xff]   ;;  %v1917_v52 = vld [vmem:[%s2460_s7 + $0x10] sm:$0xff]  }
 0x176   :  { %v2200_v56 = vsub.f32 %v383_v54, %v468_v55  ;;  %v1918_v54 = vld [vmem:[%s2460_s7 + $0x18] sm:$0xff]   ;;  %v1571_v55 = vld [vmem:[%s2461_s6] ss:$0 sm:$0xff] }
 0x177   :  { %v492_v57 = vmul.f32 %v2198_v53, %v2198_v53 }
 0x178   :  { %v1736_v58 = vpop.f32.mrb[2].mxu0  ;;  %v1746_v59 = vpop.f32.mrb[10].mxu1  ;;  %v491_v8 = vmul.f32 %v2200_v56, %v2200_v56 }
 0x179   :  { %v2204_v60 = vsub.f32 %v1736_v58, %v1746_v59  ;;  %v393_v61 = vpop.f32.mrb[3].mxu0  ;;  %v478_v62 = vpop.f32.mrb[11].mxu1  ;;  %v499_v63 = vsel %vm495_vm9, %v492_v57, 0.0 }
 0x17a   :  { %v2207_v1 = vsub.f32 %v393_v61, %v478_v62  ;;  %500 = vadd.xlane.f32.xlu0 %v499_v63  ;;  %v496_v10 = vsel %vm495_vm9, %v491_v8, 0.0 }
 0x17b   :  { %v494_v11 = vmul.f32 %v2204_v60, %v2204_v60 }
 0x17c   :  { %v493_v2 = vmul.f32 %v2207_v1, %v2207_v1 }
 0x17d   :  { %v505_v13 = vsel %vm495_vm9, %v494_v11, 0.0 }
 0x17e   :  { %v502_v3 = vsel %vm495_vm9, %v493_v2, 0.0 }
 0x17f   :  { %503 = vadd.xlane.f32.xlu0 %v502_v3 }
 0x192   :  { %497 = vadd.xlane.f32.xlu1 %v496_v10 }
 0x195   :  { %1897 = vrot.lane.b32.xlu0 %v1896_v50, %s2018_s27  ;;  %v1915_v50 = vld [vmem:[%s2460_s7] sm:$0xff]  }
 0x196   :  { %506 = vadd.xlane.f32.xlu1 %v505_v13  ;;  %1747 = vmatprep.subr.bf16.mxu1 %v1915_v50 }
 0x197   :  { %1748 = vmatpush3.bf16.msra.mxu1 %v1915_v50 }
 0x198   :  { %1749 = vmatprep.subr.bf16.mxu1 %v1916_v51 }
 0x19b   :  { %1750 = vmatpush3.bf16.msra.mxu1 %v1916_v51 }
 0x19c   :  { %1751 = vmatprep.subr.bf16.mxu1 %v1917_v52 }
 0x19f   :  { %1752 = vmatpush3.bf16.msra.mxu1 %v1917_v52 }
 0x1a0   :  { %1753 = vmatprep.subr.bf16.mxu1 %v1918_v54 }
 0x1a3   :  { %1754 = vmatpush3.bf16.msra.mxu1 %v1918_v54 }
 0x1a7   :  { %1892 = vrot.lane.b32.xlu1 %v1891_v22, %s2019_s17 }
 0x1e0   :  { %v1888_v0 = vpop.permute.xlu1 %1887 }
 0x1e1   :  { %v1890_v23 = vunpack.i.h.bf16 %v1888_v0  ;;  %v1889_v24 = vunpack.i.l.bf16 %v1888_v0 }
 0x1e3   :  { %v586_v25 = vsel %vm584_vm11, %v2181_v39, %v1890_v23  ;;  %v585_v26 = vsel %vm584_vm11, %v2183_v40, %v1889_v24 }
 0x1e4   :  { %v594_v27 = vpack.c.bf16 %v586_v25, %v585_v26 }
 0x207   :  { %v2257_v29 = vpop.xlane.xlu0 %500 }
 0x208   :  { %v591_v41 = vsel %vm589_vm12, %v2257_v29, %v1885_v37  ;;  %v1921_v37 = vld [vmem:[%s2462_s9 + $0x10] sm:$0xff]   ;;  %vm517_vm2 = vcmp.eq.f32.partialorder %v2257_v29, inf  ;;  %vm519_vm4 = vcmp.eq.f32.partialorder %v2257_v29, 0.0 }
 0x20c   :  { %v2259_v30 = vpop.xlane.xlu0 %503 }
 0x20d   :  { %vm524_vm5 = vcmp.eq.f32.partialorder %v2259_v30, inf  ;;  %vm526_vm8 = vcmp.eq.f32.partialorder %v2259_v30, 0.0 }
 0x210   :  { %v1898_v31 = vpop.permute.xlu0 %1897 }
 0x211   :  { %v1900_v32 = vunpack.i.h.bf16 %v1898_v31  ;;  %v1899_v33 = vunpack.i.l.bf16 %v1898_v31 }
 0x213   :  { %v587_v34 = vsel %vm584_vm11, %v2190_v43, %v1899_v33  ;;  %v588_v35 = vsel %vm584_vm11, %v2188_v42, %v1900_v32 }
 0x214   :  { %v596_v36 = vpack.c.bf16 %v588_v35, %v587_v34  ;;  %v1919_v35 = vld [vmem:[%s2462_s9] sm:$0xff]  }
 0x215   :  { %1759 = vmatprep.subr.bf16.mxu1 %v1919_v35 }
 0x21f   :  { %v2265_v39 = vpop.xlane.xlu1 %497 }
 0x220   :  { %v590_v40 = vsel %vm589_vm12, %v2265_v39, %v1884_v38  ;;  %v1922_v38 = vld [vmem:[%s2462_s9 + $0x18] sm:$0xff]   ;;  %vm510_vm3 = vcmp.eq.f32.partialorder %v2265_v39, inf  ;;  %vm512_vm6 = vcmp.eq.f32.partialorder %v2265_v39, 0.0 }
 0x221   :  { %v595_v44 = vpack.c.bf16 %v591_v41, %v590_v40  ;;  %v1123_v40 = vshrl.u32 %v56_v16, 7  ;;  %v1615_v41 = vld [vmem:[%s2463_s3] ss:$0 sm:$0xff] }
 0x223   :  { %v2269_v45 = vpop.xlane.xlu1 %506  ;;  %1581 = vmatprep.mubr.msk.bf16.mxu0 %vm673_vm13, %v595_v44  ;;  %v1124_v44 = vadd.s32 8, %v1123_v40  ;;  %vm1130_vm15 = vcmp.eq.s32.totalorder %v1123_v40, %v1615_v41 }
 0x224   :  { %717 = vmatmul.mubr.bf16.vlgmr.msra.gmra.mrb[4].mxu0 %v594_v27  ;;  %vm531_vm7 = vcmp.eq.f32.partialorder %v2269_v45, inf  ;;  %vm533_vm9 = vcmp.eq.f32.partialorder %v2269_v45, 0.0 }
 0x225   :  { %vm1131_vm0 = vcmp.eq.s32.totalorder %v1124_v44, %v1615_v41 }
 0x227   :  { %v1893_v43 = vpop.permute.xlu1 %1892 }
 0x228   :  { %v1895_v46 = vunpack.i.h.bf16 %v1893_v43  ;;  %v1894_v47 = vunpack.i.l.bf16 %v1893_v43  ;;  %v2307_v43 = vsel %vm1130_vm15, 1.0, %v2020_v20 }
 0x22a   :  { %v593_v42 = vsel %vm589_vm12, %v2269_v45, %v1895_v46  ;;  %v592_v48 = vsel %vm589_vm12, %v2259_v30, %v1894_v47  ;;  %v1587_v46 = vld [vmem:[%s2464_s8] ss:$0 sm:$0xff] }
 0x22b   :  { %v597_v49 = vpack.c.bf16 %v593_v42, %v592_v48 }
 0x22d   :  { %1582 = vmatprep.mubr.msk.bf16.mxu0 %vm673_vm13, %v597_v49 }
 0x22e   :  { %725 = vmatmul.mubr.bf16.gmra.mrb[8].mxu0 %v596_v36  ;;  %v1920_v36 = vld [vmem:[%s2462_s9 + $0x8] sm:$0xff]  }
 0x22f   :  { %1791 = vmatprep.mubr.msk.f32.mxu0 %vm1136_vm14, %v2307_v43 }
 0x2f7   :  { %v718_v57 = vpop.f32.mrb[4].mxu0 }
 0x2f8   :  { %v719_v58 = vadd.f32 %v1571_v55, %v718_v57  ;;  %v720_v59 = vpop.f32.mrb[5].mxu0 }
 0x2f9   :  { %v721_v61 = vpop.f32.mrb[6].mxu0 }
 0x2fa   :  { %v1583_v62 = vmul.f32 -1.442695, %v719_v58  ;;  %v722_v63 = vadd.f32 %v1571_v55, %v721_v61  ;;  %v723_v2 = vpop.f32.mrb[7].mxu0 }
 0x2fc   :  { %1939 = vpow2.f32 %v1583_v62  ;;  %v1584_v3 = vmul.f32 -1.442695, %v722_v63 }
 0x2fe   :  { %1941 = vpow2.f32 %v1584_v3 }
 0x301   :  { %v726_v4 = vpop.f32.mrb[8].mxu0 }
 0x302   :  { %v727_v7 = vadd.f32 %v1571_v55, %v726_v4  ;;  %v728_v8 = vpop.f32.mrb[9].mxu0 }
 0x303   :  { %v729_v9 = vpop.f32.mrb[10].mxu0 }
 0x304   :  { %v1585_v10 = vmul.f32 -1.442695, %v727_v7  ;;  %v730_v11 = vadd.f32 %v1571_v55, %v729_v9  ;;  %v731_v12 = vpop.f32.mrb[11].mxu0 }
 0x306   :  { %1943 = vpow2.f32 %v1585_v10  ;;  %v1586_v13 = vmul.f32 -1.442695, %v730_v11  ;;  %v1940_v14 = vpop.eup %1939 }
 0x307   :  { %v745_v15 = vadd.f32 1.0, %v1940_v14 }
 0x308   :  { %1945 = vpow2.f32 %v1586_v13  ;;  %v1942_v17 = vpop.eup %1941 }
 0x309   :  { %1947 = vrcp.f32 %v745_v15  ;;  %v746_v18 = vadd.f32 1.0, %v1942_v17 }
 0x30b   :  { %1949 = vrcp.f32 %v746_v18 }
 0x310   :  { %v1944_v19 = vpop.eup %1943 }
 0x311   :  { %v747_v21 = vadd.f32 1.0, %v1944_v19  ;;  %v2318_v19 = vsel %vm1131_vm0, 1.0, %v2020_v20 }
 0x312   :  { %v1946_v22 = vpop.eup %1945 }
 0x313   :  { %1951 = vrcp.f32 %v747_v21  ;;  %v748_v0 = vadd.f32 1.0, %v1946_v22  ;;  %v1948_v23 = vpop.eup %1947  ;;  %v1923_v21 = vld [vmem:[%s2465_s11] sm:$0xff]   ;;  %v1924_v22 = vld [vmem:[%s2465_s11 + $0x8] sm:$0xff]  }
 0x314   :  { %v757_v25 = vmul.f32 %v1948_v23, %v719_v58  ;;  %v1926_v23 = vld [vmem:[%s2465_s11 + $0x18] sm:$0xff]  }
 0x315   :  { %1953 = vrcp.f32 %v748_v0  ;;  %v1950_v24 = vpop.eup %1949  ;;  %v1925_v0 = vld [vmem:[%s2465_s11 + $0x10] sm:$0xff]  }
 0x316   :  { %v758_v26 = vmul.f32 %v1950_v24, %v722_v63  ;;  %v1927_v24 = vld [vmem:[%s2466_s12] sm:$0xff]  }
 0x318   :  { %v761_v27 = vpack.c.bf16 %v758_v26, %v757_v25  ;;  %v1928_v25 = vld [vmem:[%s2466_s12 + $0x8] sm:$0xff]   ;;  %v1929_v26 = vld [vmem:[%s2466_s12 + $0x10] sm:$0xff]  }
 0x31a   :  { %1755 = vmatprep.mubr.msk.bf16.mxu1 %vm584_vm11, %v761_v27  ;;  %v1930_v27 = vld [vmem:[%s2466_s12 + $0x18] sm:$0xff]  }
 0x31d   :  { %v1952_v28 = vpop.eup %1951 }
 0x31e   :  { %v759_v32 = vmul.f32 %v1952_v28, %v727_v7  ;;  %v1931_v28 = vld [vmem:[%s2466_s12 + $0x20] sm:$0xff]  }
 0x31f   :  { %v1954_v31 = vpop.eup %1953 }
 0x320   :  { %v760_v33 = vmul.f32 %v1954_v31, %v730_v11  ;;  %v1932_v31 = vld [vmem:[%s2466_s12 + $0x28] sm:$0xff]  }
 0x322   :  { %v762_v34 = vpack.c.bf16 %v760_v33, %v759_v32  ;;  %v1933_v32 = vld [vmem:[%s2466_s12 + $0x30] sm:$0xff]   ;;  %v1598_v33 = vld [vmem:[%s2467_s10] ss:$0 sm:$0xff] }
 0x324   :  { %1756 = vmatmul.mubr.msk.bf16.vlgmr.msra.gmra.mrb[12].mxu1 %vm584_vm11, %v762_v34 }
 0x325   :  { %1760 = vmatpush3.bf16.msra.mxu1 %v1919_v35 }
 0x326   :  { %1761 = vmatprep.subr.bf16.mxu1 %v1920_v36 }
 0x329   :  { %1762 = vmatpush3.bf16.msra.mxu1 %v1920_v36 }
 0x32a   :  { %1763 = vmatprep.subr.bf16.mxu1 %v1921_v37 }
 0x32d   :  { %1764 = vmatpush3.bf16.msra.mxu1 %v1921_v37  ;;  %v1934_v37 = vld [vmem:[%s2466_s12 + $0x38] sm:$0xff]  }
 0x32e   :  { %1765 = vmatprep.subr.bf16.mxu1 %v1922_v38 }
 0x331   :  { %1766 = vmatpush3.bf16.msra.mxu1 %v1922_v38 }
 0x332   :  { %1771 = vmatprep.subr.bf16.mxu1 %v1923_v21 }
 0x3f7   :  { %v1757_v47 = vpop.f32.mrb[12].mxu1 }
 0x3f8   :  { %v851_v16 = vadd.f32 %v1757_v47, %v1587_v46  ;;  %v842_v42 = vpop.f32.mrb[13].mxu1 }
 0x3f9   :  { %v843_v48 = vadd.f32 %v1587_v46, %v842_v42  ;;  %v1758_v49 = vpop.f32.mrb[14].mxu1 }
 0x3fa   :  { %v1596_v50 = vmul.f32 -1.442695, %v851_v16  ;;  %v854_v51 = vadd.f32 %v1758_v49, %v1587_v46  ;;  %v845_v52 = vpop.f32.mrb[15].mxu1 }
 0x3fb   :  { %v1594_v54 = vmul.f32 -1.442695, %v843_v48  ;;  %v846_v55 = vadd.f32 %v1587_v46, %v845_v52 }
 0x3fc   :  { %1955 = vpow2.f32 %v1596_v50  ;;  %v1597_v57 = vmul.f32 -1.442695, %v854_v51 }
 0x3fd   :  { %1957 = vpow2.f32 %v1594_v54  ;;  %v1595_v58 = vmul.f32 -1.442695, %v846_v55 }
 0x3fe   :  { %1959 = vpow2.f32 %v1597_v57 }
 0x3ff   :  { %1961 = vpow2.f32 %v1595_v58 }
 0x406   :  { %v1956_v59 = vpop.eup %1955 }
 0x407   :  { %v1958_v61 = vpop.eup %1957  ;;  %v871_v62 = vadd.f32 1.0, %v1956_v59 }
 0x408   :  { %v1960_v63 = vpop.eup %1959  ;;  %v869_v2 = vadd.f32 1.0, %v1958_v61 }
 0x409   :  { %v1962_v3 = vpop.eup %1961  ;;  %1963 = vrcp.f32 %v871_v62  ;;  %v872_v4 = vadd.f32 1.0, %v1960_v63 }
 0x40a   :  { %1965 = vrcp.f32 %v869_v2  ;;  %v870_v7 = vadd.f32 1.0, %v1962_v3 }
 0x40b   :  { %1967 = vrcp.f32 %v872_v4 }
 0x40c   :  { %1969 = vrcp.f32 %v870_v7 }
 0x413   :  { %v1964_v8 = vpop.eup %1963 }
 0x414   :  { %v1966_v9 = vpop.eup %1965  ;;  %v883_v12 = vmul.f32 %v1964_v8, %v851_v16 }
 0x415   :  { %v1968_v10 = vpop.eup %1967  ;;  %v881_v14 = vmul.f32 %v1966_v9, %v843_v48 }
 0x416   :  { %v1970_v11 = vpop.eup %1969  ;;  %v884_v13 = vmul.f32 %v1968_v10, %v854_v51 }
 0x417   :  { %v882_v15 = vmul.f32 %v1970_v11, %v846_v55 }
 0x418   :  { %v886_v17 = vpack.c.bf16 %v884_v13, %v883_v12 }
 0x419   :  { %v885_v18 = vpack.c.bf16 %v882_v15, %v881_v14 }
 0x41b   :  { %1767 = vmatprep.mubr.msk.bf16.mxu1 %vm584_vm11, %v885_v18  ;;  %1854 = vmatprep.subr.bf16.mxu0 %v885_v18 }
 0x41c   :  { %1768 = vmatmul.mubr.msk.bf16.vlgmr.msra.gmra.mrb[16].mxu1 %vm584_vm11, %v886_v17  ;;  %1856 = vmatpush3.bf16.msra.mxu0 %v885_v18 }
 0x41d   :  { %1858 = vmatprep.subr.bf16.mxu0 %v886_v17  ;;  %1772 = vmatpush3.bf16.msra.mxu1 %v1923_v21 }
 0x41e   :  { %1773 = vmatprep.subr.bf16.mxu1 %v1924_v22 }
 0x420   :  { %1860 = vmatpush3.bf16.msra.mxu0 %v886_v17 }
 0x421   :  { %1805 = vmatprep.subr.bf16.mxu0 %v2020_v20  ;;  %1774 = vmatpush3.bf16.msra.mxu1 %v1924_v22 }
 0x422   :  { %1775 = vmatprep.subr.bf16.mxu1 %v1925_v0 }
 0x423   :  { %1792 = vmatmul.mubr.msk.f32.vlgmr.msra.gmra.mrb[12].mxu0 %vm1136_vm14, %v2318_v19 }
 0x424   :  { %1806 = vmatpush3.bf16.msra.mxu0 %v1927_v24  ;;  %1821 = vmatprep.mubr.msk.bf16.mxu0 %vm2021_vm1, %v2020_v20 }
 0x425   :  { %1776 = vmatpush3.bf16.msra.mxu1 %v1925_v0  ;;  %1807 = vmatprep.subr.bf16.mxu0 %v2020_v20 }
 0x426   :  { %1777 = vmatprep.subr.bf16.mxu1 %v1926_v23 }
 0x428   :  { %1808 = vmatpush3.bf16.msra.mxu0 %v1928_v25  ;;  %v1293_v25 = vsel %vm1136_vm14, %v2307_v43, 0.0 }
 0x429   :  { %1778 = vmatpush3.bf16.msra.mxu1 %v1926_v23  ;;  %1809 = vmatprep.subr.bf16.mxu0 %v2020_v20 }
 0x42c   :  { %1810 = vmatpush3.bf16.msra.mxu0 %v1929_v26 }
 0x42d   :  { %1811 = vmatprep.subr.bf16.mxu0 %v2020_v20 }
 0x430   :  { %1812 = vmatpush3.bf16.msra.mxu0 %v1930_v27 }
 0x431   :  { %1813 = vmatprep.subr.bf16.mxu0 %v2020_v20 }
 0x434   :  { %1814 = vmatpush3.bf16.msra.mxu0 %v1931_v28 }
 0x435   :  { %1815 = vmatprep.subr.bf16.mxu0 %v2020_v20 }
 0x438   :  { %1816 = vmatpush3.bf16.msra.mxu0 %v1932_v31 }
 0x439   :  { %1817 = vmatprep.subr.bf16.mxu0 %v2020_v20 }
 0x43c   :  { %1818 = vmatpush3.bf16.msra.mxu0 %v1933_v32 }
 0x43d   :  { %1819 = vmatprep.subr.bf16.mxu0 %v2020_v20 }
 0x440   :  { %1820 = vmatpush3.bf16.msra.mxu0 %v1934_v37 }
 0x4ef   :  { %v1769_v34 = vpop.f32.mrb[16].mxu1 }
 0x4f0   :  { %v975_v35 = vadd.f32 %v1769_v34, %v1598_v33  ;;  %v966_v36 = vpop.f32.mrb[17].mxu1 }
 0x4f1   :  { %v967_v38 = vadd.f32 %v1598_v33, %v966_v36  ;;  %v1770_v40 = vpop.f32.mrb[18].mxu1 }
 0x4f2   :  { %v1607_v41 = vmul.f32 -1.442695, %v975_v35  ;;  %v978_v44 = vadd.f32 %v1770_v40, %v1598_v33  ;;  %v969_v46 = vpop.f32.mrb[19].mxu1 }
 0x4f3   :  { %v1605_v47 = vmul.f32 -1.442695, %v967_v38  ;;  %v970_v16 = vadd.f32 %v1598_v33, %v969_v46 }
 0x4f4   :  { %1971 = vpow2.f32 %v1607_v41  ;;  %v1608_v42 = vmul.f32 -1.442695, %v978_v44 }
 0x4f5   :  { %1973 = vpow2.f32 %v1605_v47  ;;  %v1606_v48 = vmul.f32 -1.442695, %v970_v16  ;;  %v520_v47 = vand.u32 2147483648, %v2257_v29 }
 0x4f6   :  { %1975 = vpow2.f32 %v1608_v42  ;;  %v1793_v49 = vpop.f32.mrb[12].mxu0 }
 0x4f7   :  { %1977 = vpow2.f32 %v1606_v48  ;;  %v1209_v50 = vpop.f32.mrb[13].mxu0  ;;  %v513_v48 = vand.u32 2147483648, %v2265_v39 }
 0x4f8   :  { %v1901_v51 = vpack.i.bf16 %v1793_v49, %v1209_v50 }
 0x4fa   :  { %1902 = vrot.lane.b32.xlu1 %v1901_v51, %s2018_s27 }
 0x4fe   :  { %v1972_v52 = vpop.eup %1971 }
 0x4ff   :  { %v1974_v54 = vpop.eup %1973  ;;  %v995_v55 = vadd.f32 1.0, %v1972_v52 }
 0x500   :  { %v1976_v57 = vpop.eup %1975  ;;  %v993_v58 = vadd.f32 1.0, %v1974_v54 }
 0x501   :  { %v1978_v59 = vpop.eup %1977  ;;  %1979 = vrcp.f32 %v995_v55  ;;  %v996_v61 = vadd.f32 1.0, %v1976_v57  ;;  %v527_v57 = vand.u32 2147483648, %v2259_v30 }
 0x502   :  { %1981 = vrcp.f32 %v993_v58  ;;  %v994_v62 = vadd.f32 1.0, %v1978_v59  ;;  %v534_v58 = vand.u32 2147483648, %v2269_v45 }
 0x503   :  { %1983 = vrcp.f32 %v996_v61 }
 0x504   :  { %1985 = vrcp.f32 %v994_v62 }
 0x505   :  { %1987 = vrsqrt.f32 %v2257_v29 }
 0x506   :  { %1989 = vrsqrt.f32 %v2265_v39 }
 0x507   :  { %1991 = vrsqrt.f32 %v2259_v30 }
 0x508   :  { %1993 = vrsqrt.f32 %v2269_v45 }
 0x50b   :  { %v1980_v63 = vpop.eup %1979 }
 0x50c   :  { %v1982_v2 = vpop.eup %1981  ;;  %v1007_v7 = vmul.f32 %v1980_v63, %v975_v35 }
 0x50d   :  { %v1984_v3 = vpop.eup %1983  ;;  %v1005_v9 = vmul.f32 %v1982_v2, %v967_v38 }
 0x50e   :  { %v1986_v4 = vpop.eup %1985  ;;  %v1008_v8 = vmul.f32 %v1984_v3, %v978_v44 }
 0x50f   :  { %v1006_v10 = vmul.f32 %v1986_v4, %v970_v16  ;;  %v1988_v34 = vpop.eup %1987 }
 0x510   :  { %v1010_v11 = vpack.c.bf16 %v1008_v8, %v1007_v7  ;;  %v1990_v36 = vpop.eup %1989  ;;  %v516_v37 = vmul.f32 %v1988_v34, %v2257_v29 }
 0x511   :  { %v1009_v12 = vpack.c.bf16 %v1006_v10, %v1005_v9  ;;  %v1992_v38 = vpop.eup %1991  ;;  %v509_v40 = vmul.f32 %v1990_v36, %v2265_v39 }
 0x512   :  { %v1994_v41 = vpop.eup %1993  ;;  %v518_v44 = vsel %vm517_vm2, %v2257_v29, %v516_v37  ;;  %v523_v46 = vmul.f32 %v1992_v38, %v2259_v30 }
 0x513   :  { %1779 = vmatprep.mubr.msk.bf16.mxu1 %vm584_vm11, %v1009_v12  ;;  %v511_v16 = vsel %vm510_vm3, %v2265_v39, %v509_v40  ;;  %v530_v42 = vmul.f32 %v1994_v41, %v2269_v45  ;;  %v521_v50 = vsel %vm519_vm4, %v520_v47, %v518_v44  ;;  %v1633_v41 = vld [vmem:[%s2470_s15] ss:$0 sm:$0xff]  ;;  %v2015_v47 = vld [vmem:[%s2456_s0 + $0x8] sm:$0xff] }
 0x514   :  { %1780 = vmatmul.mubr.msk.bf16.vlgmr.msra.gmra.mrb[20].mxu1 %vm584_vm11, %v1010_v11  ;;  %v525_v51 = vsel %vm524_vm5, %v2259_v30, %v523_v46  ;;  %v514_v52 = vsel %vm512_vm6, %v513_v48, %v511_v16  ;;  %v537_v59 = vadd.f32 1e-30, %v521_v50 }
 0x515   :  { %1802 = vmatprep.mubr.msk.f32.mxu1 %vm1136_vm14, %v2307_v43  ;;  %v532_v29 = vsel %vm531_vm7, %v2269_v45, %v530_v42  ;;  %v536_v39 = vadd.f32 1e-30, %v514_v52  ;;  %v528_v62 = vsel %vm526_vm8, %v527_v57, %v525_v51 }
 0x516   :  { %v535_v63 = vsel %vm533_vm9, %v534_v58, %v532_v29  ;;  %v538_v2 = vadd.f32 1e-30, %v528_v62 }
 0x517   :  { %v539_v3 = vadd.f32 1e-30, %v535_v63 }
 0x56c   :  { %v1903_v13 = vpop.permute.xlu1 %1902 }
 0x56d   :  { %v1905_v14 = vunpack.i.h.bf16 %v1903_v13  ;;  %v1904_v15 = vunpack.i.l.bf16 %v1903_v13 }
 0x56f   :  { %v1314_v17 = vsel %vm584_vm11, %v2129_v6, %v1905_v14  ;;  %v1313_v18 = vsel %vm584_vm11, %v2124_v5, %v1904_v15  ;;  %v1296_v6 = vsel %vm1136_vm14, %v2318_v19, 0.0  ;;  %v1622_v5 = vld [vmem:[%s2469_s13] ss:$0 sm:$0xff] }
 0x570   :  { %v1315_v21 = vpack.c.bf16 %v1314_v17, %v1313_v18 }
 0x572   :  { %1822 = vmatmul.mubr.bf16.vlgmr.msra.gmra.mrb[16].mxu0 %v1315_v21 }
 0x5e7   :  { %v1781_v22 = vpop.f32.mrb[20].mxu1 }
 0x5e8   :  { %v1083_v0 = vpop.f32.mrb[21].mxu1 }
 0x5e9   :  { %1100 = vperm.xlu0 %1874, %v1083_v0   ;;  %v1782_v23 = vpop.f32.mrb[22].mxu1 }
 0x5ea   :  { %v1086_v24 = vpop.f32.mrb[23].mxu1 }
 0x5eb   :  { %1105 = vperm.xlu1 %1875, %v1086_v24  }
 0x5ed   :  { %1110 = vperm.xlu0 %1874, %v1781_v22  }
 0x5ef   :  { %1115 = vperm.xlu1 %1875, %v1782_v23  }
 0x60c   :  { %1294 = vadd.xlane.f32.xlu0 %v1293_v25 }
 0x613   :  { %1297 = vadd.xlane.f32.xlu1 %v1296_v6 }
 0x645   :  { %v1421_v26 = vpop.f32.mrb[16].mxu0 }
 0x646   :  { %v1422_v27 = vadd.f32 %v1622_v5, %v1421_v26  ;;  %v1823_v43 = vpop.f32.mrb[17].mxu0 }
 0x647   :  { %v1424_v28 = vpop.f32.mrb[18].mxu0 }
 0x648   :  { %v1631_v31 = vmul.f32 -1.442695, %v1422_v27  ;;  %v1425_v32 = vadd.f32 %v1622_v5, %v1424_v28  ;;  %v1824_v33 = vpop.f32.mrb[19].mxu0 }
 0x64a   :  { %1995 = vpow2.f32 %v1631_v31  ;;  %v1632_v35 = vmul.f32 -1.442695, %v1425_v32 }
 0x64c   :  { %1997 = vpow2.f32 %v1632_v35 }
 0x654   :  { %v1996_v49 = vpop.eup %1995 }
 0x655   :  { %v1434_v54 = vadd.f32 1.0, %v1996_v49  ;;  %v2016_v49 = vld [vmem:[%s2456_s0] sm:$0xff] }
 0x656   :  { %v1998_v55 = vpop.eup %1997 }
 0x657   :  { %1999 = vrcp.f32 %v1434_v54  ;;  %v1435_v61 = vadd.f32 1.0, %v1998_v55 }
 0x659   :  { %2001 = vrcp.f32 %v1435_v61 }
 0x65a   :  { %2003 = vrcp.f32 %v537_v59 }
 0x65b   :  { %2005 = vrcp.f32 %v536_v39 }
 0x65c   :  { %2007 = vrcp.f32 %v538_v2 }
 0x65d   :  { %2009 = vrcp.f32 %v539_v3 }
 0x661   :  { %v2000_v30 = vpop.eup %1999 }
 0x662   :  { %v1440_v4 = vmul.f32 %v2000_v30, %v1422_v27 }
 0x663   :  { %v2002_v7 = vpop.eup %2001 }
 0x664   :  { %v1441_v8 = vmul.f32 %v2002_v7, %v1425_v32  ;;  %v2004_v9 = vpop.eup %2003 }
 0x665   :  { %v2006_v10 = vpop.eup %2005  ;;  %v543_v14 = vmul.f32 %v2004_v9, %v2198_v53  ;;  %v1935_v53 = vld [vmem:[%s2468_s14] sm:$0xff]  }
 0x666   :  { %v1442_v11 = vpack.c.bf16 %v1441_v8, %v1440_v4  ;;  %v2008_v13 = vpop.eup %2007  ;;  %v541_v45 = vmul.f32 %v2006_v10, %v2200_v56  ;;  %v1936_v56 = vld [vmem:[%s2468_s14 + $0x8] sm:$0xff]  }
 0x667   :  { %v2010_v15 = vpop.eup %2009  ;;  %v545_v23 = vmul.f32 %v2008_v13, %v2207_v1  ;;  %v1938_v1 = vld [vmem:[%s2468_s14 + $0x18] sm:$0xff]  }
 0x668   :  { %v1101_v12 = vpop.permute.xlu0 %1100  ;;  %v547_v24 = vmul.f32 %v2010_v15, %v2204_v60  ;;  %v1937_v60 = vld [vmem:[%s2468_s14 + $0x10] sm:$0xff]  }
 0x669   :  { %v1118_v18 = vmul.f32 %v1101_v12, %v541_v45 }
 0x66a   :  { %v1106_v17 = vpop.permute.xlu1 %1105 }
 0x66b   :  { %v1119_v21 = vmul.f32 %v1106_v17, %v543_v14 }
 0x66c   :  { %v1111_v22 = vpop.permute.xlu0 %1110 }
 0x66d   :  { %v1861_v0 = vpack.c.bf16 %v1119_v21, %v1118_v18  ;;  %v1120_v6 = vmul.f32 %v1111_v22, %v545_v23 }
 0x66e   :  { %v1116_v25 = vpop.permute.xlu1 %1115 }
 0x66f   :  { %v1121_v5 = vmul.f32 %v1116_v25, %v547_v24  ;;  %1862 = vmatprep.subr.bf16.mxu1 %v1861_v0 }
 0x670   :  { %1864 = vmatpush3.bf16.msra.mxu1 %v1861_v0 }
 0x671   :  { %v1865_v26 = vpack.c.bf16 %v1121_v5, %v1120_v6 }
 0x673   :  { %1866 = vmatprep.subr.bf16.mxu1 %v1865_v26 }
 0x674   :  { %1868 = vmatpush3.bf16.msra.mxu1 %v1865_v26 }
 0x675   :  { %1825 = vmatprep.subr.bf16.mxu1 %v2020_v20 }
 0x677   :  { %1803 = vmatmul.mubr.msk.f32.vlgmr.msra.gmra.mrb[24].mxu1 %vm1136_vm14, %v2318_v19 }
 0x678   :  { %1826 = vmatpush3.bf16.msra.mxu1 %v1935_v53  ;;  %1833 = vmatprep.mubr.msk.bf16.mxu1 %vm2021_vm1, %v2020_v20 }
 0x679   :  { %1827 = vmatprep.subr.bf16.mxu1 %v2020_v20 }
 0x67c   :  { %1828 = vmatpush3.bf16.msra.mxu1 %v1936_v56 }
 0x67d   :  { %1829 = vmatprep.subr.bf16.mxu1 %v2020_v20 }
 0x680   :  { %1830 = vmatpush3.bf16.msra.mxu1 %v1937_v60 }
 0x681   :  { %1831 = vmatprep.subr.bf16.mxu1 %v2020_v20 }
 0x684   :  { %1832 = vmatpush3.bf16.msra.mxu1 %v1938_v1 }
 0x687   :  { %1834 = vmatmul.mubr.msk.bf16.vlgmr.msra.gmra.mrb[28].mxu1 %vm584_vm11, %v1442_v11 }
 0x699   :  { %v1295_v27 = vpop.xlane.xlu0 %1294 }
 0x69a   :  { %v1299_v28 = vmax.f32 %v1295_v27, 1.0 }
 0x6a0   :  { %v1298_v19 = vpop.xlane.xlu1 %1297 }
 0x6a1   :  { %v1300_v43 = vmax.f32 %v1298_v19, 1.0 }
 0x6a3   :  { %2011 = vrcp.f32 %v1300_v43 }
 0x6a4   :  { %2013 = vrcp.f32 %v1299_v28 }
 0x6ad   :  { %v2012_v31 = vpop.eup %2011 }
 0x6ae   :  { %v2014_v32 = vpop.eup %2013 }
 0x74a   :  { %v1804_v33 = vpop.f32.mrb[24].mxu1 }
 0x74b   :  { %v1304_v34 = vmul.f32 %v2012_v31, %v1804_v33  ;;  %v1284_v35 = vpop.f32.mrb[25].mxu1 }
 0x74c   :  { %v1302_v36 = vmul.f32 %v2014_v32, %v1284_v35 }
 0x74d   :  { %1530 = vrot.lane.b32.xlu1 %v1304_v34, %s2018_s27 }
 0x74e   :  { %1528 = vrot.lane.b32.xlu0 %v1302_v36, %s2018_s27 }
 0x75a   :  { %v1519_v20 = vpop.f32.mrb[28].mxu1 }
 0x75b   :  { %v1835_v37 = vpop.f32.mrb[29].mxu1  ;;  %v1520_v48 = vadd.f32 %v1633_v41, %v1519_v20 }
 0x75c   :  { %v1522_v38 = vpop.f32.mrb[30].mxu1 }
 0x75d   :  { %v1836_v40 = vpop.f32.mrb[31].mxu1  ;;  %v1523_v46 = vadd.f32 %v1633_v41, %v1522_v38 }
 0x7bf   :  { %v1531_v44 = vpop.permute.xlu1 %1530 }
 0x7c0   :  { %v1535_v16 = vadd.f32 %v2015_v47, %v1531_v44  ;;  %v1529_v42 = vpop.permute.xlu0 %1528 }
 0x7c1   :  { %v1534_v50 = vadd.f32 %v2016_v49, %v1529_v42 }
 0x7c2   :  { %v1537_v51 = vsel %vm584_vm11, %v1523_v46, %v1535_v16 }
 0x7c3   :  { %v1540_v52 = vsel %vm1538_vm10, %v1537_v51, 0.0  ;;  %v1536_v54 = vsel %vm584_vm11, %v1520_v48, %v1534_v50 }
 0x7c4   :  { %1542 = vst [vmem:[%s2471_s16 + $0x8] sm:$0xff] %v1540_v52  ;;  %v1539_v55 = vsel %vm1538_vm10, %v1536_v54, 0.0 }
 0x7c5   :  { %1541 = vst [vmem:[%s2471_s16] sm:$0xff] %v1539_v55 }

// kernel: forward.9
= control target key start
LH: loop header
LB: loop body
LE: loop exit
PB: predicated region body
PF: predicated region fallthrough
CT: control target
= control target key end

     0   :  { %vm81_vm0 = vcmask 1040384   ;;  %v983_v0 = vmov 0.0   ;;  %vm984_vm1 = vmmov 0   ;;  %vm77_vm2 = vcmask 15360   ;;  %s986_s28 = smov 96   ;;  %s991_s30 = smov 112   ;;  %s1294_s4 = inlined_call_operand.vmem [shape: bf16[2,32], index: 4, kind: input, shape index: {}]   ;;  %s1295_s1 = inlined_call_operand.vmem [shape: f32[2,2], index: 1, kind: input, shape index: {}]   ;;  %s1296_s6 = inlined_call_operand.vmem [shape: bf16[32,8], index: 6, kind: input, shape index: {}]   ;;  %s1297_s8 = inlined_call_operand.vmem [shape: bf16[48,64], index: 8, kind: input, shape index: {}]   ;;  %s1298_s5 = inlined_call_operand.vmem [shape: f32[1,32], index: 5, kind: input, shape index: {}]   ;;  %s1299_s0 = inlined_call_operand.vmem [shape: f32[2,48], index: 0, kind: input, shape index: {}]   ;;  %s1300_s10 = inlined_call_operand.vmem [shape: bf16[64,64], index: 10, kind: input, shape index: {}]   ;;  %s1301_s9 = inlined_call_operand.vmem [shape: f32[1,64], index: 9, kind: input, shape index: {}]   ;;  %s1302_s12 = inlined_call_operand.vmem [shape: bf16[40,64], index: 12, kind: input, shape index: {}]   ;;  %s1303_s11 = inlined_call_operand.vmem [shape: f32[1,64], index: 11, kind: input, shape index: {}]   ;;  %s1304_s7 = inlined_call_operand.vmem [shape: f32[1,8], index: 7, kind: input, shape index: {}]   ;;  %s1305_s16 = inlined_call_operand.vmem [shape: bf16[208,32], index: 16, kind: input, shape index: {}]   ;;  %s1306_s2 = inlined_call_operand.vmem [shape: f32[2,32], index: 2, kind: input, shape index: {}]   ;;  %s1307_s14 = inlined_call_operand.vmem [shape: bf16[64,48], index: 14, kind: input, shape index: {}]   ;;  %s1308_s3 = inlined_call_operand.vmem [shape: f32[2,128], index: 3, kind: input, shape index: {}]   ;;  %s1309_s18 = inlined_call_operand.vmem [shape: bf16[32,21], index: 18, kind: input, shape index: {}]   ;;  %s1310_s13 = inlined_call_operand.vmem [shape: f32[1,64], index: 13, kind: input, shape index: {}]   ;;  %s1311_s17 = inlined_call_operand.vmem [shape: f32[1,32], index: 17, kind: input, shape index: {}]   ;;  %s1312_s15 = inlined_call_operand.vmem [shape: f32[1,48], index: 15, kind: input, shape index: {}]   ;;  %s1313_s19 = inlined_call_operand.vmem [shape: f32[1,21], index: 19, kind: input, shape index: {}]   ;;  %s1314_s20 = inlined_call_operand.vmem [shape: f32[2,256], index: 20, kind: output, shape index: {}]  }
   0x1   :  { %1317 = sst [smem:[#allocation2_spill]] %s1294_s4  ;;  %875 = vmatprep.subr.bf16.mxu1 %v983_v0  ;;  %877 = vmatprep.mubr.msk.bf16.mxu1 %vm984_vm1, %v983_v0  ;;  %vm150_vm3 = vcmask 261120   ;;  %v195_v18 = vld [vmem:[%s1299_s0] sm:$0x3]  ;;  %vm228_vm4 = vcmask 392192   ;;  %v956_v21 = vld [vmem:[%s1300_s10 + $0x8] sm:$0xff]  }
   0x2   :  { %1318 = sst [smem:[#allocation3_spill]] %s1295_s1  ;;  %s1322_s23 = sld [smem:[#allocation2_spill]]  ;;  %911 = vmatprep.subr.bf16.mxu0 %v983_v0  ;;  %917 = vmatprep.mubr.msk.bf16.mxu0 %vm984_vm1, %v983_v0  ;;  %v196_v19 = vpack.c.bf16 %v195_v18, %v195_v18  ;;  %v955_v20 = vld [vmem:[%s1300_s10] sm:$0xff]   ;;  %v957_v22 = vld [vmem:[%s1300_s10 + $0x10] sm:$0xff]   ;;  %v958_v23 = vld [vmem:[%s1300_s10 + $0x18] sm:$0xff]   ;;  %vm313_vm5 = vcmask 523264  }
   0x3   :  { %1319 = sst [smem:[#allocation4_spill]] %s1296_s6  ;;  %s1323_s25 = sld [smem:[#allocation3_spill]]  ;;  %v807_v28 = vld [vmem:[%s1301_s9] ss:$0 sm:$0xff]  ;;  %v960_v44 = vld [vmem:[%s1302_s12 + $0x8] sm:$0xff]   ;;  %vm404_vm6 = vcmask 1043456  }
   0x4   :  { %1320 = sst [smem:[#allocation5_spill]] %s1297_s8  ;;  %s1324_s27 = sld [smem:[#allocation4_spill]]  ;;  %v959_v36 = vld [vmem:[%s1302_s12] sm:$0xff]   ;;  %v961_v46 = vld [vmem:[%s1302_s12 + $0x10] ss:$0 sps:$4 sm:$0xff]   ;;  %v985_v50 = vmov 0  }
   0x5   :  { %1321 = sst [smem:[#allocation6_spill]] %s1298_s5  ;;  %s1326_s22 = sld [smem:[#allocation5_spill]]  ;;  %912 = vmatpush3.bf16.msra.mxu0 %v959_v36  ;;  %v812_v37 = vld [vmem:[%s1303_s11] ss:$0 sm:$0xff]  ;;  %v406_v47 = vsel %vm404_vm6, %v961_v46, 0  ;;  %v976_v59 = vld [vmem:[%s1307_s14 + $0x8] sm:$0xff]  }
   0x6   :  { %s1325_s4 = sld [smem:[#allocation6_spill]]  ;;  %913 = vmatprep.subr.bf16.mxu0 %v983_v0  ;;  %v803_v48 = vld [vmem:[%s1304_s7] ss:$0 sm:$0xff]  ;;  %s987_s5 = smov 32   ;;  %vm400_vm7 = vcmask 326656   ;;  %vm544_vm8 = vcmask 850944  }
   0x7   :  { %v357_v53 = vld [vmem:[%s1306_s2] sm:$0x3]  ;;  %s988_s2 = smov 40   ;;  %s990_s6 = smov 104   ;;  %vm660_vm9 = vcmask 654336   ;;  %vm781_vm10 = vcmask 916480  }
   0x8   :  { %v69_v1 = vld [vmem:[%s1322_s23] sm:$0x1]  ;;  %vm783_vm11 = vcmask 39936  }
   0x9   :  { %v67_v2 = vld [vmem:[%s1323_s25] sm:$0x3]  ;;  %v83_v3 = vsel %vm81_vm0, %v69_v1, 0  ;;  %914 = vmatpush3.bf16.msra.mxu0 %v960_v44  ;;  %v963_v1 = vld [vmem:[%s1305_s16 + $0x8] sm:$0xff]  }
   0xa   :  { %v68_v4 = vpack.c.bf16 %v67_v2, %v67_v2  ;;  %876 = vmatpush3.bf16.msra.mxu1 %v83_v3  ;;  %v950_v5 = vld [vmem:[%s1324_s27] sm:$0xff]   ;;  %v951_v6 = vld [vmem:[%s1324_s27 + $0x8] sm:$0xff]   ;;  %915 = vmatprep.subr.bf16.mxu0 %v983_v0  ;;  %v964_v2 = vld [vmem:[%s1305_s16 + $0x10] sm:$0xff]  }
   0xb   :  { %881 = vmatprep.subr.bf16.mxu1 %v983_v0  ;;  %v952_v14 = vld [vmem:[%s1326_s22] sm:$0xff]   ;;  %v953_v16 = vld [vmem:[%s1326_s22 + $0x8] sm:$0xff]   ;;  %v954_v17 = vld [vmem:[%s1326_s22 + $0x10] sm:$0xff]   ;;  %s989_s22 = smov 64  }
   0xc   :  { %v801_v7 = vld [vmem:[%s1325_s4] ss:$0 sm:$0xff]  ;;  %v965_v3 = vld [vmem:[%s1305_s16 + $0x18] sm:$0xff]  }
   0xd   :  { %878 = vmatmul.mubr.msk.bf16.vlgmr.msra.gmra.mrb[0].mxu1 %vm77_vm2, %v68_v4  ;;  %916 = vmatpush3.bf16.msra.mxu0 %v406_v47  ;;  %v975_v56 = vld [vmem:[%s1307_s14] sm:$0xff]  }
   0xe   :  { %882 = vmatpush3.bf16.msra.mxu1 %v950_v5  ;;  %885 = vmatprep.mubr.msk.bf16.mxu1 %vm984_vm1, %v983_v0  ;;  %v962_v61 = vld [vmem:[%s1305_s16] sm:$0xff]   ;;  %v967_v5 = vld [vmem:[%s1305_s16 + $0x28] sm:$0xff]  }
   0xf   :  { %883 = vmatprep.subr.bf16.mxu1 %v983_v0  ;;  %664 = vmatprep.subr.bf16.mxu0 %v985_v50  ;;  %v66_v63 = vld [vmem:[%s1308_s3] sm:$0x3] }
  0x10   :  { %v966_v4 = vld [vmem:[%s1305_s16 + $0x20] sm:$0xff]  }
  0x11   :  { %v844_v47 = vld [vmem:[%s1313_s19] ss:$0 sm:$0xff] }
  0x12   :  { %884 = vmatpush3.bf16.msra.mxu1 %v951_v6  ;;  %v968_v6 = vld [vmem:[%s1305_s16 + $0x30] sm:$0xff]  }
  0x13   :  { %889 = vmatprep.subr.bf16.mxu1 %v983_v0 }
  0xe0   :  { %v119_v8 = vpop.f32.mrb[0].mxu1 }
  0xe1   :  { %v120_v9 = vadd.f32 %v801_v7, %v119_v8  ;;  %v879_v10 = vpop.f32.mrb[1].mxu1  ;;  %v969_v7 = vld [vmem:[%s1305_s16 + $0x38] sm:$0xff]   ;;  %v970_v8 = vld [vmem:[%s1305_s16 + $0x40] sm:$0xff]  }
  0xe2   :  { %v122_v11 = vpop.f32.mrb[2].mxu1  ;;  %v972_v10 = vld [vmem:[%s1305_s16 + $0x50] sm:$0xff]  }
  0xe3   :  { %v125_v12 = vmax.f32 %v120_v9, 0.0  ;;  %v880_v13 = vpop.f32.mrb[3].mxu1  ;;  %v971_v9 = vld [vmem:[%s1305_s16 + $0x48] sm:$0xff]   ;;  %v973_v11 = vld [vmem:[%s1305_s16 + $0x58] sm:$0xff]  }
  0xe4   :  { %v977_v13 = vld [vmem:[%s1307_s14 + $0x10] sm:$0xff]  }
  0xe5   :  { %v126_v15 = vpack.c.bf16 %v125_v12, %v125_v12  ;;  %v974_v12 = vld [vmem:[%s1305_s16 + $0x60] sm:$0xff]  }
  0xe7   :  { %886 = vmatmul.mubr.msk.bf16.vlgmr.msra.gmra.mrb[4].mxu1 %vm150_vm3, %v126_v15 }
  0xe8   :  { %890 = vmatpush3.bf16.msra.mxu1 %v952_v14  ;;  %895 = vmatprep.mubr.msk.bf16.mxu1 %vm984_vm1, %v983_v0  ;;  %v978_v14 = vld [vmem:[%s1307_s14 + $0x18] sm:$0xff]  }
  0xe9   :  { %891 = vmatprep.subr.bf16.mxu1 %v983_v0 }
  0xec   :  { %892 = vmatpush3.bf16.msra.mxu1 %v953_v16 }
  0xed   :  { %893 = vmatprep.subr.bf16.mxu1 %v983_v0 }
  0xf0   :  { %894 = vmatpush3.bf16.msra.mxu1 %v954_v17 }
  0xf1   :  { %899 = vmatprep.subr.bf16.mxu1 %v983_v0 }
  0xf3   :  { %896 = vmatmul.mubr.msk.bf16.vlgmr.msra.gmra.mrb[8].mxu1 %vm228_vm4, %v196_v19 }
  0xf4   :  { %907 = vmatprep.mubr.msk.bf16.mxu1 %vm984_vm1, %v983_v0  ;;  %900 = vmatpush3.bf16.msra.mxu1 %v955_v20 }
  0xf5   :  { %901 = vmatprep.subr.bf16.mxu1 %v983_v0 }
  0xf8   :  { %902 = vmatpush3.bf16.msra.mxu1 %v956_v21 }
  0xf9   :  { %903 = vmatprep.subr.bf16.mxu1 %v983_v0 }
  0xfc   :  { %904 = vmatpush3.bf16.msra.mxu1 %v957_v22 }
  0xfd   :  { %905 = vmatprep.subr.bf16.mxu1 %v983_v0 }
 0x100   :  { %906 = vmatpush3.bf16.msra.mxu1 %v958_v23  ;;  %v818_v23 = vld [vmem:[%s1310_s13] ss:$0 sm:$0xff] }
 0x101   :  { %921 = vmatprep.subr.bf16.mxu1 %v983_v0 }
 0x1ba   :  { %v188_v24 = vpop.f32.mrb[4].mxu1 }
 0x1bb   :  { %v887_v25 = vpop.f32.mrb[5].mxu1  ;;  %v189_v49 = vadd.f32 %v803_v48, %v188_v24 }
 0x1bc   :  { %v191_v26 = vpop.f32.mrb[6].mxu1 }
 0x1bd   :  { %v888_v27 = vpop.f32.mrb[7].mxu1  ;;  %v194_v52 = vmax.f32 %v189_v49, 0.0 }
 0x1c6   :  { %v266_v29 = vpop.f32.mrb[8].mxu1 }
 0x1c7   :  { %v267_v30 = vadd.f32 %v807_v28, %v266_v29  ;;  %v897_v31 = vpop.f32.mrb[9].mxu1 }
 0x1c8   :  { %v269_v32 = vpop.f32.mrb[10].mxu1 }
 0x1c9   :  { %v272_v33 = vmax.f32 %v267_v30, 0.0  ;;  %v898_v34 = vpop.f32.mrb[11].mxu1  ;;  %v979_v30 = vld [vmem:[%s1309_s18] sm:$0xff]   ;;  %v980_v32 = vld [vmem:[%s1309_s18 + $0x8] sm:$0xff]  }
 0x1cb   :  { %v273_v35 = vpack.c.bf16 %v272_v33, %v272_v33  ;;  %v829_v33 = vld [vmem:[%s1311_s17] ss:$0 sm:$0xff] }
 0x1cd   :  { %908 = vmatmul.mubr.msk.bf16.vlgmr.msra.gmra.mrb[12].mxu1 %vm313_vm5, %v273_v35 }
 0x1ce   :  { %929 = vmatprep.mubr.msk.bf16.mxu1 %vm984_vm1, %v983_v0  ;;  %922 = vmatpush3.bf16.msra.mxu1 %v975_v56 }
 0x1cf   :  { %923 = vmatprep.subr.bf16.mxu1 %v983_v0 }
 0x1d2   :  { %924 = vmatpush3.bf16.msra.mxu1 %v976_v59 }
 0x1d3   :  { %925 = vmatprep.subr.bf16.mxu1 %v983_v0 }
 0x1d6   :  { %926 = vmatpush3.bf16.msra.mxu1 %v977_v13 }
 0x1d7   :  { %927 = vmatprep.subr.bf16.mxu1 %v983_v0 }
 0x1da   :  { %928 = vmatpush3.bf16.msra.mxu1 %v978_v14 }
 0x1db   :  { %933 = vmatprep.subr.bf16.mxu1 %v983_v0 }
 0x2a0   :  { %v351_v38 = vpop.f32.mrb[12].mxu1 }
 0x2a1   :  { %v1172_v39 = vadd.f32 %v812_v37, %v351_v38  ;;  %v909_v40 = vpop.f32.mrb[13].mxu1 }
 0x2a2   :  { %v354_v41 = vpop.f32.mrb[14].mxu1 }
 0x2a3   :  { %v358_v42 = vmul.f32 0.5, %v1172_v39  ;;  %v910_v43 = vpop.f32.mrb[15].mxu1 }
 0x2a5   :  { %v359_v45 = vmul.f32 1.442695, %v358_v42  ;;  %v823_v42 = vld [vmem:[%s1312_s15] ss:$0 sm:$0xff] }
 0x2a7   :  { %981 = vpow2.f32 %v359_v45 }
 0x2b1   :  { %v982_v51 = vpop.eup %981 }
 0x2b2   :  { %362 = vrot.lane.b32.xlu0 %v982_v51, %s986_s28 }
 0x2b6   :  { %368 = vrot.lane.b32.xlu0 %v194_v52, %s987_s5 }
 0x324   :  { %v363_v54 = vpop.permute.xlu0 %362 }
 0x325   :  { %v365_v55 = vmul.f32 %v363_v54, %v357_v53 }
 0x327   :  { %v366_v57 = vadd.f32 %v365_v55, %v1172_v39 }
 0x328   :  { %v369_v58 = vpop.permute.xlu0 %368 }
 0x329   :  { %v371_v60 = vsel %vm150_vm3, %v366_v57, %v369_v58 }
 0x32a   :  { %540 = vrot.lane.b32.xlu0 %v371_v60, %s988_s2  ;;  %v372_v62 = vpack.c.bf16 %v371_v60, %v371_v60  ;;  %533 = vrot.lane.b32.xlu1 %v371_v60, %s989_s22 }
 0x32c   :  { %918 = vmatmul.mubr.msk.bf16.vlgmr.msra.gmra.mrb[0].mxu0 %vm400_vm7, %v372_v62 }
 0x32d   :  { %665 = vmatpush1.bf16.msra.mxu0 %v962_v61 }
 0x32e   :  { %537 = vrot.lane.b32.xlu1 %v66_v63, %s990_s6  ;;  %666 = vmatprep.subr.bf16.mxu0 %v985_v50 }
 0x331   :  { %667 = vmatpush1.bf16.msra.mxu0 %v963_v1 }
 0x332   :  { %668 = vmatprep.subr.bf16.mxu0 %v985_v50 }
 0x335   :  { %669 = vmatpush1.bf16.msra.mxu0 %v964_v2 }
 0x336   :  { %670 = vmatprep.subr.bf16.mxu0 %v985_v50 }
 0x339   :  { %671 = vmatpush1.bf16.msra.mxu0 %v965_v3 }
 0x33a   :  { %672 = vmatprep.subr.bf16.mxu0 %v985_v50 }
 0x33d   :  { %673 = vmatpush1.bf16.msra.mxu0 %v966_v4 }
 0x33e   :  { %674 = vmatprep.subr.bf16.mxu0 %v985_v50 }
 0x341   :  { %675 = vmatpush1.bf16.msra.mxu0 %v967_v5 }
 0x342   :  { %676 = vmatprep.subr.bf16.mxu0 %v985_v50 }
 0x345   :  { %677 = vmatpush1.bf16.msra.mxu0 %v968_v6 }
 0x346   :  { %678 = vmatprep.subr.bf16.mxu0 %v985_v50 }
 0x349   :  { %679 = vmatpush1.bf16.msra.mxu0 %v969_v7 }
 0x34a   :  { %680 = vmatprep.subr.bf16.mxu0 %v985_v50 }
 0x34d   :  { %681 = vmatpush1.bf16.msra.mxu0 %v970_v8 }
 0x34e   :  { %682 = vmatprep.subr.bf16.mxu0 %v985_v50 }
 0x351   :  { %683 = vmatpush1.bf16.msra.mxu0 %v971_v9 }
 0x352   :  { %684 = vmatprep.subr.bf16.mxu0 %v985_v50 }
 0x355   :  { %685 = vmatpush1.bf16.msra.mxu0 %v972_v10 }
 0x356   :  { %686 = vmatprep.subr.bf16.mxu0 %v985_v50 }
 0x359   :  { %687 = vmatpush1.bf16.msra.mxu0 %v973_v11 }
 0x35a   :  { %688 = vmatprep.subr.bf16.mxu0 %v985_v50 }
 0x35d   :  { %689 = vmatpush1.bf16.msra.mxu0 %v974_v12 }
 0x39c   :  { %v534_v15 = vpop.permute.xlu1 %533  ;;  %v541_v16 = vpop.permute.xlu0 %540 }
 0x39d   :  { %v543_v17 = vsel %vm313_vm5, %v66_v63, %v534_v15 }
 0x3a0   :  { %v538_v18 = vpop.permute.xlu1 %537 }
 0x3a1   :  { %v545_v19 = vsel %vm544_vm8, %v543_v17, %v538_v18  ;;  %v546_v20 = vsel %vm400_vm7, %v538_v18, %v541_v16 }
 0x3a2   :  { %v547_v21 = vpack.c.bf16 %v545_v19, %v545_v19  ;;  %v548_v22 = vpack.c.bf16 %v546_v20, %v546_v20 }
 0x3a4   :  { %843 = vmatprep.mubr.msk.bf16.mxu0 %vm660_vm9, %v548_v22 }
 0x3a5   :  { %697 = vmatmul.mubr.bf16.vlgmr.msra.gmra.mrb[4].mxu0 %v547_v21 }
 0x3ff   :  { %v442_v24 = vpop.f32.mrb[0].mxu0 }
 0x400   :  { %v443_v25 = vadd.f32 %v818_v23, %v442_v24  ;;  %v919_v26 = vpop.f32.mrb[1].mxu0 }
 0x401   :  { %v445_v27 = vpop.f32.mrb[2].mxu0 }
 0x402   :  { %v448_v28 = vmax.f32 %v443_v25, 0.0  ;;  %v920_v29 = vpop.f32.mrb[3].mxu0 }
 0x404   :  { %v449_v31 = vpack.c.bf16 %v448_v28, %v448_v28 }
 0x406   :  { %930 = vmatmul.mubr.msk.bf16.vlgmr.msra.gmra.mrb[16].mxu1 %vm313_vm5, %v449_v31 }
 0x407   :  { %934 = vmatpush3.bf16.msra.mxu1 %v979_v30  ;;  %937 = vmatprep.mubr.msk.bf16.mxu1 %vm984_vm1, %v983_v0 }
 0x408   :  { %935 = vmatprep.subr.bf16.mxu1 %v983_v0 }
 0x40b   :  { %936 = vmatpush3.bf16.msra.mxu1 %v980_v32 }
 0x478   :  { %v698_v34 = vpop.f32.mrb[4].mxu0 }
 0x479   :  { %v699_v35 = vadd.f32 %v829_v33, %v698_v34  ;;  %v700_v36 = vpop.f32.mrb[5].mxu0 }
 0x47a   :  { %v701_v37 = vpop.f32.mrb[6].mxu0 }
 0x47b   :  { %v704_v38 = vmax.f32 %v699_v35, 0.0  ;;  %v702_v40 = vpop.f32.mrb[7].mxu0 }
 0x47d   :  { %v705_v41 = vpack.c.bf16 %v704_v38, %v704_v38 }
 0x47f   :  { %938 = vmatmul.mubr.msk.bf16.vlgmr.msra.gmra.mrb[20].mxu1 %vm150_vm3, %v705_v41 }
 0x4d9   :  { %v526_v43 = vpop.f32.mrb[16].mxu1 }
 0x4da   :  { %v527_v0 = vadd.f32 %v823_v42, %v526_v43  ;;  %v931_v44 = vpop.f32.mrb[17].mxu1 }
 0x4db   :  { %v529_v45 = vpop.f32.mrb[18].mxu1 }
 0x4dc   :  { %773 = vrot.lane.b32.xlu1 %v527_v0, %s989_s22  ;;  %v932_v46 = vpop.f32.mrb[19].mxu1 }
 0x54e   :  { %v774_v53 = vpop.permute.xlu1 %773 }
 0x54f   :  { %v780_v54 = vsel %vm313_vm5, %v1172_v39, %v774_v53 }
 0x552   :  { %v766_v48 = vpop.f32.mrb[20].mxu1 }
 0x553   :  { %v767_v49 = vadd.f32 %v844_v47, %v766_v48  ;;  %v939_v50 = vpop.f32.mrb[21].mxu1 }
 0x554   :  { %v769_v51 = vpop.f32.mrb[22].mxu1 }
 0x555   :  { %777 = vrot.lane.b32.xlu0 %v767_v49, %s991_s30  ;;  %v940_v52 = vpop.f32.mrb[23].mxu1 }
 0x5c7   :  { %v778_v55 = vpop.permute.xlu0 %777 }
 0x5c8   :  { %v782_v56 = vsel %vm781_vm10, %v780_v54, %v778_v55  ;;  %v784_v57 = vsel %vm783_vm11, %v778_v55, 0.0 }
 0x5c9   :  { %v787_v58 = vcombine.low %v782_v56, %v784_v57 }
 0x5cb   :  { %848 = vst.sshfl [vmem:[%s1314_s20] sm:$0x33 pattern:$0x76325410] %v787_v58 }

</bundles_post_ra>
